<compile_context>
chip_gen: v6e
topology: v6e:2x2x1
jax: 0.10.0
libtpu: 0.0.40
codegen_flags: <defaults>
</compile_context>

<pallas_src>
import functools

import jax
import jax.numpy as jnp
from jax import lax
from jax.experimental import pallas as pl
from jax.experimental.pallas import tpu as pltpu


def _round_up(v, m):
    return ((v + m - 1) // m) * m


def _mish(v):
    # mish(v) = v * tanh(softplus(v))
    # tanh(softplus(v)) = (e^v*(e^v+2)) / (e^v*(e^v+2) + 2)
    # Single transcendental (exp) + one approx EUP reciprocal; clamp avoids
    # overflow (for v >= 20 the ratio is 1 to f32 precision).
    vc = jnp.minimum(v, 20.0)
    e = jnp.exp(vc)
    n = e * (e + 2.0)
    r = n * pl.reciprocal(n + 2.0, approx=True)
    return v * r


def resblock_kernel(x_ref, w1_ref, b1_ref, w2_ref, b2_ref, o_ref, *,
                    H, W, kconcat, tap_dtype):
    # x_ref : (Mb, Cp)                 io dtype   Mb = Nb*H*W rows, lane-dense C
    # w1_ref: (Cp, Hp)                 bf16       1x1 conv, BN1 scale folded in
    # b1_ref: (1, Hp)                  f32        folded BN1 bias
    # w2_ref: (3, 3*Hp, Cp) or (9, Hp, Cp)  bf16  3x3 conv taps, BN2 scale folded
    # b2_ref: (1, Cp)                  f32        folded BN2 bias
    # o_ref : (Mb, Cp)                 io dtype
    Mb = x_ref.shape[0]
    HW = H * W

    # ---- 1x1 conv (channel matmul) + BN1 bias + Mish ----
    t = jnp.dot(x_ref[...].astype(jnp.bfloat16), w1_ref[...],
                preferred_element_type=jnp.float32)
    t = _mish(t + b1_ref[...])
    tb = t.astype(tap_dtype)          # cast once; all rolls/masks run on this

    # ---- per-tap boundary masks, hoisted (0/1 values in the tap dtype) ----
    p = lax.broadcasted_iota(jnp.int32, (Mb, 1), 0)
    col = p % W                       # column within the image row
    rin = p % HW                      # flat position within the image
    one, zero = jnp.float32(1.0), jnp.float32(0.0)
    left = jnp.where(col >= 1, one, zero).astype(tap_dtype)        # dj == -1
    right = jnp.where(col <= W - 2, one, zero).astype(tap_dtype)   # dj == +1
    top = jnp.where(rin >= W, one, zero).astype(tap_dtype)         # di == -1
    bot = jnp.where(rin < HW - W, one, zero).astype(tap_dtype)     # di == +1
    row_m = {-1: top, 0: None, 1: bot}
    col_m = {-1: left, 0: None, 1: right}
    tap_m = {}
    for di in (-1, 0, 1):
        for dj in (-1, 0, 1):
            mi, mj = row_m[di], col_m[dj]
            if mi is None:
                tap_m[(di, dj)] = mj
            elif mj is None:
                tap_m[(di, dj)] = mi
            else:
                tap_m[(di, dj)] = mi * mj

    def tap(di, dj):
        # Value at destination p is t[p + di*W + dj]; the mask zeroes every
        # source that falls outside the destination's image (this also kills
        # the block-level roll wraparound), so K-concat stays correct.
        d = di * W + dj
        s = tb if d == 0 else pltpu.roll(tb, (-d) % Mb, axis=0)
        m = tap_m[(di, dj)]
        return s if m is None else s * m

    def to_mxu(a):
        return a if a.dtype == jnp.bfloat16 else a.astype(jnp.bfloat16)

    # ---- 3x3 conv on the MXU ----
    acc = None
    if kconcat:
        # 3 matmuls with K = 3*Hp: fills the 256-deep MXU on v6e/v7x.
        for di in (-1, 0, 1):
            lhs = to_mxu(jnp.concatenate(
                [tap(di, -1), tap(di, 0), tap(di, 1)], axis=1))
            part = jnp.dot(lhs, w2_ref[di + 1],
                           preferred_element_type=jnp.float32)
            acc = part if acc is None else acc + part
    else:
        # 9 matmuls with K = Hp: v5-class MXUs are already full at K=128.
        for di in (-1, 0, 1):
            for dj in (-1, 0, 1):
                k = (di + 1) * 3 + (dj + 1)
                part = jnp.dot(to_mxu(tap(di, dj)), w2_ref[k],
                               preferred_element_type=jnp.float32)
                acc = part if acc is None else acc + part

    # ---- BN2 bias + Mish + residual ----
    y = _mish(acc + b2_ref[...])
    o_ref[...] = (x_ref[...].astype(jnp.float32) + y).astype(o_ref.dtype)


def _tpu_layout_params():
    """Return (vmem_capacity_bytes, old_mxu) with safe fallbacks."""
    kind = ""
    try:
        kind = jax.devices()[0].device_kind.lower()
    except Exception:
        pass
    # v2..v5 have 128-deep MXU contraction -> no K-concat win there.
    old_mxu = any(v in kind for v in ("v2", "v3", "v4", "v5"))
    if "v7" in kind:
        vmem_cap = 64 << 20          # per-TensorCore VMEM on v7x
    elif kind:
        vmem_cap = 128 << 20         # v5e / v5p / v6e
    else:
        vmem_cap = 64 << 20          # unknown: be conservative
    try:
        vmem_cap = int(pltpu.get_tpu_info().vmem_capacity_bytes)
    except Exception:
        pass
    return vmem_cap, old_mxu


def resblock_pallas(x_nhwc, w1, b1, w2, b2):
    """x_nhwc: (N,H,W,C); w1: (C,Hc) BN1-scale-folded; b1: (Hc,);
    w2: (3,3,Hc,C) HWIO BN2-scale-folded; b2: (C,)."""
    N, H, W, C = x_nhwc.shape
    Hc = w1.shape[1]
    HW = H * W
    # NOTE: lane padding wastes bandwidth when C << 128 (test-sized inputs);
    # real CSPDarknet Resblocks (64-512 channels) are lane-dense as intended.
    Cp = _round_up(C, 128)
    Hp = _round_up(Hc, 128)

    # Keep the caller's dtype in HBM when it's bf16 (halves HBM traffic for
    # bf16 models); everything else goes through f32. Residual math is f32.
    io_dtype = jnp.bfloat16 if x_nhwc.dtype == jnp.bfloat16 else jnp.float32

    # --- generation-aware tiling & VMEM budget ------------------------------
    vmem_cap, old_mxu = _tpu_layout_params()
    kconcat = not old_mxu
    vmem_limit = max(32 << 20, min((vmem_cap * 3) // 4, 112 << 20))
    budget = min(vmem_limit // 9, 12 << 20)      # working set ~ 8-9x the x-block
    per_img = HW * Cp * jnp.dtype(io_dtype).itemsize
    nb = max(1, min(N, budget // max(per_img, 1)))
    # Keep >=2 grid steps when possible: shards the "parallel" batch axis on
    # v7x's two TensorCores and lets the double-buffer pipeline overlap.
    min_steps = 2 if N >= 2 else 1
    nb = min(nb, max(1, (N + min_steps - 1) // min_steps))
    n_pad = _round_up(N, nb)                     # pad N instead of divisor search
    grid = (n_pad // nb,)
    Mb = nb * HW

    xf = jnp.pad(x_nhwc.astype(io_dtype),
                 ((0, n_pad - N), (0, 0), (0, 0), (0, Cp - C)))
    xf = xf.reshape(n_pad * HW, Cp)
    w1p = jnp.pad(w1, ((0, Cp - C), (0, Hp - Hc))).astype(jnp.bfloat16)
    b1p = jnp.pad(b1, (0, Hp - Hc)).reshape(1, Hp).astype(jnp.float32)
    w2p = jnp.pad(w2, ((0, 0), (0, 0), (0, Hp - Hc), (0, Cp - C)))
    w2p = w2p.astype(jnp.bfloat16)
    w2p = w2p.reshape(3, 3 * Hp, Cp) if kconcat else w2p.reshape(9, Hp, Cp)
    b2p = jnp.pad(b2, (0, Cp - C)).reshape(1, Cp).astype(jnp.float32)

    def call(tap_dtype):
        kernel = functools.partial(resblock_kernel, H=H, W=W,
                                   kconcat=kconcat, tap_dtype=tap_dtype)
        return pl.pallas_call(
            kernel,
            out_shape=jax.ShapeDtypeStruct((n_pad * HW, Cp), io_dtype),
            grid_spec=pltpu.PrefetchScalarGridSpec(
                num_scalar_prefetch=0,
                grid=grid,
                in_specs=[
                    pl.BlockSpec((Mb, Cp), lambda n: (n, 0)),
                    pl.BlockSpec((Cp, Hp), lambda n: (0, 0)),
                    pl.BlockSpec((1, Hp), lambda n: (0, 0)),
                    pl.BlockSpec(w2p.shape, lambda n: (0, 0, 0)),
                    pl.BlockSpec((1, Cp), lambda n: (0, 0)),
                ],
                out_specs=pl.BlockSpec((Mb, Cp), lambda n: (n, 0)),
            ),
            compiler_params=pltpu.CompilerParams(
                dimension_semantics=("parallel",),
                vmem_limit_bytes=int(vmem_limit)),
        )(xf, w1p, b1p, w2p, b2p)

    try:
        out2d = call(jnp.bfloat16)   # bf16 taps: half the XLU roll volume
    except Exception:
        # Fallback for Mosaic builds that only lower 32-bit sublane rotates.
        out2d = call(jnp.float32)

    out = out2d.reshape(n_pad, H, W, Cp)[:N, :, :, :C]
    return out.astype(x_nhwc.dtype)


def _fold_bn(gamma, beta, mean, var, eps=1e-5):
    scale = gamma / jnp.sqrt(var + eps)
    bias = beta - mean * scale
    return scale, bias


def _reference(x_nhwc, w1_hwio, bn1, w2_hwio, bn2, eps=1e-5):
    """Pure-JAX f32 reference of the PyTorch Resblock forward (eval-mode BN)."""
    def bn(y, params):
        g, b, m, v = params
        return (y - m) / jnp.sqrt(v + eps) * g + b

    def mish(y):
        return y * jnp.tanh(jax.nn.softplus(y))

    dn = ('NHWC', 'HWIO', 'NHWC')
    t = lax.conv_general_dilated(x_nhwc, w1_hwio, (1, 1), 'SAME',
                                 dimension_numbers=dn)
    t = mish(bn(t, bn1))
    y = lax.conv_general_dilated(t, w2_hwio, (1, 1), 'SAME',
                                 dimension_numbers=dn)
    y = mish(bn(y, bn2))
    return x_nhwc + y


if __name__ == "__main__":
    # Small shapes consistent with Resblock(channels=4): x is NCHW (2,4,16,16)
    N, C, H, W = 2, 4, 16, 16
    Hc = C  # hidden_channels defaults to channels

    key = jax.random.PRNGKey(0)
    keys = jax.random.split(key, 11)

    x_nchw = jax.random.normal(keys[0], (N, C, H, W), jnp.float32)

    # Conv weights (PyTorch OIHW) -> our layouts
    w1_oihw = 0.2 * jax.random.normal(keys[1], (Hc, C, 1, 1), jnp.float32)
    w2_oihw = 0.2 * jax.random.normal(keys[2], (C, Hc, 3, 3), jnp.float32)
    w1 = jnp.transpose(w1_oihw[:, :, 0, 0], (1, 0))          # (C, Hc)
    w2 = jnp.transpose(w2_oihw, (2, 3, 1, 0))                # (3,3,Hc,C) HWIO
    w1_hwio = w1[None, None]                                  # (1,1,C,Hc)

    # BatchNorm params (eval mode, running stats), deterministic
    g1 = 1.0 + 0.1 * jax.random.normal(keys[3], (Hc,), jnp.float32)
    be1 = 0.1 * jax.random.normal(keys[4], (Hc,), jnp.float32)
    m1 = 0.05 * jax.random.normal(keys[5], (Hc,), jnp.float32)
    v1 = 1.0 + 0.1 * jnp.abs(jax.random.normal(keys[6], (Hc,), jnp.float32))
    g2 = 1.0 + 0.1 * jax.random.normal(keys[7], (C,), jnp.float32)
    be2 = 0.1 * jax.random.normal(keys[8], (C,), jnp.float32)
    m2 = 0.05 * jax.random.normal(keys[9], (C,), jnp.float32)
    v2 = 1.0 + 0.1 * jnp.abs(jax.random.normal(keys[10], (C,), jnp.float32))

    # TODO(synk): training-mode BatchNorm (batch statistics) is not modeled;
    # eval-mode running stats are folded into the conv weights/bias instead.
    s1, b1 = _fold_bn(g1, be1, m1, v1)
    s2, b2 = _fold_bn(g2, be2, m2, v2)

    # Fold BN scales into conv weights; biases stay additive in the kernel.
    w1_folded = w1 * s1[None, :]
    w2_folded = w2 * s2[None, None, None, :]

    # NCHW -> NHWC for the kernel
    x_nhwc = jnp.transpose(x_nchw, (0, 2, 3, 1))

    out = resblock_pallas(x_nhwc, w1_folded, b1, w2_folded, b2)
    out = jax.block_until_ready(out)

    ref = _reference(x_nhwc, w1_hwio, (g1, be1, m1, v1), w2, (g2, be2, m2, v2))
    assert out.shape == (N, H, W, C)
    # bf16 MXU operands / bf16 taps + approx reciprocal in Mish -> relaxed tol.
    err = float(jnp.max(jnp.abs(out - ref)))
    assert jnp.allclose(out, ref, atol=2e-2, rtol=2e-2), err

    print("KERNEL_OK")
</pallas_src>

<mosaic_0001>
module attributes {stable_mosaic.version = 11 : i64} {
  func.func @resblock_kernel(%arg0: i32, %arg1: memref<256x128xf32, #tpu.memory_space<vmem>>, %arg2: memref<128x128xbf16, #tpu.memory_space<vmem>>, %arg3: memref<1x128xf32, #tpu.memory_space<vmem>>, %arg4: memref<3x384x128xbf16, #tpu.memory_space<vmem>>, %arg5: memref<1x128xf32, #tpu.memory_space<vmem>>, %arg6: memref<256x128xf32, #tpu.memory_space<vmem>>) attributes {dimension_semantics = [#tpu.dimension_semantics<parallel>], iteration_bounds = array<i64: 2>, scalar_prefetch = 0 : i64, scratch_operands = 0 : i64, tpu.core_type = #tpu.core_type<tc>, window_params = [{transform_indices = @transform_0, window_bounds = array<i64: 256, 128>}, {pipeline_mode = #tpu.pipeline_mode<synchronous>, transform_indices = @transform_1, window_bounds = array<i64: 128, 128>}, {pipeline_mode = #tpu.pipeline_mode<synchronous>, transform_indices = @transform_2, window_bounds = array<i64: 1, 128>}, {pipeline_mode = #tpu.pipeline_mode<synchronous>, transform_indices = @transform_3, window_bounds = array<i64: 3, 384, 128>}, {pipeline_mode = #tpu.pipeline_mode<synchronous>, transform_indices = @transform_4, window_bounds = array<i64: 1, 128>}, {transform_indices = @transform_5, window_bounds = array<i64: 256, 128>}]} {
    %c0 = arith.constant 0 : index
    %c0_0 = arith.constant 0 : index
    %0 = vector.load %arg1[%c0, %c0_0] : memref<256x128xf32, #tpu.memory_space<vmem>>, vector<256x128xf32>
    %1 = arith.truncf %0 : vector<256x128xf32> to vector<256x128xbf16>
    %c0_1 = arith.constant 0 : index
    %c0_2 = arith.constant 0 : index
    %2 = vector.load %arg2[%c0_1, %c0_2] : memref<128x128xbf16, #tpu.memory_space<vmem>>, vector<128x128xbf16>
    %cst = arith.constant dense<0.000000e+00> : vector<256x128xf32>
    %3 = tpu.matmul %1, %2, %cst {dimension_numbers = #tpu.dot_dimension_numbers<[1], [0], [0], [1], [0, 0, 1, 1], [], []>} : vector<256x128xbf16>, vector<128x128xbf16>, vector<256x128xf32> -> vector<256x128xf32>
    %c0_3 = arith.constant 0 : index
    %c0_4 = arith.constant 0 : index
    %4 = vector.load %arg3[%c0_3, %c0_4] : memref<1x128xf32, #tpu.memory_space<vmem>>, vector<1x128xf32>
    %5 = vector.broadcast %4 : vector<1x128xf32> to vector<256x128xf32>
    %6 = arith.addf %3, %5 : vector<256x128xf32>
    %cst_5 = arith.constant 2.000000e+01 : f32
    %7 = vector.broadcast %cst_5 : f32 to vector<256x128xf32>
    %8 = arith.minimumf %6, %7 : vector<256x128xf32>
    %9 = math.exp %8 : vector<256x128xf32>
    %cst_6 = arith.constant 2.000000e+00 : f32
    %10 = vector.broadcast %cst_6 : f32 to vector<256x128xf32>
    %11 = arith.addf %9, %10 : vector<256x128xf32>
    %12 = arith.mulf %9, %11 : vector<256x128xf32>
    %cst_7 = arith.constant 2.000000e+00 : f32
    %13 = vector.broadcast %cst_7 : f32 to vector<256x128xf32>
    %14 = arith.addf %12, %13 : vector<256x128xf32>
    %15 = tpu.reciprocal %14 {approx = true} : vector<256x128xf32> -> vector<256x128xf32>
    %16 = arith.mulf %12, %15 : vector<256x128xf32>
    %17 = arith.mulf %6, %16 : vector<256x128xf32>
    %18 = arith.truncf %17 : vector<256x128xf32> to vector<256x128xbf16>
    %19 = tpu.iota {dimensions = array<i32: 0>} : vector<256x1xi32>
    %c16_i32 = arith.constant 16 : i32
    %c0_i32 = arith.constant 0 : i32
    %20 = arith.cmpi eq, %c16_i32, %c0_i32 : i32
    %c1_i32 = arith.constant 1 : i32
    %21 = arith.select %20, %c1_i32, %c16_i32 : i32
    %22 = vector.broadcast %21 : i32 to vector<256x1xi32>
    %23 = arith.remsi %19, %22 : vector<256x1xi32>
    %c0_i32_8 = arith.constant 0 : i32
    %24 = vector.broadcast %c0_i32_8 : i32 to vector<256x1xi32>
    %25 = arith.cmpi ne, %23, %24 : vector<256x1xi32>
    %c0_i32_9 = arith.constant 0 : i32
    %26 = vector.broadcast %c0_i32_9 : i32 to vector<256x1xi32>
    %27 = arith.cmpi slt, %23, %26 : vector<256x1xi32>
    %c0_i32_10 = arith.constant 0 : i32
    %28 = arith.cmpi slt, %21, %c0_i32_10 : i32
    %29 = vector.broadcast %28 : i1 to vector<256x1xi1>
    %30 = vector.broadcast %29 : vector<256x1xi1> to vector<256x1xi1>
    %31 = arith.xori %27, %30 : vector<256x1xi1>
    %32 = arith.andi %31, %25 : vector<256x1xi1>
    %33 = vector.broadcast %21 : i32 to vector<256x1xi32>
    %34 = arith.addi %23, %33 : vector<256x1xi32>
    %35 = arith.select %32, %34, %23 : vector<256x1xi1>, vector<256x1xi32>
    %c256_i32 = arith.constant 256 : i32
    %c0_i32_11 = arith.constant 0 : i32
    %36 = arith.cmpi eq, %c256_i32, %c0_i32_11 : i32
    %c1_i32_12 = arith.constant 1 : i32
    %37 = arith.select %36, %c1_i32_12, %c256_i32 : i32
    %38 = vector.broadcast %37 : i32 to vector<256x1xi32>
    %39 = arith.remsi %19, %38 : vector<256x1xi32>
    %c0_i32_13 = arith.constant 0 : i32
    %40 = vector.broadcast %c0_i32_13 : i32 to vector<256x1xi32>
    %41 = arith.cmpi ne, %39, %40 : vector<256x1xi32>
    %c0_i32_14 = arith.constant 0 : i32
    %42 = vector.broadcast %c0_i32_14 : i32 to vector<256x1xi32>
    %43 = arith.cmpi slt, %39, %42 : vector<256x1xi32>
    %c0_i32_15 = arith.constant 0 : i32
    %44 = arith.cmpi slt, %37, %c0_i32_15 : i32
    %45 = vector.broadcast %44 : i1 to vector<256x1xi1>
    %46 = vector.broadcast %45 : vector<256x1xi1> to vector<256x1xi1>
    %47 = arith.xori %43, %46 : vector<256x1xi1>
    %48 = arith.andi %47, %41 : vector<256x1xi1>
    %49 = vector.broadcast %37 : i32 to vector<256x1xi32>
    %50 = arith.addi %39, %49 : vector<256x1xi32>
    %51 = arith.select %48, %50, %39 : vector<256x1xi1>, vector<256x1xi32>
    %c1_i32_16 = arith.constant 1 : i32
    %52 = vector.broadcast %c1_i32_16 : i32 to vector<256x1xi32>
    %53 = arith.cmpi sge, %35, %52 : vector<256x1xi32>
    %cst_17 = arith.constant 1.000000e+00 : f32
    %cst_18 = arith.constant 0.000000e+00 : f32
    %54 = vector.broadcast %cst_17 : f32 to vector<256x1xf32>
    %55 = vector.broadcast %cst_18 : f32 to vector<256x1xf32>
    %56 = arith.select %53, %54, %55 : vector<256x1xi1>, vector<256x1xf32>
    %57 = arith.truncf %56 : vector<256x1xf32> to vector<256x1xbf16>
    %c14_i32 = arith.constant 14 : i32
    %58 = vector.broadcast %c14_i32 : i32 to vector<256x1xi32>
    %59 = arith.cmpi sle, %35, %58 : vector<256x1xi32>
    %cst_19 = arith.constant 1.000000e+00 : f32
    %cst_20 = arith.constant 0.000000e+00 : f32
    %60 = vector.broadcast %cst_19 : f32 to vector<256x1xf32>
    %61 = vector.broadcast %cst_20 : f32 to vector<256x1xf32>
    %62 = arith.select %59, %60, %61 : vector<256x1xi1>, vector<256x1xf32>
    %63 = arith.truncf %62 : vector<256x1xf32> to vector<256x1xbf16>
    %c16_i32_21 = arith.constant 16 : i32
    %64 = vector.broadcast %c16_i32_21 : i32 to vector<256x1xi32>
    %65 = arith.cmpi sge, %51, %64 : vector<256x1xi32>
    %cst_22 = arith.constant 1.000000e+00 : f32
    %cst_23 = arith.constant 0.000000e+00 : f32
    %66 = vector.broadcast %cst_22 : f32 to vector<256x1xf32>
    %67 = vector.broadcast %cst_23 : f32 to vector<256x1xf32>
    %68 = arith.select %65, %66, %67 : vector<256x1xi1>, vector<256x1xf32>
    %69 = arith.truncf %68 : vector<256x1xf32> to vector<256x1xbf16>
    %c240_i32 = arith.constant 240 : i32
    %70 = vector.broadcast %c240_i32 : i32 to vector<256x1xi32>
    %71 = arith.cmpi slt, %51, %70 : vector<256x1xi32>
    %cst_24 = arith.constant 1.000000e+00 : f32
    %cst_25 = arith.constant 0.000000e+00 : f32
    %72 = vector.broadcast %cst_24 : f32 to vector<256x1xf32>
    %73 = vector.broadcast %cst_25 : f32 to vector<256x1xf32>
    %74 = arith.select %71, %72, %73 : vector<256x1xi1>, vector<256x1xf32>
    %75 = arith.truncf %74 : vector<256x1xf32> to vector<256x1xbf16>
    %76 = arith.mulf %69, %57 : vector<256x1xbf16>
    %77 = arith.mulf %69, %63 : vector<256x1xbf16>
    %78 = arith.mulf %75, %57 : vector<256x1xbf16>
    %79 = arith.mulf %75, %63 : vector<256x1xbf16>
    %c17_i32 = arith.constant 17 : i32
    %80 = tpu.dynamic_rotate %18 by %c17_i32 dim 0 : vector<256x128xbf16>, i32 -> vector<256x128xbf16>
    %81 = vector.broadcast %76 : vector<256x1xbf16> to vector<256x128xbf16>
    %82 = arith.mulf %80, %81 : vector<256x128xbf16>
    %c16_i32_26 = arith.constant 16 : i32
    %83 = tpu.dynamic_rotate %18 by %c16_i32_26 dim 0 : vector<256x128xbf16>, i32 -> vector<256x128xbf16>
    %84 = vector.broadcast %69 : vector<256x1xbf16> to vector<256x128xbf16>
    %85 = arith.mulf %83, %84 : vector<256x128xbf16>
    %c15_i32 = arith.constant 15 : i32
    %86 = tpu.dynamic_rotate %18 by %c15_i32 dim 0 : vector<256x128xbf16>, i32 -> vector<256x128xbf16>
    %87 = vector.broadcast %77 : vector<256x1xbf16> to vector<256x128xbf16>
    %88 = arith.mulf %86, %87 : vector<256x128xbf16>
    %89 = tpu.concatenate %82, %85, %88 in 1 : vector<256x128xbf16>, vector<256x128xbf16>, vector<256x128xbf16> -> vector<256x384xbf16>
    %c0_27 = arith.constant 0 : index
    %c0_28 = arith.constant 0 : index
    %c0_29 = arith.constant 0 : index
    %90 = vector.load %arg4[%c0_27, %c0_28, %c0_29] : memref<3x384x128xbf16, #tpu.memory_space<vmem>>, vector<1x384x128xbf16>
    %91 = vector.shape_cast %90 : vector<1x384x128xbf16> to vector<384x128xbf16>
    %cst_30 = arith.constant dense<0.000000e+00> : vector<256x128xf32>
    %92 = tpu.matmul %89, %91, %cst_30 {dimension_numbers = #tpu.dot_dimension_numbers<[1], [0], [0], [1], [0, 0, 1, 1], [], []>} : vector<256x384xbf16>, vector<384x128xbf16>, vector<256x128xf32> -> vector<256x128xf32>
    %c1_i32_31 = arith.constant 1 : i32
    %93 = tpu.dynamic_rotate %18 by %c1_i32_31 dim 0 : vector<256x128xbf16>, i32 -> vector<256x128xbf16>
    %94 = vector.broadcast %57 : vector<256x1xbf16> to vector<256x128xbf16>
    %95 = arith.mulf %93, %94 : vector<256x128xbf16>
    %c255_i32 = arith.constant 255 : i32
    %96 = tpu.dynamic_rotate %18 by %c255_i32 dim 0 : vector<256x128xbf16>, i32 -> vector<256x128xbf16>
    %97 = vector.broadcast %63 : vector<256x1xbf16> to vector<256x128xbf16>
    %98 = arith.mulf %96, %97 : vector<256x128xbf16>
    %99 = tpu.concatenate %95, %18, %98 in 1 : vector<256x128xbf16>, vector<256x128xbf16>, vector<256x128xbf16> -> vector<256x384xbf16>
    %c1 = arith.constant 1 : index
    %c0_32 = arith.constant 0 : index
    %c0_33 = arith.constant 0 : index
    %100 = vector.load %arg4[%c1, %c0_32, %c0_33] : memref<3x384x128xbf16, #tpu.memory_space<vmem>>, vector<1x384x128xbf16>
    %101 = vector.shape_cast %100 : vector<1x384x128xbf16> to vector<384x128xbf16>
    %cst_34 = arith.constant dense<0.000000e+00> : vector<256x128xf32>
    %102 = tpu.matmul %99, %101, %cst_34 {dimension_numbers = #tpu.dot_dimension_numbers<[1], [0], [0], [1], [0, 0, 1, 1], [], []>} : vector<256x384xbf16>, vector<384x128xbf16>, vector<256x128xf32> -> vector<256x128xf32>
    %103 = arith.addf %92, %102 : vector<256x128xf32>
    %c241_i32 = arith.constant 241 : i32
    %104 = tpu.dynamic_rotate %18 by %c241_i32 dim 0 : vector<256x128xbf16>, i32 -> vector<256x128xbf16>
    %105 = vector.broadcast %78 : vector<256x1xbf16> to vector<256x128xbf16>
    %106 = arith.mulf %104, %105 : vector<256x128xbf16>
    %c240_i32_35 = arith.constant 240 : i32
    %107 = tpu.dynamic_rotate %18 by %c240_i32_35 dim 0 : vector<256x128xbf16>, i32 -> vector<256x128xbf16>
    %108 = vector.broadcast %75 : vector<256x1xbf16> to vector<256x128xbf16>
    %109 = arith.mulf %107, %108 : vector<256x128xbf16>
    %c239_i32 = arith.constant 239 : i32
    %110 = tpu.dynamic_rotate %18 by %c239_i32 dim 0 : vector<256x128xbf16>, i32 -> vector<256x128xbf16>
    %111 = vector.broadcast %79 : vector<256x1xbf16> to vector<256x128xbf16>
    %112 = arith.mulf %110, %111 : vector<256x128xbf16>
    %113 = tpu.concatenate %106, %109, %112 in 1 : vector<256x128xbf16>, vector<256x128xbf16>, vector<256x128xbf16> -> vector<256x384xbf16>
    %c2 = arith.constant 2 : index
    %c0_36 = arith.constant 0 : index
    %c0_37 = arith.constant 0 : index
    %114 = vector.load %arg4[%c2, %c0_36, %c0_37] : memref<3x384x128xbf16, #tpu.memory_space<vmem>>, vector<1x384x128xbf16>
    %115 = vector.shape_cast %114 : vector<1x384x128xbf16> to vector<384x128xbf16>
    %cst_38 = arith.constant dense<0.000000e+00> : vector<256x128xf32>
    %116 = tpu.matmul %113, %115, %cst_38 {dimension_numbers = #tpu.dot_dimension_numbers<[1], [0], [0], [1], [0, 0, 1, 1], [], []>} : vector<256x384xbf16>, vector<384x128xbf16>, vector<256x128xf32> -> vector<256x128xf32>
    %117 = arith.addf %103, %116 : vector<256x128xf32>
    %c0_39 = arith.constant 0 : index
    %c0_40 = arith.constant 0 : index
    %118 = vector.load %arg5[%c0_39, %c0_40] : memref<1x128xf32, #tpu.memory_space<vmem>>, vector<1x128xf32>
    %119 = vector.broadcast %118 : vector<1x128xf32> to vector<256x128xf32>
    %120 = arith.addf %117, %119 : vector<256x128xf32>
    %cst_41 = arith.constant 2.000000e+01 : f32
    %121 = vector.broadcast %cst_41 : f32 to vector<256x128xf32>
    %122 = arith.minimumf %120, %121 : vector<256x128xf32>
    %123 = math.exp %122 : vector<256x128xf32>
    %cst_42 = arith.constant 2.000000e+00 : f32
    %124 = vector.broadcast %cst_42 : f32 to vector<256x128xf32>
    %125 = arith.addf %123, %124 : vector<256x128xf32>
    %126 = arith.mulf %123, %125 : vector<256x128xf32>
    %cst_43 = arith.constant 2.000000e+00 : f32
    %127 = vector.broadcast %cst_43 : f32 to vector<256x128xf32>
    %128 = arith.addf %126, %127 : vector<256x128xf32>
    %129 = tpu.reciprocal %128 {approx = true} : vector<256x128xf32> -> vector<256x128xf32>
    %130 = arith.mulf %126, %129 : vector<256x128xf32>
    %131 = arith.mulf %120, %130 : vector<256x128xf32>
    %c0_44 = arith.constant 0 : index
    %c0_45 = arith.constant 0 : index
    %132 = vector.load %arg1[%c0_44, %c0_45] : memref<256x128xf32, #tpu.memory_space<vmem>>, vector<256x128xf32>
    %133 = arith.addf %132, %131 : vector<256x128xf32>
    %c0_46 = arith.constant 0 : index
    %c0_47 = arith.constant 0 : index
    %134 = vector.load %arg6[%c0_46, %c0_47] : memref<256x128xf32, #tpu.memory_space<vmem>>, vector<256x128xf32>
    tpu.vector_store %arg6[%c0_46, %c0_47], %133 {strides = array<i32>} : memref<256x128xf32, #tpu.memory_space<vmem>>, vector<256x128xf32>,
    return
  }
  func.func @transform_0(%arg0: i32) -> (i32, i32) {
    %c0_i32 = arith.constant 0 : i32
    %c0_i32_0 = arith.constant 0 : i32
    return %arg0, %c0_i32 : i32, i32
  }
  func.func @transform_1(%arg0: i32) -> (i32, i32) {
    %c0_i32 = arith.constant 0 : i32
    %c0_i32_0 = arith.constant 0 : i32
    %c0_i32_1 = arith.constant 0 : i32
    return %c0_i32, %c0_i32_0 : i32, i32
  }
  func.func @transform_2(%arg0: i32) -> (i32, i32) {
    %c0_i32 = arith.constant 0 : i32
    %c0_i32_0 = arith.constant 0 : i32
    %c0_i32_1 = arith.constant 0 : i32
    return %c0_i32, %c0_i32_0 : i32, i32
  }
  func.func @transform_3(%arg0: i32) -> (i32, i32, i32) {
    %c0_i32 = arith.constant 0 : i32
    %c0_i32_0 = arith.constant 0 : i32
    %c0_i32_1 = arith.constant 0 : i32
    %c0_i32_2 = arith.constant 0 : i32
    return %c0_i32, %c0_i32_0, %c0_i32_1 : i32, i32, i32
  }
  func.func @transform_4(%arg0: i32) -> (i32, i32) {
    %c0_i32 = arith.constant 0 : i32
    %c0_i32_0 = arith.constant 0 : i32
    %c0_i32_1 = arith.constant 0 : i32
    return %c0_i32, %c0_i32_0 : i32, i32
  }
  func.func @transform_5(%arg0: i32) -> (i32, i32) {
    %c0_i32 = arith.constant 0 : i32
    %c0_i32_0 = arith.constant 0 : i32
    return %arg0, %c0_i32 : i32, i32
  }
}

module attributes {stable_mosaic.version = 11 : i64} {
  func.func @resblock_kernel(%arg0: i32, %arg1: memref<256x128xf32, #tpu.memory_space<vmem>>, %arg2: memref<128x128xbf16, #tpu.memory_space<vmem>>, %arg3: memref<1x128xf32, #tpu.memory_space<vmem>>, %arg4: memref<3x384x128xbf16, #tpu.memory_space<vmem>>, %arg5: memref<1x128xf32, #tpu.memory_space<vmem>>, %arg6: memref<256x128xf32, #tpu.memory_space<vmem>>) attributes {dimension_semantics = [#tpu.dimension_semantics<parallel>], iteration_bounds = array<i64: 2>, scalar_prefetch = 0 : i64, scratch_operands = 0 : i64, tpu.core_type = #tpu.core_type<tc>, window_params = [{transform_indices = @transform_0, window_bounds = array<i64: 256, 128>}, {pipeline_mode = #tpu.pipeline_mode<synchronous>, transform_indices = @transform_1, window_bounds = array<i64: 128, 128>}, {pipeline_mode = #tpu.pipeline_mode<synchronous>, transform_indices = @transform_2, window_bounds = array<i64: 1, 128>}, {pipeline_mode = #tpu.pipeline_mode<synchronous>, transform_indices = @transform_3, window_bounds = array<i64: 3, 384, 128>}, {pipeline_mode = #tpu.pipeline_mode<synchronous>, transform_indices = @transform_4, window_bounds = array<i64: 1, 128>}, {transform_indices = @transform_5, window_bounds = array<i64: 256, 128>}]} {
    %c0 = arith.constant 0 : index
    %c0_0 = arith.constant 0 : index
    %0 = vector.load %arg1[%c0, %c0_0] : memref<256x128xf32, #tpu.memory_space<vmem>>, vector<256x128xf32>
    %1 = arith.truncf %0 : vector<256x128xf32> to vector<256x128xbf16>
    %c0_1 = arith.constant 0 : index
    %c0_2 = arith.constant 0 : index
    %2 = vector.load %arg2[%c0_1, %c0_2] : memref<128x128xbf16, #tpu.memory_space<vmem>>, vector<128x128xbf16>
    %cst = arith.constant dense<0.000000e+00> : vector<256x128xf32>
    %3 = tpu.matmul %1, %2, %cst {dimension_numbers = #tpu.dot_dimension_numbers<[1], [0], [0], [1], [0, 0, 1, 1], [], []>} : vector<256x128xbf16>, vector<128x128xbf16>, vector<256x128xf32> -> vector<256x128xf32>
    %c0_3 = arith.constant 0 : index
    %c0_4 = arith.constant 0 : index
    %4 = vector.load %arg3[%c0_3, %c0_4] : memref<1x128xf32, #tpu.memory_space<vmem>>, vector<1x128xf32>
    %5 = vector.broadcast %4 : vector<1x128xf32> to vector<256x128xf32>
    %6 = arith.addf %3, %5 : vector<256x128xf32>
    %cst_5 = arith.constant 2.000000e+01 : f32
    %7 = vector.broadcast %cst_5 : f32 to vector<256x128xf32>
    %8 = arith.minimumf %6, %7 : vector<256x128xf32>
    %9 = math.exp %8 : vector<256x128xf32>
    %cst_6 = arith.constant 2.000000e+00 : f32
    %10 = vector.broadcast %cst_6 : f32 to vector<256x128xf32>
    %11 = arith.addf %9, %10 : vector<256x128xf32>
    %12 = arith.mulf %9, %11 : vector<256x128xf32>
    %cst_7 = arith.constant 2.000000e+00 : f32
    %13 = vector.broadcast %cst_7 : f32 to vector<256x128xf32>
    %14 = arith.addf %12, %13 : vector<256x128xf32>
    %15 = tpu.reciprocal %14 {approx = true} : vector<256x128xf32> -> vector<256x128xf32>
    %16 = arith.mulf %12, %15 : vector<256x128xf32>
    %17 = arith.mulf %6, %16 : vector<256x128xf32>
    %18 = tpu.iota {dimensions = array<i32: 0>} : vector<256x1xi32>
    %c16_i32 = arith.constant 16 : i32
    %c0_i32 = arith.constant 0 : i32
    %19 = arith.cmpi eq, %c16_i32, %c0_i32 : i32
    %c1_i32 = arith.constant 1 : i32
    %20 = arith.select %19, %c1_i32, %c16_i32 : i32
    %21 = vector.broadcast %20 : i32 to vector<256x1xi32>
    %22 = arith.remsi %18, %21 : vector<256x1xi32>
    %c0_i32_8 = arith.constant 0 : i32
    %23 = vector.broadcast %c0_i32_8 : i32 to vector<256x1xi32>
    %24 = arith.cmpi ne, %22, %23 : vector<256x1xi32>
    %c0_i32_9 = arith.constant 0 : i32
    %25 = vector.broadcast %c0_i32_9 : i32 to vector<256x1xi32>
    %26 = arith.cmpi slt, %22, %25 : vector<256x1xi32>
    %c0_i32_10 = arith.constant 0 : i32
    %27 = arith.cmpi slt, %20, %c0_i32_10 : i32
    %28 = vector.broadcast %27 : i1 to vector<256x1xi1>
    %29 = vector.broadcast %28 : vector<256x1xi1> to vector<256x1xi1>
    %30 = arith.xori %26, %29 : vector<256x1xi1>
    %31 = arith.andi %30, %24 : vector<256x1xi1>
    %32 = vector.broadcast %20 : i32 to vector<256x1xi32>
    %33 = arith.addi %22, %32 : vector<256x1xi32>
    %34 = arith.select %31, %33, %22 : vector<256x1xi1>, vector<256x1xi32>
    %c256_i32 = arith.constant 256 : i32
    %c0_i32_11 = arith.constant 0 : i32
    %35 = arith.cmpi eq, %c256_i32, %c0_i32_11 : i32
    %c1_i32_12 = arith.constant 1 : i32
    %36 = arith.select %35, %c1_i32_12, %c256_i32 : i32
    %37 = vector.broadcast %36 : i32 to vector<256x1xi32>
    %38 = arith.remsi %18, %37 : vector<256x1xi32>
    %c0_i32_13 = arith.constant 0 : i32
    %39 = vector.broadcast %c0_i32_13 : i32 to vector<256x1xi32>
    %40 = arith.cmpi ne, %38, %39 : vector<256x1xi32>
    %c0_i32_14 = arith.constant 0 : i32
    %41 = vector.broadcast %c0_i32_14 : i32 to vector<256x1xi32>
    %42 = arith.cmpi slt, %38, %41 : vector<256x1xi32>
    %c0_i32_15 = arith.constant 0 : i32
    %43 = arith.cmpi slt, %36, %c0_i32_15 : i32
    %44 = vector.broadcast %43 : i1 to vector<256x1xi1>
    %45 = vector.broadcast %44 : vector<256x1xi1> to vector<256x1xi1>
    %46 = arith.xori %42, %45 : vector<256x1xi1>
    %47 = arith.andi %46, %40 : vector<256x1xi1>
    %48 = vector.broadcast %36 : i32 to vector<256x1xi32>
    %49 = arith.addi %38, %48 : vector<256x1xi32>
    %50 = arith.select %47, %49, %38 : vector<256x1xi1>, vector<256x1xi32>
    %c1_i32_16 = arith.constant 1 : i32
    %51 = vector.broadcast %c1_i32_16 : i32 to vector<256x1xi32>
    %52 = arith.cmpi sge, %34, %51 : vector<256x1xi32>
    %cst_17 = arith.constant 1.000000e+00 : f32
    %cst_18 = arith.constant 0.000000e+00 : f32
    %53 = vector.broadcast %cst_17 : f32 to vector<256x1xf32>
    %54 = vector.broadcast %cst_18 : f32 to vector<256x1xf32>
    %55 = arith.select %52, %53, %54 : vector<256x1xi1>, vector<256x1xf32>
    %c14_i32 = arith.constant 14 : i32
    %56 = vector.broadcast %c14_i32 : i32 to vector<256x1xi32>
    %57 = arith.cmpi sle, %34, %56 : vector<256x1xi32>
    %cst_19 = arith.constant 1.000000e+00 : f32
    %cst_20 = arith.constant 0.000000e+00 : f32
    %58 = vector.broadcast %cst_19 : f32 to vector<256x1xf32>
    %59 = vector.broadcast %cst_20 : f32 to vector<256x1xf32>
    %60 = arith.select %57, %58, %59 : vector<256x1xi1>, vector<256x1xf32>
    %c16_i32_21 = arith.constant 16 : i32
    %61 = vector.broadcast %c16_i32_21 : i32 to vector<256x1xi32>
    %62 = arith.cmpi sge, %50, %61 : vector<256x1xi32>
    %cst_22 = arith.constant 1.000000e+00 : f32
    %cst_23 = arith.constant 0.000000e+00 : f32
    %63 = vector.broadcast %cst_22 : f32 to vector<256x1xf32>
    %64 = vector.broadcast %cst_23 : f32 to vector<256x1xf32>
    %65 = arith.select %62, %63, %64 : vector<256x1xi1>, vector<256x1xf32>
    %c240_i32 = arith.constant 240 : i32
    %66 = vector.broadcast %c240_i32 : i32 to vector<256x1xi32>
    %67 = arith.cmpi slt, %50, %66 : vector<256x1xi32>
    %cst_24 = arith.constant 1.000000e+00 : f32
    %cst_25 = arith.constant 0.000000e+00 : f32
    %68 = vector.broadcast %cst_24 : f32 to vector<256x1xf32>
    %69 = vector.broadcast %cst_25 : f32 to vector<256x1xf32>
    %70 = arith.select %67, %68, %69 : vector<256x1xi1>, vector<256x1xf32>
    %71 = arith.mulf %65, %55 : vector<256x1xf32>
    %72 = arith.mulf %65, %60 : vector<256x1xf32>
    %73 = arith.mulf %70, %55 : vector<256x1xf32>
    %74 = arith.mulf %70, %60 : vector<256x1xf32>
    %c17_i32 = arith.constant 17 : i32
    %75 = tpu.dynamic_rotate %17 by %c17_i32 dim 0 : vector<256x128xf32>, i32 -> vector<256x128xf32>
    %76 = vector.broadcast %71 : vector<256x1xf32> to vector<256x128xf32>
    %77 = arith.mulf %75, %76 : vector<256x128xf32>
    %c16_i32_26 = arith.constant 16 : i32
    %78 = tpu.dynamic_rotate %17 by %c16_i32_26 dim 0 : vector<256x128xf32>, i32 -> vector<256x128xf32>
    %79 = vector.broadcast %65 : vector<256x1xf32> to vector<256x128xf32>
    %80 = arith.mulf %78, %79 : vector<256x128xf32>
    %c15_i32 = arith.constant 15 : i32
    %81 = tpu.dynamic_rotate %17 by %c15_i32 dim 0 : vector<256x128xf32>, i32 -> vector<256x128xf32>
    %82 = vector.broadcast %72 : vector<256x1xf32> to vector<256x128xf32>
    %83 = arith.mulf %81, %82 : vector<256x128xf32>
    %84 = tpu.concatenate %77, %80, %83 in 1 : vector<256x128xf32>, vector<256x128xf32>, vector<256x128xf32> -> vector<256x384xf32>
    %85 = arith.truncf %84 : vector<256x384xf32> to vector<256x384xbf16>
    %c0_27 = arith.constant 0 : index
    %c0_28 = arith.constant 0 : index
    %c0_29 = arith.constant 0 : index
    %86 = vector.load %arg4[%c0_27, %c0_28, %c0_29] : memref<3x384x128xbf16, #tpu.memory_space<vmem>>, vector<1x384x128xbf16>
    %87 = vector.shape_cast %86 : vector<1x384x128xbf16> to vector<384x128xbf16>
    %cst_30 = arith.constant dense<0.000000e+00> : vector<256x128xf32>
    %88 = tpu.matmul %85, %87, %cst_30 {dimension_numbers = #tpu.dot_dimension_numbers<[1], [0], [0], [1], [0, 0, 1, 1], [], []>} : vector<256x384xbf16>, vector<384x128xbf16>, vector<256x128xf32> -> vector<256x128xf32>
    %c1_i32_31 = arith.constant 1 : i32
    %89 = tpu.dynamic_rotate %17 by %c1_i32_31 dim 0 : vector<256x128xf32>, i32 -> vector<256x128xf32>
    %90 = vector.broadcast %55 : vector<256x1xf32> to vector<256x128xf32>
    %91 = arith.mulf %89, %90 : vector<256x128xf32>
    %c255_i32 = arith.constant 255 : i32
    %92 = tpu.dynamic_rotate %17 by %c255_i32 dim 0 : vector<256x128xf32>, i32 -> vector<256x128xf32>
    %93 = vector.broadcast %60 : vector<256x1xf32> to vector<256x128xf32>
    %94 = arith.mulf %92, %93 : vector<256x128xf32>
    %95 = tpu.concatenate %91, %17, %94 in 1 : vector<256x128xf32>, vector<256x128xf32>, vector<256x128xf32> -> vector<256x384xf32>
    %96 = arith.truncf %95 : vector<256x384xf32> to vector<256x384xbf16>
    %c1 = arith.constant 1 : index
    %c0_32 = arith.constant 0 : index
    %c0_33 = arith.constant 0 : index
    %97 = vector.load %arg4[%c1, %c0_32, %c0_33] : memref<3x384x128xbf16, #tpu.memory_space<vmem>>, vector<1x384x128xbf16>
    %98 = vector.shape_cast %97 : vector<1x384x128xbf16> to vector<384x128xbf16>
    %cst_34 = arith.constant dense<0.000000e+00> : vector<256x128xf32>
    %99 = tpu.matmul %96, %98, %cst_34 {dimension_numbers = #tpu.dot_dimension_numbers<[1], [0], [0], [1], [0, 0, 1, 1], [], []>} : vector<256x384xbf16>, vector<384x128xbf16>, vector<256x128xf32> -> vector<256x128xf32>
    %100 = arith.addf %88, %99 : vector<256x128xf32>
    %c241_i32 = arith.constant 241 : i32
    %101 = tpu.dynamic_rotate %17 by %c241_i32 dim 0 : vector<256x128xf32>, i32 -> vector<256x128xf32>
    %102 = vector.broadcast %73 : vector<256x1xf32> to vector<256x128xf32>
    %103 = arith.mulf %101, %102 : vector<256x128xf32>
    %c240_i32_35 = arith.constant 240 : i32
    %104 = tpu.dynamic_rotate %17 by %c240_i32_35 dim 0 : vector<256x128xf32>, i32 -> vector<256x128xf32>
    %105 = vector.broadcast %70 : vector<256x1xf32> to vector<256x128xf32>
    %106 = arith.mulf %104, %105 : vector<256x128xf32>
    %c239_i32 = arith.constant 239 : i32
    %107 = tpu.dynamic_rotate %17 by %c239_i32 dim 0 : vector<256x128xf32>, i32 -> vector<256x128xf32>
    %108 = vector.broadcast %74 : vector<256x1xf32> to vector<256x128xf32>
    %109 = arith.mulf %107, %108 : vector<256x128xf32>
    %110 = tpu.concatenate %103, %106, %109 in 1 : vector<256x128xf32>, vector<256x128xf32>, vector<256x128xf32> -> vector<256x384xf32>
    %111 = arith.truncf %110 : vector<256x384xf32> to vector<256x384xbf16>
    %c2 = arith.constant 2 : index
    %c0_36 = arith.constant 0 : index
    %c0_37 = arith.constant 0 : index
    %112 = vector.load %arg4[%c2, %c0_36, %c0_37] : memref<3x384x128xbf16, #tpu.memory_space<vmem>>, vector<1x384x128xbf16>
    %113 = vector.shape_cast %112 : vector<1x384x128xbf16> to vector<384x128xbf16>
    %cst_38 = arith.constant dense<0.000000e+00> : vector<256x128xf32>
    %114 = tpu.matmul %111, %113, %cst_38 {dimension_numbers = #tpu.dot_dimension_numbers<[1], [0], [0], [1], [0, 0, 1, 1], [], []>} : vector<256x384xbf16>, vector<384x128xbf16>, vector<256x128xf32> -> vector<256x128xf32>
    %115 = arith.addf %100, %114 : vector<256x128xf32>
    %c0_39 = arith.constant 0 : index
    %c0_40 = arith.constant 0 : index
    %116 = vector.load %arg5[%c0_39, %c0_40] : memref<1x128xf32, #tpu.memory_space<vmem>>, vector<1x128xf32>
    %117 = vector.broadcast %116 : vector<1x128xf32> to vector<256x128xf32>
    %118 = arith.addf %115, %117 : vector<256x128xf32>
    %cst_41 = arith.constant 2.000000e+01 : f32
    %119 = vector.broadcast %cst_41 : f32 to vector<256x128xf32>
    %120 = arith.minimumf %118, %119 : vector<256x128xf32>
    %121 = math.exp %120 : vector<256x128xf32>
    %cst_42 = arith.constant 2.000000e+00 : f32
    %122 = vector.broadcast %cst_42 : f32 to vector<256x128xf32>
    %123 = arith.addf %121, %122 : vector<256x128xf32>
    %124 = arith.mulf %121, %123 : vector<256x128xf32>
    %cst_43 = arith.constant 2.000000e+00 : f32
    %125 = vector.broadcast %cst_43 : f32 to vector<256x128xf32>
    %126 = arith.addf %124, %125 : vector<256x128xf32>
    %127 = tpu.reciprocal %126 {approx = true} : vector<256x128xf32> -> vector<256x128xf32>
    %128 = arith.mulf %124, %127 : vector<256x128xf32>
    %129 = arith.mulf %118, %128 : vector<256x128xf32>
    %c0_44 = arith.constant 0 : index
    %c0_45 = arith.constant 0 : index
    %130 = vector.load %arg1[%c0_44, %c0_45] : memref<256x128xf32, #tpu.memory_space<vmem>>, vector<256x128xf32>
    %131 = arith.addf %130, %129 : vector<256x128xf32>
    %c0_46 = arith.constant 0 : index
    %c0_47 = arith.constant 0 : index
    %132 = vector.load %arg6[%c0_46, %c0_47] : memref<256x128xf32, #tpu.memory_space<vmem>>, vector<256x128xf32>
    tpu.vector_store %arg6[%c0_46, %c0_47], %131 {strides = array<i32>} : memref<256x128xf32, #tpu.memory_space<vmem>>, vector<256x128xf32>,
    return
  }
  func.func @transform_0(%arg0: i32) -> (i32, i32) {
    %c0_i32 = arith.constant 0 : i32
    %c0_i32_0 = arith.constant 0 : i32
    return %arg0, %c0_i32 : i32, i32
  }
  func.func @transform_1(%arg0: i32) -> (i32, i32) {
    %c0_i32 = arith.constant 0 : i32
    %c0_i32_0 = arith.constant 0 : i32
    %c0_i32_1 = arith.constant 0 : i32
    return %c0_i32, %c0_i32_0 : i32, i32
  }
  func.func @transform_2(%arg0: i32) -> (i32, i32) {
    %c0_i32 = arith.constant 0 : i32
    %c0_i32_0 = arith.constant 0 : i32
    %c0_i32_1 = arith.constant 0 : i32
    return %c0_i32, %c0_i32_0 : i32, i32
  }
  func.func @transform_3(%arg0: i32) -> (i32, i32, i32) {
    %c0_i32 = arith.constant 0 : i32
    %c0_i32_0 = arith.constant 0 : i32
    %c0_i32_1 = arith.constant 0 : i32
    %c0_i32_2 = arith.constant 0 : i32
    return %c0_i32, %c0_i32_0, %c0_i32_1 : i32, i32, i32
  }
  func.func @transform_4(%arg0: i32) -> (i32, i32) {
    %c0_i32 = arith.constant 0 : i32
    %c0_i32_0 = arith.constant 0 : i32
    %c0_i32_1 = arith.constant 0 : i32
    return %c0_i32, %c0_i32_0 : i32, i32
  }
  func.func @transform_5(%arg0: i32) -> (i32, i32) {
    %c0_i32 = arith.constant 0 : i32
    %c0_i32_0 = arith.constant 0 : i32
    return %arg0, %c0_i32 : i32, i32
  }
}

</mosaic_0001>

<bundles_post_ra>
// kernel: tpu_custom_call.1
= control target key start
LH: loop header
LB: loop body
LE: loop exit
PB: predicated region body
PF: predicated region fallthrough
CT: control target
= control target key end

     0   :  { %10 = vsyncpa [#allocation3], 0  ;;  %s8767_s0 = inlined_call_operand.hbm [shape: f32[512,128], index: 0, kind: input, shape index: {}]   ;;  %s8768_s1 = inlined_call_operand.hbm [shape: bf16[128,128], index: 1, kind: input, shape index: {}]   ;;  %s8769_s2 = inlined_call_operand.vmem [shape: f32[1,128], index: 2, kind: input, shape index: {}]   ;;  %s8770_s3 = inlined_call_operand.hbm [shape: bf16[3,384,128], index: 3, kind: input, shape index: {}]   ;;  %s8771_s4 = inlined_call_operand.vmem [shape: f32[1,128], index: 4, kind: input, shape index: {}]   ;;  %s8772_s5 = inlined_call_operand.hbm [shape: f32[512,128], index: 5, kind: output, shape index: {}]  }
   0x1   :  { %12 = vsyncpa [#allocation3 + $0x1], 0 }
   0x2   :  { %13 = vsyncpa [#allocation6], 0 }
   0x3   :  { %14 = vsyncpa [#allocation4], 0 }
   0x4   :  { %16 = vsyncpa [#allocation4 + $0x1], 0  ;;  %s5992_s18 = smov 0   ;;  %s5994_s19 = smov 0  }
   0x5   :  { %s5996_s20 = smov 0   ;;  %s5998_s21 = smov 0  }
   0x6 LB: > { %s6013_s22 = sadd.s32 4294967295, %s5949_s21   ;;  %s4631_s23 = sadd.s32 4294967294, %s5949_s21   ;;  %s5949_s21 = sphi %s5998_s21, %s9472_s21   ;;  %s5945_s20 = sphi %s5996_s20, %s9471_s20   ;;  %s5941_s19 = sphi %s5994_s19, %s9470_s19   ;;  %s5937_s18 = sphi %s5992_s18, %s9469_s18  }
   0x7   : > { %p42_p0 = scmp.ne.s32.totalorder %s5941_s19, %s5937_s18  ;;  %p8773_p1 = scmp.eq.s32.totalorder %s6013_s22, 0 }
   0x8   : > { %p156_p3 = scmp.eq.s32.totalorder %s4631_s23, 1  ;;  %p4632_p5 = scmp.ge.s32.totalorder %s5949_s21, 1 }
   0x9   : > { %p6022_p4 = por %p8773_p1, %p42_p0  ;;  %p163_p7 = scmp.lt.s32.totalorder %s5949_s21, 3 }
   0xa   : > { %p6027_p6 = por %p156_p3, %p42_p0  ;;  %s5951_s27 = smov [#allocation5]  }
   0xb   : > { %s8974_s24 = scalar_select %p6022_p4, 1, 0 }
   0xc   : > { %s8975_s25 = scalar_select %p6027_p6, 1, 0 }
   0xd   : > { %p6032_p8 = pnand %p4632_p5, %p163_p7  ;;  %s175_s28 = sshll.u32 %s5951_s27, 4  ;;  %s176_s28 = int_to_ptr.vmem [resolvable:$true] %s175_s28 }
   0xe   : > { %s5952_s30 = smov [#allocation7]   ;;  %s5812_s7 = scalar_lea.vmem %s176_s28, 1024 }
   0xf   : > { %s8976_s26 = scalar_select %p6032_p8, 1, 0 }
  0x10   : > { %p5369_p9 = pneg %p6032_p8  ;;  %s191_s6 = sshll.u32 %s5952_s30, 4  ;;  %s192_s6 = int_to_ptr.vmem [resolvable:$true] %s191_s6 }
  0x11   : > { %p5813_p13 = scmp.ne.s32.totalorder %s176_s28, %s5812_s7  ;;  %p5820_p5 = scmp.lt.s32.totalorder %s176_s28, %s176_s28 }
  0x12   : > { %p6041_p11 = pnand %p5369_p9, %p8773_p1  ;;  %p5821_p7 = scmp.lt.s32.totalorder %s5812_s7, %s5812_s7 }
  0x14   : > { %p5803_p12 = pneg %p6041_p11  ;;  %p5822_p10 = por %p5821_p7, %p5820_p5 }
  0x16   : > { %p5815_p0 = pnand %p5813_p13, %p5803_p12 }
  0x18   : > { %p5816_p3 = pneg %p5815_p0 }
  0x1a   : > { %p5823_p9 = pnand %p5822_p10, %p5816_p3 }
  0x1c   : > { %5826 = shalt.err (!%p5823_p9)
}
  0x1d   : > { %s5953_s8 = smov 64   ;;  %s5954_s9 = smov 4  }
  0x1e   : > { %5372 = dma.hbm_to_vmem [thread:$0]  (!%p6041_p11), %s8768_s1, 1024, %s176_s28, [#allocation6], %s5953_s8, %s5953_s8, %s5954_s9  }
  0x1f   : > { %s5838_s12 = scalar_lea.vmem %s192_s6, 9216  ;;  %p5846_p2 = scmp.lt.s32.totalorder %s192_s6, %s192_s6 }
  0x20   : > { %p5839_p1 = scmp.ne.s32.totalorder %s192_s6, %s5838_s12  ;;  %p5847_p6 = scmp.lt.s32.totalorder %s5838_s12, %s5838_s12 }
  0x22   : > { %p5841_p13 = pnand %p5839_p1, %p5803_p12  ;;  %p5848_p5 = por %p5847_p6, %p5846_p2 }
  0x24   : > { %p5842_p0 = pneg %p5841_p13 }
  0x26   : > { %p5849_p10 = pnand %p5848_p5, %p5842_p0 }
  0x28   : > { %5852 = shalt.err (!%p5849_p10)
}
  0x29   : > { %5375 = dma.hbm_to_vmem [thread:$0]  (!%p6041_p11), %s8770_s3, 9216, %s192_s6, [#allocation6], %s5953_s8, %s5953_s8, %s5954_s9  }
  0x2a   : > { %s6064_s15 = sadd.s32 1, %s5949_s21   ;;  %s29_s16 = sadd.s32 1, %s5945_s20 }
  0x2b   : > { %s26_s17 = ssub.s32 %s5949_s21, %s6064_s15  ;;  %p36_p1 = scmp.ne.s32.totalorder %s5945_s20, %s5941_s19 }
  0x2c   : > { %p27_p2 = scmp.eq.s32.totalorder %s26_s17, 0  ;;  %p37_p6 = scmp.eq.s32.totalorder %s5949_s21, 0 }
  0x2d   : > { %p8978_p12 = scmp.eq.s32.totalorder %s6013_s22, 1  ;;  %p5386_p7 = scmp.lt.s32.totalorder %s5949_s21, 2 }
  0x2e   : > { %s6080_s27 = scalar_select %p27_p2, %s5945_s20, %s29_s16  }
  0x2f   : > { %p6074_p3 = por %p8978_p12, %p36_p1  ;;  %p38_p9 = por %p37_p6, %p36_p1 }
  0x30   : > { %s208_s28 = sand.u32 1, %s5945_s20   ;;  %s4731_s30 = sshll.u32 %s5949_s21, 12 }
  0x31   : > { %s8979_s23 = scalar_select %p6074_p3, 1, 0 }
  0x32   : > { %s4636_s29 = sshll.u32 %s208_s28, 8  ;;  %s6087_s8 = scalar_lea.hbm %s8767_s0, %s4731_s30 }
  0x33   : > { %s212_s9 = scalar_lea.vmem [#allocation2], %s4636_s29  ;;  %p6091_p11 = pnand %p5386_p7, %p38_p9 }
  0x34   : > { %s219_s10 = sshll.u32 %s212_s9, 4  ;;  %s6095_s12 = scalar_lea.sflag [#allocation3], %s208_s28  ;;  %s6089_s10 = int_to_ptr.vmem [resolvable:$true] %s219_s10 }
  0x35   : > { %s5853_s13 = scalar_lea.hbm %s6087_s8, 4096  ;;  %p5855_p0 = pneg %p6091_p11 }
  0x36   : > { %p5854_p13 = scmp.ne.s32.totalorder %s6087_s8, %s5853_s13  ;;  %s5858_s17 = scalar_lea.hbm %s8767_s0, 8192 }
  0x37   : > { %p5859_p1 = scmp.lt.s32.totalorder %s6087_s8, %s8767_s0  ;;  %p5860_p2 = scmp.lt.s32.totalorder %s5858_s17, %s5853_s13 }
  0x38   : > { %p5856_p5 = pnand %p5855_p0, %p5854_p13 }
  0x39   : > { %p5861_p6 = por %p5860_p2, %p5859_p1 }
  0x3a   : > { %p5857_p10 = pneg %p5856_p5 }
  0x3c   : > { %p5862_p12 = pnand %p5861_p6, %p5857_p10 }
  0x3e   : > { %5865 = shalt.err (!%p5862_p12)
}
  0x3f   : > { %s5866_s28 = scalar_lea.vmem %s6089_s10, 4096  ;;  %s5955_s6 = smov [#allocation2]  }
  0x40   : > { %p5867_p7 = scmp.ne.s32.totalorder %s6089_s10, %s5866_s28  ;;  %s5871_s7 = sshll.u32 %s5955_s6, 4  ;;  %s5872_s7 = int_to_ptr.vmem [resolvable:$false] %s5871_s7 }
  0x41   : > { %s5873_s9 = scalar_lea.vmem %s5872_s7, 8192  ;;  %p5874_p5 = scmp.lt.s32.totalorder %s6089_s10, %s5872_s7 }
  0x42   : > { %p5869_p9 = pnand %p5867_p7, %p5855_p0  ;;  %p5875_p3 = scmp.lt.s32.totalorder %s5873_s9, %s5866_s28 }
  0x44   : > { %p5870_p13 = pneg %p5869_p9  ;;  %p5876_p4 = por %p5875_p3, %p5874_p5 }
  0x46   : > { %p5877_p8 = pnand %p5876_p4, %p5870_p13 }
  0x48   : > { %5880 = shalt.err (!%p5877_p8)
}
  0x49   : > { %s5956_s13 = smov 128   ;;  %s5957_s14 = smov 8  }
  0x4a   : > { %5379 = dma.hbm_to_vmem [thread:$0]  (!%p6091_p11), %s6087_s8, 4096, %s6089_s10, %s6095_s12, %s5956_s13, %s5956_s13, %s5957_s14  }
  0x4b   : > { %p8981_p0 = scmp.ne.s32.totalorder %s8976_s26, 0 }
  0x4d   : > { %231 = sbr.rel (%p8981_p0) target bundleno = 1039 (0x40f), region = 40 }
  0x52   : > { %s6119_s16 = sand.u32 1, %s5941_s19   ;;  %p8982_p4 = scmp.ne.s32.totalorder %s8974_s24, 0 }
  0x53   : > { %s4640_s17 = sshll.u32 %s6119_s16, 8  ;;  %s234_s29 = scalar_lea.sflag [#allocation3], %s6119_s16 }
  0x54   : > { %s6125_s30 = scalar_lea.vmem [#allocation2], %s4640_s17 }
  0x55   : > { %5924 = dma.done.wait (%p8982_p4), %s234_s29, 4096  }
  0x56   : > { %5926 = vsyncadd (%p8982_p4), %s234_s29, 4294963200  ;;  %p8983_p8 = scmp.eq.s32.totalorder %s6013_s22, 0 }
  0x58   : > { %5928 = dma.done.wait (%p8983_p8), [#allocation6], 10240   ;;  %p8984_p3 = pmov %p8983_p8 }
  0x59   : > { %v5431_v0 = vld [vmem:[#allocation5 + $0x38] sm:$0xff]   ;;  %v5432_v1 = vld [vmem:[#allocation5 + $0x30] sm:$0xff]   ;;  %v5433_v2 = vld [vmem:[#allocation5 + $0x28] sm:$0xff]   ;;  %s8413_s11 = scalar_lea.vmem [#allocation8], %s4640_s17  ;;  %s4732_s6 = sshll.u32 %s6013_s22, 12 }
  0x5a   : > { %5930 = vsyncadd (%p8984_p3), [#allocation6], 4294957056  ;;  %5165 = vmatprep.subr.bf16.mxu0 %v5431_v0  ;;  %v5434_v3 = vld [vmem:[#allocation5 + $0x20] sm:$0xff]   ;;  %v276_v5 = vld [vmem:[%s6125_s30 + $0x8] sm:$0xff]  ;;  %s4539_s7 = sshll.u32 %s8413_s11, 4  ;;  %s8719_s14 = scalar_lea.hbm %s8772_s5, %s4732_s6  ;;  %s8721_s7 = int_to_ptr.vmem [resolvable:$true] %s4539_s7 }
  0x5b   : > { %5166 = vmatpush3.bf16.msra.mxu0 %v5431_v0  ;;  %v275_v4 = vld [vmem:[%s6125_s30] sm:$0xff]  ;;  %v5435_v7 = vld [vmem:[#allocation5 + $0x18] sm:$0xff]   ;;  %v5436_v8 = vld [vmem:[#allocation5 + $0x10] sm:$0xff]   ;;  %s4526_s22 = scalar_lea.sflag [#allocation4], %s6119_s16  ;;  %s5881_s17 = scalar_lea.vmem %s8721_s7, 4096 }
  0x5c   : > { %5167 = vmatprep.subr.bf16.mxu0 %v5432_v1  ;;  %v307_v6 = vpack.c.bf16 %v276_v5, %v275_v4  ;;  %v5437_v9 = vld [vmem:[#allocation5 + $0x8] sm:$0xff]   ;;  %v5438_v10 = vld [vmem:[#allocation5] sm:$0xff]   ;;  %v277_v11 = vld [vmem:[%s6125_s30 + $0x10] sm:$0xff]  ;;  %p5882_p11 = scmp.ne.s32.totalorder %s8721_s7, %s5881_s17  ;;  %p9466_p10 = scmp.ne.s32.totalorder %s8979_s23, 0 }
  0x5d   : > { %v278_v12 = vld [vmem:[%s6125_s30 + $0x18] sm:$0xff]  ;;  %v279_v13 = vld [vmem:[%s6125_s30 + $0x20] sm:$0xff]  ;;  %v280_v14 = vld [vmem:[%s6125_s30 + $0x28] sm:$0xff]  ;;  %s5959_s29 = smov [#allocation8]  }
  0x5e   : > { %5181 = vmatprep.mubr.bf16.mxu0 %v307_v6  ;;  %v308_v15 = vpack.c.bf16 %v278_v12, %v277_v11  ;;  %v309_v16 = vpack.c.bf16 %v280_v14, %v279_v13  ;;  %v281_v17 = vld [vmem:[%s6125_s30 + $0x30] sm:$0xff]  ;;  %v282_v18 = vld [vmem:[%s6125_s30 + $0x38] sm:$0xff]  ;;  %v283_v19 = vld [vmem:[%s6125_s30 + $0x40] sm:$0xff]  ;;  %p5883_p1 = pnand %p5882_p11, %p9466_p10  ;;  %s5885_s24 = sshll.u32 %s5959_s29, 4  ;;  %s5886_s24 = int_to_ptr.vmem [resolvable:$false] %s5885_s24 }
  0x5f   : > { %5168 = vmatpush3.bf16.msra.mxu0 %v5432_v1  ;;  %v284_v20 = vld [vmem:[%s6125_s30 + $0x48] sm:$0xff]  ;;  %v310_v21 = vpack.c.bf16 %v282_v18, %v281_v17  ;;  %v285_v23 = vld [vmem:[%s6125_s30 + $0x50] sm:$0xff]  ;;  %v286_v24 = vld [vmem:[%s6125_s30 + $0x58] sm:$0xff]  ;;  %v843_v1 = vlaneseq  ;;  %s5887_s26 = scalar_lea.vmem %s5886_s24, 8192  ;;  %p5888_p6 = scmp.lt.s32.totalorder %s8721_s7, %s5886_s24 }
  0x60   : > { %5169 = vmatprep.subr.bf16.mxu0 %v5433_v2  ;;  %v311_v22 = vpack.c.bf16 %v284_v20, %v283_v19  ;;  %v287_v25 = vld [vmem:[%s6125_s30 + $0x60] sm:$0xff]  ;;  %v288_v26 = vld [vmem:[%s6125_s30 + $0x68] sm:$0xff]  ;;  %v312_v27 = vpack.c.bf16 %v286_v24, %v285_v23  ;;  %v289_v29 = vld [vmem:[%s6125_s30 + $0x70] sm:$0xff]  ;;  %p5884_p2 = pneg %p5883_p1  ;;  %p5889_p12 = scmp.lt.s32.totalorder %s5887_s26, %s5881_s17 }
  0x61   : > { %v313_v28 = vpack.c.bf16 %v288_v26, %v287_v25  ;;  %v290_v30 = vld [vmem:[%s6125_s30 + $0x78] sm:$0xff]  ;;  %v291_v31 = vld [vmem:[%s6125_s30 + $0x80] sm:$0xff]  ;;  %v292_v32 = vld [vmem:[%s6125_s30 + $0x88] sm:$0xff]  ;;  %v6167_v4 = vshrl.u32 %v843_v1, 7 }
  0x62   : > { %v314_v33 = vpack.c.bf16 %v290_v30, %v289_v29  ;;  %v315_v34 = vpack.c.bf16 %v292_v32, %v291_v31  ;;  %v293_v35 = vld [vmem:[%s6125_s30 + $0x90] sm:$0xff]  ;;  %v294_v36 = vld [vmem:[%s6125_s30 + $0x98] sm:$0xff]  ;;  %v295_v37 = vld [vmem:[%s6125_s30 + $0xa0] sm:$0xff]  ;;  %p5890_p7 = por %p5889_p12, %p5888_p6 }
  0x63   : > { %5170 = vmatpush3.bf16.msra.mxu0 %v5433_v2  ;;  %v296_v38 = vld [vmem:[%s6125_s30 + $0xa8] sm:$0xff]  ;;  %v316_v39 = vpack.c.bf16 %v294_v36, %v293_v35  ;;  %v297_v41 = vld [vmem:[%s6125_s30 + $0xb0] sm:$0xff]  ;;  %v298_v42 = vld [vmem:[%s6125_s30 + $0xb8] sm:$0xff]  ;;  %v845_v6 = vadd.s32 8, %v6167_v4  ;;  %v880_v29 = vand.u32 15, %v6167_v4 }
  0x64   : > { %5171 = vmatprep.subr.bf16.mxu0 %v5434_v3  ;;  %v317_v40 = vpack.c.bf16 %v296_v38, %v295_v37  ;;  %v299_v43 = vld [vmem:[%s6125_s30 + $0xc0] sm:$0xff]  ;;  %v300_v44 = vld [vmem:[%s6125_s30 + $0xc8] sm:$0xff]  ;;  %v318_v45 = vpack.c.bf16 %v298_v42, %v297_v41  ;;  %v301_v47 = vld [vmem:[%s6125_s30 + $0xd0] sm:$0xff]  ;;  %p5891_p9 = pnand %p5890_p7, %p5884_p2 }
  0x65   : > { %v319_v46 = vpack.c.bf16 %v300_v44, %v299_v43  ;;  %v302_v48 = vld [vmem:[%s6125_s30 + $0xd8] sm:$0xff]  ;;  %v303_v49 = vld [vmem:[%s6125_s30 + $0xe0] sm:$0xff]  ;;  %v304_v50 = vld [vmem:[%s6125_s30 + $0xe8] sm:$0xff]  ;;  %v887_v12 = vand.u32 15, %v845_v6  ;;  %vm6213_vm3 = vcmp.ge.s32.totalorder %v880_v29, 1 }
  0x66   : > { %v320_v51 = vpack.c.bf16 %v302_v48, %v301_v47  ;;  %v321_v52 = vpack.c.bf16 %v304_v50, %v303_v49  ;;  %v305_v53 = vld [vmem:[%s6125_s30 + $0xf0] sm:$0xff]  ;;  %v306_v54 = vld [vmem:[%s6125_s30 + $0xf8] sm:$0xff]  ;;  %v5441_v58 = vld [vmem:[#allocation7 + $0x168] sm:$0xff]   ;;  %v857_v48 = vadd.s32 104, %v6167_v4  ;;  %v859_v49 = vadd.s32 120, %v6167_v4 }
  0x67   : > { %5172 = vmatpush3.bf16.msra.mxu0 %v5434_v3  ;;  %v322_v55 = vpack.c.bf16 %v306_v54, %v305_v53  ;;  %v5439_v56 = vld [vmem:[#allocation7 + $0x178] sm:$0xff]   ;;  %v5440_v57 = vld [vmem:[#allocation7 + $0x170] sm:$0xff]   ;;  %v5442_v59 = vld [vmem:[#allocation7 + $0x160] sm:$0xff]   ;;  %vm6180_vm0 = vcmp.le.s32.totalorder %v887_v12, 14 }
  0x68   : > { %5173 = vmatprep.subr.bf16.mxu0 %v5435_v7  ;;  %v5443_v60 = vld [vmem:[#allocation7 + $0x158] sm:$0xff]   ;;  %v5444_v61 = vld [vmem:[#allocation7 + $0x150] sm:$0xff]   ;;  %v5445_v62 = vld [vmem:[#allocation7 + $0x148] sm:$0xff]  }
  0x69   : > { %v5446_v63 = vld [vmem:[#allocation7 + $0x140] sm:$0xff]   ;;  %v5447_v0 = vld [vmem:[#allocation7 + $0x138] sm:$0xff]   ;;  %v5449_v3 = vld [vmem:[#allocation7 + $0x130] sm:$0xff]  }
  0x6a   : > { %v5448_v2 = vld [vmem:[#allocation7 + $0xf8] sm:$0xff]   ;;  %4757 = vmatprep.subr.bf16.mxu1 %v5447_v0  ;;  %v5450_v5 = vld [vmem:[#allocation7 + $0xf0] sm:$0xff]   ;;  %v6175_v11 = vld [vmem:[%s8769_s2] ss:$0 sm:$0xff] }
  0x6b   : > { %5174 = vmatpush3.bf16.msra.mxu0 %v5435_v7  ;;  %4758 = vmatpush3.bf16.msra.mxu1 %v5448_v2  ;;  %v847_v7 = vadd.s32 24, %v6167_v4  ;;  %v5454_v17 = vld [vmem:[#allocation7 + $0xe0] sm:$0xff]   ;;  %v5455_v19 = vld [vmem:[#allocation7 + $0x78] sm:$0xff]   ;;  %v5462_v41 = vld [vmem:[#allocation7 + $0xd0] sm:$0xff]   ;;  %v971_v2 = vand.u32 15, %v857_v48 }
  0x6c   : > { %5175 = vmatprep.subr.bf16.mxu0 %v5436_v8  ;;  %4759 = vmatprep.subr.bf16.mxu1 %v5449_v3  ;;  %v5456_v25 = vld [vmem:[#allocation7 + $0x118] sm:$0xff]   ;;  %v985_v3 = vand.u32 15, %v859_v49  ;;  %v6304_v49 = vadd.s32 32, %v6167_v4 }
  0x6d   : > { %v901_v13 = vand.u32 15, %v847_v7  ;;  %vm6262_vm7 = vcmp.le.s32.totalorder %v971_v2, 14 }
  0x6e   : > { %vm6266_vm8 = vcmp.le.s32.totalorder %v985_v3, 14 }
  0x6f   : > { %5176 = vmatpush3.bf16.msra.mxu0 %v5436_v8  ;;  %4760 = vmatpush3.bf16.msra.mxu1 %v5450_v5  ;;  %v849_v8 = vadd.s32 40, %v6167_v4  ;;  %vm1711_vm1 = vcmp.le.s32.totalorder %v901_v13, 14 }
  0x70   : > { %5177 = vmatprep.subr.bf16.mxu0 %v5437_v9 }
  0x71   : > { %v915_v14 = vand.u32 15, %v849_v8 }
  0x73   : > { %5178 = vmatpush3.bf16.msra.mxu0 %v5437_v9  ;;  %v5451_v9 = vld [vmem:[#allocation7 + $0x128] sm:$0xff]   ;;  %vm1713_vm2 = vcmp.le.s32.totalorder %v915_v14, 14  ;;  %v5470_v14 = vld [vmem:[#allocation7 + $0xc0] sm:$0xff]  }
  0x74   : > { %5179 = vmatprep.subr.bf16.mxu0 %v5438_v10  ;;  %4761 = vmatprep.subr.bf16.mxu1 %v5451_v9 }
  0x77   : > { %5180 = vmatpush3.bf16.msra.mxu0 %v5438_v10  ;;  %v5452_v10 = vld [vmem:[#allocation7 + $0xe8] sm:$0xff]  }
  0x78   : > { %5213 = vmatprep.subr.bf16.mxu0 %v5439_v56  ;;  %4762 = vmatpush3.bf16.msra.mxu1 %v5452_v10 }
  0x7a   : > { %5182 = vmatmul.mubr.bf16.vlgmr.msra.gmra.mxu0 %v308_v15  ;;  %v5453_v15 = vld [vmem:[#allocation7 + $0x120] sm:$0xff]  }
  0x7b   : > { %5185 = vmatprep.mubr.bf16.mxu0 %v309_v16  ;;  %5214 = vmatpush3.bf16.msra.mxu0 %v5439_v56 }
  0x7c   : > { %5215 = vmatprep.subr.bf16.mxu0 %v5440_v57  ;;  %4763 = vmatprep.subr.bf16.mxu1 %v5453_v15 }
  0x7d   : > { %4764 = vmatpush3.bf16.msra.mxu1 %v5454_v17 }
  0x7e   : > { %4765 = vmatprep.subr.bf16.mxu1 %v5456_v25 }
  0x7f   : > { %5216 = vmatpush3.bf16.msra.mxu0 %v5440_v57  ;;  %v861_v57 = vadd.s32 136, %v6167_v4 }
  0x80   : > { %5217 = vmatprep.subr.bf16.mxu0 %v5441_v58 }
  0x81   : > { %v999_v13 = vand.u32 15, %v861_v57 }
  0x82   : > { %5186 = vmatmul.mubr.bf16.gmra.mxu0 %v310_v21 }
  0x83   : > { %5189 = vmatprep.mubr.bf16.mxu0 %v311_v22  ;;  %5218 = vmatpush3.bf16.msra.mxu0 %v5441_v58  ;;  %v851_v22 = vadd.s32 56, %v6167_v4  ;;  %v5466_v58 = vld [vmem:[#allocation7 + $0xc8] sm:$0xff]   ;;  %vm6280_vm9 = vcmp.le.s32.totalorder %v999_v13, 14 }
  0x84   : > { %5219 = vmatprep.subr.bf16.mxu0 %v5442_v59 }
  0x85   : > { %v929_v38 = vand.u32 15, %v851_v22 }
  0x87   : > { %5220 = vmatpush3.bf16.msra.mxu0 %v5442_v59  ;;  %vm6221_vm4 = vcmp.le.s32.totalorder %v929_v38, 14  ;;  %v875_v59 = vadd.s32 248, %v6167_v4 }
  0x88   : > { %5221 = vmatprep.subr.bf16.mxu0 %v5443_v60 }
  0x89   : > { %v1097_v15 = vand.u32 15, %v875_v59 }
  0x8a   : > { %5190 = vmatmul.mubr.bf16.gmra.mxu0 %v312_v27  ;;  %v853_v27 = vadd.s32 72, %v6167_v4 }
  0x8b   : > { %5193 = vmatprep.mubr.bf16.mxu0 %v313_v28  ;;  %5222 = vmatpush3.bf16.msra.mxu0 %v5443_v60  ;;  %v5458_v28 = vld [vmem:[#allocation7 + $0xd8] sm:$0xff]   ;;  %vm6284_vm10 = vcmp.le.s32.totalorder %v1097_v15, 14 }
  0x8c   : > { %5223 = vmatprep.subr.bf16.mxu0 %v5444_v61  ;;  %4766 = vmatpush3.bf16.msra.mxu1 %v5458_v28  ;;  %v943_v47 = vand.u32 15, %v853_v27 }
  0x8e   : > { %vm6231_vm5 = vcmp.le.s32.totalorder %v943_v47, 14 }
  0x8f   : > { %5224 = vmatpush3.bf16.msra.mxu0 %v5444_v61 }
  0x90   : > { %5225 = vmatprep.subr.bf16.mxu0 %v5445_v62 }
  0x92   : > { %5194 = vmatmul.mubr.bf16.gmra.mxu0 %v314_v33  ;;  %v8777_v33 = vmov 0.0  }
  0x93   : > { %5197 = vmatprep.mubr.bf16.mxu0 %v315_v34  ;;  %5226 = vmatpush3.bf16.msra.mxu0 %v5445_v62  ;;  %v6198_v34 = vsel %vm6180_vm0, 1.0, %v8777_v33  ;;  %v6201_v36 = vsel %vm1711_vm1, 1.0, %v8777_v33  ;;  %v6204_v37 = vsel %vm1713_vm2, 1.0, %v8777_v33  ;;  %v6238_v5 = vsel %vm6213_vm3, 1.0, %v8777_v33 }
  0x94   : > { %5227 = vmatprep.subr.bf16.mxu0 %v5446_v63  ;;  %8987 = vst [vmem:[#allocation12_spill] sm:$0xff] %v6198_v34  ;;  %8988 = vst [vmem:[#allocation13_spill] sm:$0xff] %v6201_v36  ;;  %v6247_v10 = vsel %vm6221_vm4, 1.0, %v8777_v33  ;;  %v6260_v22 = vsel %vm6231_vm5, 1.0, %v8777_v33  ;;  %v6301_v47 = vsel %vm6266_vm8, 1.0, %v8777_v33  ;;  %v6313_v57 = vsel %vm6280_vm9, 1.0, %v8777_v33 }
  0x95   : > { %8989 = vst [vmem:[#allocation14_spill] sm:$0xff] %v6204_v37  ;;  %8996 = vst [vmem:[#allocation15_spill] sm:$0xff] %v6238_v5  ;;  %vm2189_vm4 = vcmp.lt.s32.totalorder %v6167_v4, 7 }
  0x96   : > { %8997 = vst [vmem:[#allocation16_spill] sm:$0xff] %v6247_v10  ;;  %9000 = vst [vmem:[#allocation17_spill] sm:$0xff] %v6260_v22 }
  0x97   : > { %5228 = vmatpush3.bf16.msra.mxu0 %v5446_v63  ;;  %v5468_v63 = vld [vmem:[#allocation7 + $0x100] sm:$0xff]   ;;  %9011 = vst [vmem:[#allocation20_spill] sm:$0xff] %v6301_v47  ;;  %9012 = vst [vmem:[#allocation21_spill] sm:$0xff] %v6313_v57  ;;  %v9027_v47 = vmov 0.0  }
  0x98   : > { %4893 = vmatprep.subr.bf16.mxu0 %v5455_v19 }
  0x9a   : > { %5198 = vmatmul.mubr.bf16.gmra.mxu0 %v316_v39  ;;  %v855_v39 = vadd.s32 88, %v6167_v4 }
  0x9b   : > { %5201 = vmatprep.mubr.bf16.mxu0 %v317_v40  ;;  %v5460_v40 = vld [vmem:[#allocation7 + $0x110] sm:$0xff]  }
  0x9c   : > { %4767 = vmatprep.subr.bf16.mxu1 %v5460_v40  ;;  %v957_v56 = vand.u32 15, %v855_v39  ;;  %v846_v39 = vadd.s32 16, %v6167_v4 }
  0x9d   : > { %4768 = vmatpush3.bf16.msra.mxu1 %v5462_v41 }
  0x9e   : > { %vm6249_vm6 = vcmp.le.s32.totalorder %v957_v56, 14  ;;  %v894_v59 = vand.u32 15, %v846_v39 }
  0xa0   : > { %vm6347_vm12 = vcmp.ge.s32.totalorder %v894_v59, 1  ;;  %v6361_v59 = vadd.s32 48, %v6167_v4 }
  0xa2   : > { %5202 = vmatmul.mubr.bf16.gmra.mxu0 %v318_v45  ;;  %v5464_v45 = vld [vmem:[#allocation7 + $0x108] sm:$0xff]  }
  0xa3   : > { %5205 = vmatprep.mubr.bf16.mxu0 %v319_v46  ;;  %4769 = vmatprep.subr.bf16.mxu1 %v5464_v45 }
  0xa4   : > { %4770 = vmatpush3.bf16.msra.mxu1 %v5466_v58  ;;  %v6318_v58 = vsel %vm6284_vm10, 1.0, %v8777_v33 }
  0xa5   : > { %4771 = vmatprep.subr.bf16.mxu1 %v5468_v63  ;;  %9013 = vst [vmem:[#allocation22_spill] sm:$0xff] %v6318_v58 }
  0xa8   : > { %4772 = vmatpush3.bf16.msra.mxu1 %v5470_v14 }
  0xaa   : > { %5206 = vmatmul.mubr.bf16.gmra.mxu0 %v320_v51 }
  0xab   : > { %5209 = vmatprep.mubr.bf16.mxu0 %v321_v52 }
  0xb2   : > { %5210 = vmatmul.mubr.bf16.gmra.mxu0 %v322_v55 }
 0x13a   : > { %v5183_v16 = vpop.f32.mrf.mxu0 }
 0x13b   : > { %v6178_v18 = vadd.f32 %v5183_v16, %v6175_v11 }
 0x13c   : > { %v428_v20 = vpop.f32.mrf.mxu0 }
 0x13d   : > { %v557_v23 = vmin.f32 %v6178_v18, 20.0  ;;  %v6187_v24 = vadd.f32 %v6175_v11, %v428_v20  ;;  %v5473_v20 = vld [vmem:[#allocation7 + $0xb8] sm:$0xff]  }
 0x13e   : > { %v5184_v26 = vpop.f32.mrf.mxu0  ;;  %5261 = vmatprep.subr.bf16.mxu1 %v5473_v20  ;;  %v6335_v20 = vadd.s32 168, %v6167_v4 }
 0x13f   : > { %v591_v30 = vmul.f32 1.442695, %v557_v23  ;;  %v555_v31 = vmin.f32 %v6187_v24, 20.0  ;;  %v6193_v32 = vadd.f32 %v5184_v26, %v6175_v11  ;;  %v863_v26 = vadd.s32 152, %v6167_v4 }
 0x140   : > { %v431_v35 = vpop.f32.mrf.mxu0 }
 0x141   : > { %5511 = vpow2.f32 %v591_v30  ;;  %v587_v42 = vmul.f32 1.442695, %v555_v31  ;;  %v558_v43 = vmin.f32 %v6193_v32, 20.0  ;;  %v6209_v44 = vadd.f32 %v6175_v11, %v431_v35 }
 0x142   : > { %v5187_v46 = vpop.f32.mrf.mxu0  ;;  %v6278_v31 = vsel %vm6249_vm6, 1.0, %v8777_v33  ;;  %v1013_v48 = vand.u32 15, %v863_v26 }
 0x143   : > { %5513 = vpow2.f32 %v587_v42  ;;  %v593_v51 = vmul.f32 1.442695, %v558_v43  ;;  %v556_v52 = vmin.f32 %v6209_v44, 20.0  ;;  %v6219_v53 = vadd.f32 %v5187_v46, %v6175_v11  ;;  %9005 = vst [vmem:[#allocation18_spill] sm:$0xff] %v6278_v31 }
 0x144   : > { %v444_v54 = vpop.f32.mrf.mxu0  ;;  %v6296_v46 = vsel %vm6262_vm7, 1.0, %v8777_v33  ;;  %vm1727_vm11 = vcmp.le.s32.totalorder %v1013_v48, 14  ;;  %vm2060_vm7 = vcmp.lt.s32.totalorder %v6167_v4, 1 }
 0x145   : > { %5515 = vpow2.f32 %v593_v51  ;;  %v589_v60 = vmul.f32 1.442695, %v556_v52  ;;  %v561_v61 = vmin.f32 %v6219_v53, 20.0  ;;  %v6229_v62 = vadd.f32 %v6175_v11, %v444_v54  ;;  %9010 = vst [vmem:[#allocation19_spill] sm:$0xff] %v6296_v46 }
 0x146   : > { %v5188_v0 = vpop.f32.mrf.mxu0  ;;  %v6341_v26 = vsel %vm1727_vm11, 1.0, %v8777_v33 }
 0x147   : > { %5517 = vpow2.f32 %v589_v60  ;;  %v599_v6 = vmul.f32 1.442695, %v561_v61  ;;  %v559_v7 = vmin.f32 %v6229_v62, 20.0  ;;  %v6242_v8 = vadd.f32 %v5188_v0, %v6175_v11  ;;  %9014 = vst [vmem:[#allocation23_spill] sm:$0xff] %v6341_v26 }
 0x148   : > { %v447_v9 = vpop.f32.mrf.mxu0  ;;  %v852_v26 = vadd.s32 64, %v6167_v4 }
 0x149   : > { %5519 = vpow2.f32 %v599_v6  ;;  %v595_v16 = vmul.f32 1.442695, %v559_v7  ;;  %v562_v17 = vmin.f32 %v6242_v8, 20.0  ;;  %v6255_v19 = vadd.f32 %v6175_v11, %v447_v9 }
 0x14a   : > { %v5191_v21 = vpop.f32.mrf.mxu0  ;;  %v908_v6 = vand.u32 15, %v6304_v49 }
 0x14b   : > { %5521 = vpow2.f32 %v595_v16  ;;  %v601_v27 = vmul.f32 1.442695, %v562_v17  ;;  %v560_v28 = vmin.f32 %v6255_v19, 20.0  ;;  %v6273_v29 = vadd.f32 %v5191_v21, %v6175_v11 }
 0x14c   : > { %v460_v30 = vpop.f32.mrf.mxu0  ;;  %vm6403_vm13 = vcmp.ge.s32.totalorder %v908_v6, 1 }
 0x14d   : > { %5523 = vpow2.f32 %v601_v27  ;;  %v597_v40 = vmul.f32 1.442695, %v560_v28  ;;  %v565_v41 = vmin.f32 %v6273_v29, 20.0  ;;  %v6291_v42 = vadd.f32 %v6175_v11, %v460_v30 }
 0x14e   : > { %v5512_v43 = vpop.eup %5511  ;;  %v5192_v45 = vpop.f32.mrf.mxu0 }
 0x14f   : > { %v653_v50 = vadd.f32 2.0, %v5512_v43  ;;  %5525 = vpow2.f32 %v597_v40  ;;  %v607_v51 = vmul.f32 1.442695, %v565_v41  ;;  %v563_v52 = vmin.f32 %v6291_v42, 20.0 }
 0x150   : > { %v5514_v54 = vpop.eup %5513  ;;  %v6308_v55 = vadd.f32 %v5192_v45, %v6175_v11  ;;  %v463_v56 = vpop.f32.mrf.mxu0 }
 0x151   : > { %v6320_v60 = vmul.f32 %v5512_v43, %v653_v50  ;;  %v651_v61 = vadd.f32 2.0, %v5514_v54  ;;  %5527 = vpow2.f32 %v607_v51  ;;  %v603_v63 = vmul.f32 1.442695, %v563_v52 }
 0x152   : > { %v5516_v0 = vpop.eup %5515  ;;  %v566_v1 = vmin.f32 %v6308_v55, 20.0  ;;  %v6324_v2 = vadd.f32 %v6175_v11, %v463_v56  ;;  %v5195_v3 = vpop.f32.mrf.mxu0 }
 0x153   : > { %v717_v7 = vadd.f32 2.0, %v6320_v60  ;;  %v6328_v9 = vmul.f32 %v5514_v54, %v651_v61  ;;  %v654_v12 = vadd.f32 2.0, %v5516_v0  ;;  %5529 = vpow2.f32 %v603_v63 }
 0x154   : > { %v5518_v13 = vpop.eup %5517  ;;  %v609_v14 = vmul.f32 1.442695, %v566_v1  ;;  %v564_v15 = vmin.f32 %v6324_v2, 20.0  ;;  %v6332_v16 = vadd.f32 %v5195_v3, %v6175_v11  ;;  %v476_v17 = vpop.f32.mrf.mxu0 }
 0x155   : > { %v715_v21 = vadd.f32 2.0, %v6328_v9  ;;  %v6338_v23 = vmul.f32 %v5516_v0, %v654_v12  ;;  %v652_v25 = vadd.f32 2.0, %v5518_v13  ;;  %v6345_v35 = vadd.f32 %v6175_v11, %v476_v17 }
 0x156   : > { %v5520_v27 = vpop.eup %5519  ;;  %5531 = vpow2.f32 %v609_v14  ;;  %v605_v28 = vmul.f32 1.442695, %v564_v15  ;;  %v569_v30 = vmin.f32 %v6332_v16, 20.0  ;;  %v5196_v38 = vpop.f32.mrf.mxu0 }
 0x157   : > { %5533 = vrcp.f32 %v717_v7  ;;  %v718_v40 = vadd.f32 2.0, %v6338_v23  ;;  %v6352_v41 = vmul.f32 %v5518_v13, %v652_v25  ;;  %v657_v43 = vadd.f32 2.0, %v5520_v27 }
 0x158   : > { %v5522_v45 = vpop.eup %5521  ;;  %5535 = vpow2.f32 %v605_v28  ;;  %v615_v48 = vmul.f32 1.442695, %v569_v30  ;;  %v567_v50 = vmin.f32 %v6345_v35, 20.0  ;;  %v6356_v51 = vadd.f32 %v5196_v38, %v6175_v11  ;;  %v479_v52 = vpop.f32.mrf.mxu0 }
 0x159   : > { %5537 = vrcp.f32 %v715_v21  ;;  %v6358_v54 = vmul.f32 %v5520_v27, %v657_v43  ;;  %v655_v56 = vadd.f32 2.0, %v5522_v45  ;;  %v6365_v1 = vadd.f32 %v6175_v11, %v479_v52 }
 0x15a   : > { %v5524_v61 = vpop.eup %5523  ;;  %5539 = vpow2.f32 %v615_v48  ;;  %v611_v63 = vmul.f32 1.442695, %v567_v50  ;;  %v570_v0 = vmin.f32 %v6356_v51, 20.0  ;;  %v5199_v3 = vpop.f32.mrf.mxu0  ;;  %v716_v7 = vadd.f32 2.0, %v6352_v41 }
 0x15b   : > { %9017 = vst [vmem:[#allocation24_spill] sm:$0xff] %v6365_v1  ;;  %5541 = vrcp.f32 %v718_v40  ;;  %v6368_v12 = vmul.f32 %v5522_v45, %v655_v56  ;;  %v658_v13 = vadd.f32 2.0, %v5524_v61  ;;  %v568_v17 = vmin.f32 %v6365_v1, 20.0 }
 0x15c   : > { %v5526_v14 = vpop.eup %5525  ;;  %5543 = vpow2.f32 %v611_v63  ;;  %v617_v15 = vmul.f32 1.442695, %v570_v0  ;;  %v6372_v21 = vadd.f32 %v5199_v3, %v6175_v11  ;;  %v492_v25 = vpop.f32.mrf.mxu0  ;;  %v721_v27 = vadd.f32 2.0, %v6358_v54 }
 0x15d   : > { %v719_v28 = vadd.f32 2.0, %v6368_v12  ;;  %v6376_v30 = vmul.f32 %v5524_v61, %v658_v13  ;;  %v656_v38 = vadd.f32 2.0, %v5526_v14  ;;  %v613_v43 = vmul.f32 1.442695, %v568_v17 }
 0x15e   : > { %9018 = vst [vmem:[#allocation25_spill] sm:$0xff] %v6372_v21  ;;  %v5528_v40 = vpop.eup %5527  ;;  %5545 = vpow2.f32 %v617_v15  ;;  %v573_v45 = vmin.f32 %v6372_v21, 20.0  ;;  %v6380_v48 = vadd.f32 %v6175_v11, %v492_v25  ;;  %v5200_v50 = vpop.f32.mrf.mxu0  ;;  %v1027_v25 = vand.u32 15, %v6335_v20 }
 0x15f   : > { %5547 = vrcp.f32 %v716_v7  ;;  %v722_v52 = vadd.f32 2.0, %v6376_v30  ;;  %v6383_v56 = vmul.f32 %v5526_v14, %v656_v38  ;;  %v661_v63 = vadd.f32 2.0, %v5528_v40 }
 0x160   : > { %9019 = vst [vmem:[#allocation26_spill] sm:$0xff] %v6380_v48  ;;  %v5530_v0 = vpop.eup %5529  ;;  %5549 = vpow2.f32 %v613_v43  ;;  %v623_v61 = vmul.f32 1.442695, %v573_v45  ;;  %v571_v3 = vmin.f32 %v6380_v48, 20.0  ;;  %v6387_v13 = vadd.f32 %v5200_v50, %v6175_v11  ;;  %v495_v15 = vpop.f32.mrf.mxu0 }
 0x161   : > { %5551 = vrcp.f32 %v721_v27  ;;  %v720_v17 = vadd.f32 2.0, %v6383_v56  ;;  %v6394_v7 = vsel %vm6347_vm12, 1.0, %v8777_v33  ;;  %v6397_v38 = vadd.f32 %v6175_v11, %v495_v15 }
 0x162   : > { %9020 = vst [vmem:[#allocation27_spill] sm:$0xff] %v6387_v13  ;;  %9021 = vst [vmem:[#allocation28_spill] sm:$0xff] %v6394_v7  ;;  %5553 = vrcp.f32 %v719_v28  ;;  %v619_v14 = vmul.f32 1.442695, %v571_v3  ;;  %v6399_v43 = vpop.f32.mrf.mxu0  ;;  %v6407_v20 = vmul.f32 %v5528_v40, %v661_v63  ;;  %v659_v39 = vadd.f32 2.0, %v5530_v0 }
 0x163   : > { %9022 = vst [vmem:[#allocation29_spill] sm:$0xff] %v6397_v38  ;;  %v5532_v45 = vpop.eup %5531  ;;  %5555 = vrcp.f32 %v722_v52  ;;  %v867_v50 = vadd.s32 184, %v6167_v4  ;;  %v574_v15 = vmin.f32 %v6387_v13, 20.0  ;;  %v922_v33 = vand.u32 15, %v6361_v59 }
 0x164   : > { %v5534_v28 = vpop.eup %5533  ;;  %v662_v3 = vadd.f32 2.0, %v5532_v45  ;;  %5557 = vpow2.f32 %v623_v61  ;;  %v572_v49 = vmin.f32 %v6397_v38, 20.0  ;;  %v6413_v6 = vpop.f32.mrf.mxu0  ;;  %vm6415_vm14 = vcmp.le.s32.totalorder %v1027_v25, 14 }
 0x165   : > { %v5536_v58 = vpop.eup %5535  ;;  %5559 = vrcp.f32 %v720_v17  ;;  %v869_v40 = vadd.s32 200, %v6167_v4  ;;  %v871_v61 = vadd.s32 216, %v6167_v4  ;;  %v725_v17 = vadd.f32 2.0, %v6407_v20 }
 0x166   : > { %v5538_v63 = vpop.eup %5537  ;;  %v660_v7 = vadd.f32 2.0, %v5536_v58  ;;  %5561 = vpow2.f32 %v619_v14  ;;  %v6423_v5 = vmul.f32 %v5530_v0, %v659_v39  ;;  %v1041_v57 = vand.u32 15, %v867_v50  ;;  %v6434_v10 = vpop.f32.mrf.mxu0 }
 0x167   : > { %v5540_v59 = vpop.eup %5539  ;;  %v6428_v25 = vsel %vm6403_vm13, 1.0, %v9027_v47  ;;  %v6430_v46 = vmul.f32 %v5532_v45, %v662_v3  ;;  %v625_v14 = vmul.f32 1.442695, %v574_v15  ;;  %vm1650_vm15 = vcmp.ge.s32.totalorder %v922_v33, 1 }
 0x168   : > { %9028 = vst [vmem:[#allocation30_spill] sm:$0xff] %v6428_v25  ;;  %v5542_v13 = vpop.eup %5541  ;;  %v665_v31 = vadd.f32 2.0, %v5540_v59  ;;  %v6432_v22 = vmul.f32 %v5536_v58, %v660_v7  ;;  %v621_v38 = vmul.f32 1.442695, %v572_v49  ;;  %v6439_v0 = vsel %vm6415_vm14, 1.0, %v9027_v47 }
 0x169   : > { %v5544_v21 = vpop.eup %5543  ;;  %9029 = vst [vmem:[#allocation31_spill] sm:$0xff] %v6439_v0  ;;  %v1055_v27 = vand.u32 15, %v869_v40  ;;  %v1069_v45 = vand.u32 15, %v871_v61  ;;  %v936_v3 = vand.u32 15, %v852_v26  ;;  %5563 = vrcp.f32 %v725_v17 }
 0x16a   : > { %v6441_v39 = vmul.f32 %v5540_v59, %v665_v31  ;;  %v663_v50 = vadd.f32 2.0, %v5544_v21  ;;  %v723_v33 = vadd.f32 2.0, %v6423_v5  ;;  %vm6444_vm0 = vcmp.le.s32.totalorder %v1041_v57, 14  ;;  %v6456_v57 = vpop.f32.mrf.mxu0 }
 0x16b   : > { %v5546_v25 = vpop.eup %5545  ;;  %v6449_v7 = vsel %vm1650_vm15, 1.0, %v9027_v47  ;;  %v726_v49 = vadd.f32 2.0, %v6430_v46  ;;  %5565 = vpow2.f32 %v625_v14  ;;  %v782_v26 = vmul.f32 %v5542_v13, %v6338_v23 }
 0x16c   : > { %9032 = vst [vmem:[#allocation32_spill] sm:$0xff] %v6449_v7  ;;  %v5548_v15 = vpop.eup %5547  ;;  %v6452_v52 = vmul.f32 %v5544_v21, %v663_v50  ;;  %v666_v31 = vadd.f32 2.0, %v5546_v25  ;;  %v724_v61 = vadd.f32 2.0, %v6432_v22  ;;  %5567 = vpow2.f32 %v621_v38 }
 0x16d   : > { %v5550_v40 = vpop.eup %5549  ;;  %vm6458_vm1 = vcmp.le.s32.totalorder %v1055_v27, 14  ;;  %v729_v7 = vadd.f32 2.0, %v6441_v39  ;;  %vm6463_vm2 = vcmp.le.s32.totalorder %v1069_v45, 14  ;;  %vm6467_vm3 = vcmp.ge.s32.totalorder %v936_v3, 1 }
 0x16e   : > { %v5552_v17 = vpop.eup %5551  ;;  %v6472_v23 = vadd.s32 80, %v6167_v4  ;;  %v781_v38 = vmul.f32 %v5534_v28, %v6320_v60  ;;  %5569 = vrcp.f32 %v723_v33  ;;  %v6475_v27 = vmul.f32 %v5546_v25, %v666_v31  ;;  %v6486_v60 = vpop.f32.mrf.mxu0 }
 0x16f   : > { %v5554_v13 = vpop.eup %5553  ;;  %v6478_v50 = vadd.s32 232, %v6167_v4  ;;  %v779_v0 = vmul.f32 %v5538_v63, %v6328_v9  ;;  %5571 = vrcp.f32 %v726_v49  ;;  %v727_v3 = vadd.f32 2.0, %v6452_v52 }
 0x170   : > { %v5556_v45 = vpop.eup %5555  ;;  %v664_v48 = vadd.f32 2.0, %v5550_v40  ;;  %v6484_v1 = vmul.f32 %v782_v26, %v6193_v32  ;;  %5573 = vrcp.f32 %v724_v61  ;;  %v6491_v28 = vsel %vm6444_vm0, 1.0, %v9027_v47 }
 0x171   : > { %v5558_v37 = vpop.eup %5557  ;;  %9039 = vst [vmem:[#allocation33_spill] sm:$0xff] %v6491_v28  ;;  %v6496_v9 = vsel %vm6458_vm1, 1.0, %v9027_v47  ;;  %v783_v25 = vmul.f32 %v5554_v13, %v6368_v12  ;;  %5575 = vrcp.f32 %v729_v7  ;;  %v6502_v32 = vsel %vm6463_vm2, 1.0, %v9027_v47  ;;  %v9088_v28 = vld [vmem:[#allocation18_spill] sm:$0xff] }
 0x172   : > { %9040 = vst [vmem:[#allocation34_spill] sm:$0xff] %v6496_v9  ;;  %v5560_v63 = vpop.eup %5559  ;;  %9041 = vst [vmem:[#allocation35_spill] sm:$0xff] %v6502_v32  ;;  %v6507_v33 = vsel %vm6467_vm3, 1.0, %v9027_v47  ;;  %v6510_v49 = vmul.f32 %v781_v38, %v6178_v18  ;;  %v730_v31 = vadd.f32 2.0, %v6475_v27  ;;  %v6516_v7 = vmul.f32 %v779_v0, %v6187_v24  ;;  %v524_v38 = vpop.f32.mrf.mxu0 }
 0x173   : > { %9042 = vst [vmem:[#allocation36_spill] sm:$0xff] %v6507_v33  ;;  %v5562_v58 = vpop.eup %5561  ;;  %v785_v61 = vmul.f32 %v5552_v17, %v6358_v54  ;;  %5577 = vrcp.f32 %v727_v3  ;;  %v6519_v59 = vmul.f32 %v5550_v40, %v664_v48  ;;  %v2160_v21 = vrot.slane %v6484_v1, 1 }
 0x174   : > { %9043 = vst [vmem:[#allocation37_spill] sm:$0xff] %v6516_v7  ;;  %v780_v14 = vmul.f32 %v5548_v15, %v6352_v41  ;;  %v669_v18 = vadd.f32 2.0, %v5558_v37  ;;  %v6525_v13 = vadd.f32 %v6399_v43, %v6175_v11  ;;  %v6528_v26 = vmul.f32 %v783_v25, %v6229_v62 }
 0x175   : > { %v786_v24 = vmul.f32 %v5556_v45, %v6376_v30  ;;  %v784_v54 = vmul.f32 %v5560_v63, %v6383_v56  ;;  %v667_v0 = vadd.f32 2.0, %v5562_v58  ;;  %5579 = vrcp.f32 %v730_v31  ;;  %v5208_v63 = vpop.f32.mrf.mxu0 }
 0x176   : > { %v577_v48 = vmin.f32 %v6525_v13, 20.0  ;;  %v6535_v41 = vadd.f32 %v6175_v11, %v6413_v6  ;;  %v6539_v43 = vadd.f32 %v6434_v10, %v6175_v11  ;;  %v5564_v15 = vpop.eup %5563  ;;  %v8798_v62 = vrot.slane %v6510_v49, 1 }
 0x177   : > { %v6544_v30 = vmul.f32 %v785_v61, %v6219_v53  ;;  %v728_v56 = vadd.f32 2.0, %v6519_v59  ;;  %v6548_v45 = vmul.f32 %v780_v14, %v6209_v44  ;;  %v6550_v6 = vmul.f32 %v5558_v37, %v669_v18 }
 0x178   : > { %v5566_v17 = vpop.eup %5565  ;;  %v631_v3 = vmul.f32 1.442695, %v577_v48  ;;  %v575_v10 = vmin.f32 %v6535_v41, 20.0  ;;  %v8800_v31 = vrot.slane %v6528_v26, 1  ;;  %v6555_v12 = vmul.f32 %v786_v24, %v6242_v8 }
 0x179   : > { %9044 = vst [vmem:[#allocation38_spill] sm:$0xff] %v6548_v45  ;;  %v5568_v25 = vpop.eup %5567  ;;  %v6558_v53 = vmul.f32 %v784_v54, %v6255_v19  ;;  %v6560_v61 = vmul.f32 %v5562_v58, %v667_v0  ;;  %v6566_v37 = vsel %vm2189_vm4, %v8798_v62, %v2160_v21  ;;  %v578_v18 = vmin.f32 %v6539_v43, 20.0 }
 0x17a   : > { %9045 = vst [vmem:[#allocation39_spill] sm:$0xff] %v6566_v37  ;;  %v668_v44 = vadd.f32 2.0, %v5568_v25  ;;  %v627_v14 = vmul.f32 1.442695, %v575_v10  ;;  %v789_v8 = vmul.f32 %v5564_v15, %v6407_v20  ;;  %5581 = vrcp.f32 %v728_v56  ;;  %v527_v10 = vpop.f32.mrf.mxu0 }
 0x17b   : > { %v5570_v48 = vpop.eup %5569  ;;  %v670_v19 = vadd.f32 2.0, %v5566_v17  ;;  %v733_v58 = vadd.f32 2.0, %v6550_v6  ;;  %5583 = vpow2.f32 %v631_v3  ;;  %v6576_v0 = vadd.f32 %v6175_v11, %v6456_v57 }
 0x17c   : > { %v5572_v24 = vpop.eup %5571  ;;  %v6572_v54 = vmul.f32 %v5568_v25, %v668_v44  ;;  %v6582_v40 = vsel %vm2189_vm4, %v2160_v21, %v8800_v31  ;;  %v731_v56 = vadd.f32 2.0, %v6560_v61  ;;  %5585 = vpow2.f32 %v627_v14  ;;  %v5211_v9 = vpop.f32.mrf.mxu0 }
 0x17d   : > { %v5574_v62 = vpop.eup %5573  ;;  %9046 = vst [vmem:[#allocation40_spill] sm:$0xff] %v6582_v40  ;;  %v633_v3 = vmul.f32 1.442695, %v578_v18  ;;  %v576_v57 = vmin.f32 %v6576_v0, 20.0  ;;  %v6590_v44 = vadd.f32 %v6486_v60, %v6175_v11  ;;  %v6593_v33 = vmul.f32 %v789_v8, %v6273_v29 }
 0x17e   : > { %v5576_v25 = vpop.eup %5575  ;;  %v787_v21 = vmul.f32 %v5570_v48, %v6423_v5  ;;  %v6596_v31 = vmul.f32 %v5566_v17, %v670_v19  ;;  %v732_v20 = vadd.f32 2.0, %v6572_v54  ;;  %5587 = vrcp.f32 %v733_v58 }
 0x17f   : > { %v629_v32 = vmul.f32 1.442695, %v576_v57  ;;  %v581_v14 = vmin.f32 %v6590_v44, 20.0  ;;  %v6601_v18 = vadd.f32 %v6175_v11, %v524_v38  ;;  %v790_v60 = vmul.f32 %v5572_v24, %v6430_v46  ;;  %v540_v24 = vpop.f32.mrf.mxu0 }
 0x180   : > { %v5578_v15 = vpop.eup %5577  ;;  %v788_v29 = vmul.f32 %v5574_v62, %v6432_v22  ;;  %v793_v8 = vmul.f32 %v5576_v25, %v6441_v39  ;;  %5589 = vrcp.f32 %v731_v56  ;;  %v6608_v48 = vadd.f32 %v5208_v63, %v6175_v11 }
 0x181   : > { %5591 = vpow2.f32 %v633_v3  ;;  %v639_v5 = vmul.f32 1.442695, %v581_v14  ;;  %v579_v17 = vmin.f32 %v6601_v18, 20.0  ;;  %v6611_v58 = vmul.f32 %v787_v21, %v6291_v42 }
 0x182   : > { %v5580_v19 = vpop.eup %5579  ;;  %v791_v38 = vmul.f32 %v5578_v15, %v6452_v52  ;;  %v734_v46 = vadd.f32 2.0, %v6596_v31  ;;  %5593 = vrcp.f32 %v732_v20  ;;  %v582_v39 = vmin.f32 %v6608_v48, 20.0 }
 0x183   : > { %5595 = vpow2.f32 %v629_v32  ;;  %v635_v22 = vmul.f32 1.442695, %v579_v17  ;;  %v6618_v62 = vpack.c.bf16 %v6548_v45, %v6516_v7  ;;  %v6621_v63 = vmul.f32 %v790_v60, %v6308_v55 }
 0x184   : > { %v6624_v42 = vmul.f32 %v788_v29, %v6324_v2  ;;  %v6627_v52 = vmul.f32 %v793_v8, %v6332_v16  ;;  %5597 = vpow2.f32 %v639_v5  ;;  %v794_v32 = vmul.f32 %v5580_v19, %v6475_v27  ;;  %v5212_v5 = vpop.f32.mrf.mxu0 }
 0x185   : > { %9047 = vst [vmem:[#allocation41_spill] sm:$0xff] %v6618_v62  ;;  %5599 = vpow2.f32 %v635_v22  ;;  %v641_v20 = vmul.f32 1.442695, %v582_v39  ;;  %2687 = vmatprep.mubr.bf16.mxu1 %v6618_v62  ;;  %v6632_v15 = vadd.f32 %v6175_v11, %v527_v10  ;;  %v6636_v55 = vadd.f32 %v5211_v9, %v6175_v11 }
 0x186   : > { %9048 = vst [vmem:[#allocation42_spill] sm:$0xff] %v6624_v42  ;;  %9049 = vst [vmem:[#allocation43_spill] sm:$0xff] %v6627_v52  ;;  %5601 = vrcp.f32 %v734_v46  ;;  %v6639_v2 = vadd.f32 %v6175_v11, %v540_v24  ;;  %v6643_v27 = vmul.f32 %v791_v38, %v6345_v35  ;;  %v2158_v14 = vrot.slane %v6548_v45, 1 }
 0x187   : > { %9050 = vst [vmem:[#allocation44_spill] sm:$0xff] %v6636_v55  ;;  %v5582_v16 = vpop.eup %5581  ;;  %5603 = vpow2.f32 %v641_v20  ;;  %v580_v3 = vmin.f32 %v6632_v15, 20.0  ;;  %v585_v21 = vmin.f32 %v6636_v55, 20.0  ;;  %v6653_v8 = vmul.f32 %v794_v32, %v6356_v51 }
 0x188   : > { %v5584_v10 = vpop.eup %5583  ;;  %v583_v9 = vmin.f32 %v6639_v2, 20.0  ;;  %v9051_v22 = vrot.slane %v6510_v49, 1  ;;  %v792_v20 = vmul.f32 %v5582_v16, %v6519_v59  ;;  %v9055_v59 = vrot.slane %v6516_v7, 1 }
 0x189   : > { %v673_v35 = vadd.f32 2.0, %v5584_v10  ;;  %v5586_v17 = vpop.eup %5585  ;;  %v637_v19 = vmul.f32 1.442695, %v580_v3  ;;  %v647_v38 = vmul.f32 1.442695, %v585_v21 }
 0x18a   : > { %v643_v46 = vmul.f32 1.442695, %v583_v9  ;;  %v6659_v39 = vsel %vm2189_vm4, %v2158_v14, %v9051_v22  ;;  %v671_v51 = vadd.f32 2.0, %v5586_v17  ;;  %v6672_v9 = vadd.f32 %v5212_v5, %v6175_v11 }
 0x18b   : > { %9052 = vst [vmem:[#allocation45_spill] sm:$0xff] %v6659_v39  ;;  %v6663_v29 = vmul.f32 %v5584_v10, %v673_v35  ;;  %v5588_v32 = vpop.eup %5587  ;;  %5605 = vpow2.f32 %v637_v19  ;;  %v6667_v3 = vmul.f32 %v6659_v39, %v6201_v36  ;;  %v2383_v21 = vmul.f32 %v6659_v39, %v6198_v34  ;;  %v543_v10 = vpop.f32.mrf.mxu0 }
 0x18c   : > { %9054 = vst [vmem:[#allocation47_spill] sm:$0xff] %v6672_v9  ;;  %v6675_v24 = vmul.f32 %v5586_v17, %v671_v51  ;;  %5607 = vpow2.f32 %v647_v38  ;;  %v6681_v16 = vsel %vm2189_vm4, %v9055_v59, %v2158_v14  ;;  %v9057_v17 = vld [vmem:[#allocation24_spill] sm:$0xff]  ;;  %v6692_v59 = vmul.f32 %v5588_v32, %v6550_v6 }
 0x18d   : > { %9053 = vst [vmem:[#allocation46_spill] sm:$0xff] %v6667_v3  ;;  %v5590_v22 = vpop.eup %5589  ;;  %v737_v57 = vadd.f32 2.0, %v6663_v29  ;;  %9056 = vst [vmem:[#allocation48_spill] sm:$0xff] %v6681_v16  ;;  %5609 = vpow2.f32 %v643_v46  ;;  %v2416_v60 = vpack.c.bf16 %v2383_v21, %v6681_v16  ;;  %v6688_v51 = vmul.f32 %v792_v20, %v9057_v17  ;;  %v5457_v16 = vld [vmem:[#allocation7 + $0x38] sm:$0xff]  }
 0x18e   : > { %v5592_v35 = vpop.eup %5591  ;;  %v735_v38 = vadd.f32 2.0, %v6675_v24  ;;  %v586_v46 = vmin.f32 %v6672_v9, 20.0  ;;  %v6696_v19 = vadd.f32 %v6175_v11, %v543_v10  ;;  %v2385_v21 = vmul.f32 %v6582_v40, %v6201_v36 }
 0x18f   : > { %v5594_v56 = vpop.eup %5593  ;;  %9058 = vst [vmem:[#allocation24_spill] sm:$0xff] %v6688_v51  ;;  %5611 = vrcp.f32 %v737_v57  ;;  %v674_v25 = vadd.f32 2.0, %v5592_v35  ;;  %5229 = vmatprep.mubr.bf16.mxu0 %v2416_v60  ;;  %v795_v20 = vmul.f32 %v5590_v22, %v6560_v61  ;;  %v9060_v17 = vrot.slane %v6544_v30, 1 }
 0x190   : > { %v5596_v14 = vpop.eup %5595  ;;  %9059 = vst [vmem:[#allocation49_spill] sm:$0xff] %v6696_v19  ;;  %5613 = vrcp.f32 %v735_v38  ;;  %v9061_v6 = vrot.slane %v6558_v53, 1  ;;  %v649_v39 = vmul.f32 1.442695, %v586_v46  ;;  %v584_v36 = vmin.f32 %v6696_v19, 20.0  ;;  %v5459_v38 = vld [vmem:[#allocation7 + $0x70] sm:$0xff]  }
 0x191   : > { %v5598_v5 = vpop.eup %5597  ;;  %v6701_v57 = vmul.f32 %v5592_v35, %v674_v25  ;;  %v672_v11 = vadd.f32 2.0, %v5596_v14  ;;  %v796_v61 = vmul.f32 %v5594_v56, %v6572_v54  ;;  %v2419_v35 = vpack.c.bf16 %v2385_v21, %v6566_v37  ;;  %v9063_v19 = vld [vmem:[#allocation14_spill] sm:$0xff] }
 0x192   : > { %v6709_v60 = vsel %vm2189_vm4, %v9061_v6, %v9060_v17  ;;  %v5600_v32 = vpop.eup %5599  ;;  %v677_v10 = vadd.f32 2.0, %v5598_v5  ;;  %5615 = vpow2.f32 %v649_v39  ;;  %v645_v6 = vmul.f32 1.442695, %v584_v36  ;;  %v5461_v39 = vld [vmem:[#allocation7 + $0x30] sm:$0xff]  }
 0x193   : > { %9062 = vst [vmem:[#allocation50_spill] sm:$0xff] %v6709_v60  ;;  %v5602_v3 = vpop.eup %5601  ;;  %v738_v25 = vadd.f32 2.0, %v6701_v57  ;;  %v675_v22 = vadd.f32 2.0, %v5600_v32  ;;  %v6715_v34 = vmul.f32 %v5596_v14, %v672_v11  ;;  %5230 = vmatmul.mubr.bf16.vlgmr.msra.gmra.mxu0 %v2419_v35  ;;  %v2387_v54 = vmul.f32 %v6709_v60, %v9063_v19 }
 0x194   : > { %v5604_v40 = vpop.eup %5603  ;;  %v6717_v17 = vmul.f32 %v5598_v5, %v677_v10  ;;  %v9064_v14 = vrot.slane %v6558_v53, 1  ;;  %v9065_v5 = vrot.slane %v6528_v26, 1  ;;  %4894 = vmatpush3.bf16.msra.mxu0 %v5457_v16  ;;  %v9070_v16 = vld [vmem:[#allocation26_spill] sm:$0xff] }
 0x195   : > { %5617 = vrcp.f32 %v738_v25  ;;  %v6719_v46 = vmul.f32 %v5600_v32, %v675_v22  ;;  %v678_v62 = vadd.f32 2.0, %v5604_v40  ;;  %v736_v56 = vadd.f32 2.0, %v6715_v34  ;;  %4895 = vmatprep.subr.bf16.mxu0 %v5459_v38 }
 0x196   : > { %v741_v21 = vadd.f32 2.0, %v6717_v17  ;;  %5619 = vpow2.f32 %v645_v6  ;;  %v6731_v36 = vsel %vm2189_vm4, %v9065_v5, %v9064_v14  ;;  %v9067_v25 = vrot.slane %v6611_v58, 1  ;;  %v5463_v6 = vld [vmem:[#allocation7 + $0x68] sm:$0xff]  }
 0x197   : > { %9066 = vst [vmem:[#allocation51_spill] sm:$0xff] %v6731_v36  ;;  %v739_v32 = vadd.f32 2.0, %v6719_v46  ;;  %v6734_v11 = vmul.f32 %v5604_v40, %v678_v62  ;;  %v2422_v10 = vpack.c.bf16 %v2387_v54, %v6731_v36  ;;  %v9068_v22 = vrot.slane %v6555_v12, 1  ;;  %v9071_v40 = vld [vmem:[#allocation16_spill] sm:$0xff]  ;;  %v9072_v36 = vld [vmem:[#allocation29_spill] sm:$0xff] }
 0x198   : > { %v2170_v14 = vrot.slane %v6688_v51, 1  ;;  %v6747_v5 = vmul.f32 %v795_v20, %v9070_v16  ;;  %5621 = vrcp.f32 %v736_v56  ;;  %v5606_v54 = vpop.eup %5605  ;;  %v6752_v60 = vmul.f32 %v796_v61, %v9072_v36  ;;  %4896 = vmatpush3.bf16.msra.mxu0 %v5461_v39 }
 0x199   : > { %v6743_v35 = vsel %vm2189_vm4, %v9068_v22, %v9067_v25  ;;  %5623 = vrcp.f32 %v741_v21  ;;  %5233 = vmatprep.mubr.bf16.mxu0 %v2422_v10  ;;  %v9073_v25 = vmov %v9068_v22  ;;  %v9074_v38 = vrot.slane %v6544_v30, 1  ;;  %v5608_v61 = vpop.eup %5607  ;;  %v9079_v10 = vld [vmem:[#allocation17_spill] sm:$0xff]  ;;  %4897 = vmatprep.subr.bf16.mxu0 %v5463_v6 }
 0x19a   : > { %9069 = vst [vmem:[#allocation52_spill] sm:$0xff] %v6743_v35  ;;  %v2389_v62 = vmul.f32 %v6743_v35, %v9071_v40  ;;  %v9076_v20 = vrot.slane %v6593_v33, 1  ;;  %v9077_v56 = vrot.slane %v6624_v42, 1  ;;  %5625 = vrcp.f32 %v739_v32  ;;  %v5465_v40 = vld [vmem:[#allocation7 + $0x28] sm:$0xff]  }
 0x19b   : > { %v6760_v22 = vsel %vm2189_vm4, %v9074_v38, %v9073_v25  ;;  %v676_v21 = vadd.f32 2.0, %v5606_v54  ;;  %v5610_v25 = vpop.eup %5609  ;;  %v742_v38 = vadd.f32 2.0, %v6734_v11  ;;  %v681_v37 = vadd.f32 2.0, %v5608_v61 }
 0x19c   : > { %9075 = vst [vmem:[#allocation26_spill] sm:$0xff] %v6760_v22  ;;  %v6768_v16 = vsel %vm2189_vm4, %v9077_v56, %v9076_v20  ;;  %v2425_v36 = vpack.c.bf16 %v2389_v62, %v6760_v22  ;;  %v9080_v19 = vmov %v9077_v56  ;;  %v9081_v51 = vrot.slane %v6611_v58, 1  ;;  %v5467_v56 = vld [vmem:[#allocation7 + $0x60] sm:$0xff]   ;;  %v9086_v22 = vld [vmem:[#allocation25_spill] sm:$0xff]  ;;  %4898 = vmatpush3.bf16.msra.mxu0 %v5465_v40 }
 0x19d   : > { %9078 = vst [vmem:[#allocation29_spill] sm:$0xff] %v6768_v16  ;;  %v2391_v35 = vmul.f32 %v6768_v16, %v9079_v10  ;;  %v9083_v32 = vrot.slane %v6643_v27, 1  ;;  %v9084_v62 = vrot.slane %v6621_v63, 1  ;;  %v5612_v16 = vpop.eup %5611  ;;  %v6792_v10 = vmul.f32 %v6692_v59, %v9086_v22  ;;  %4899 = vmatprep.subr.bf16.mxu0 %v5467_v56 }
 0x19e   : > { %v6780_v20 = vsel %vm2189_vm4, %v9081_v51, %v9080_v19  ;;  %v6794_v9 = vmul.f32 %v5606_v54, %v676_v21  ;;  %v679_v55 = vadd.f32 2.0, %v5610_v25  ;;  %v798_v51 = vmul.f32 %v5602_v3, %v6596_v31  ;;  %5234 = vmatmul.mubr.bf16.gmra.mxu0 %v2425_v36  ;;  %v5614_v59 = vpop.eup %5613  ;;  %v9091_v31 = vld [vmem:[#allocation19_spill] sm:$0xff]  ;;  %v5469_v3 = vld [vmem:[#allocation7 + $0x20] sm:$0xff]  }
 0x19f   : > { %9082 = vst [vmem:[#allocation53_spill] sm:$0xff] %v6780_v20  ;;  %v6788_v39 = vsel %vm2189_vm4, %v9084_v62, %v9083_v32  ;;  %9087 = vst [vmem:[#allocation25_spill] sm:$0xff] %v6792_v10  ;;  %v2428_v19 = vpack.c.bf16 %v2391_v35, %v6780_v20  ;;  %v6798_v42 = vmul.f32 %v5608_v61, %v681_v37  ;;  %v9089_v6 = vrot.slane %v6627_v52, 1  ;;  %v9112_v20 = vld [vmem:[#allocation21_spill] sm:$0xff] }
 0x1a0   : > { %9085 = vst [vmem:[#allocation54_spill] sm:$0xff] %v6788_v39  ;;  %v2393_v32 = vmul.f32 %v6788_v39, %v9088_v28  ;;  %v740_v22 = vadd.f32 2.0, %v6794_v9  ;;  %v6810_v35 = vmul.f32 %v5610_v25, %v679_v55  ;;  %v801_v21 = vmul.f32 %v5612_v16, %v6663_v29  ;;  %v5616_v16 = vpop.eup %5615  ;;  %4900 = vmatpush3.bf16.msra.mxu0 %v5469_v3 }
 0x1a1   : > { %v6806_v62 = vsel %vm2189_vm4, %v2170_v14, %v9089_v6  ;;  %5237 = vmatprep.mubr.bf16.mxu0 %v2428_v19  ;;  %v799_v36 = vmul.f32 %v5614_v59, %v6675_v24  ;;  %5627 = vrcp.f32 %v742_v38  ;;  %v5471_v6 = vld [vmem:[#allocation7 + $0x58] sm:$0xff]   ;;  %v745_v54 = vadd.f32 2.0, %v6798_v42 }
 0x1a2   : > { %9090 = vst [vmem:[#allocation55_spill] sm:$0xff] %v6806_v62  ;;  %v2395_v37 = vmul.f32 %v6806_v62, %v9091_v31  ;;  %5629 = vrcp.f32 %v740_v22  ;;  %v743_v55 = vadd.f32 2.0, %v6810_v35  ;;  %v9092_v25 = vrot.slane %v6621_v63, 1  ;;  %v9103_v62 = vld [vmem:[#allocation27_spill] sm:$0xff]  ;;  %4901 = vmatprep.subr.bf16.mxu0 %v5471_v6 }
 0x1a3   : > { %v9093_v19 = vrot.slane %v6593_v33, 1  ;;  %v9095_v29 = vand.u32 15, %v6472_v23  ;;  %v6835_v56 = vmul.f32 %v799_v36, %v6535_v41  ;;  %v9098_v22 = vrot.slane %v6643_v27, 1  ;;  %v9126_v24 = vld [vmem:[#allocation31_spill] sm:$0xff] }
 0x1a4   : > { %5631 = vrcp.f32 %v743_v55  ;;  %v682_v23 = vadd.f32 2.0, %v5616_v16  ;;  %v9100_v61 = vrot.slane %v6747_v5, 1  ;;  %v9101_v38 = vrot.slane %v6653_v8, 1 }
 0x1a5   : > { %v6825_v40 = vsel %vm2189_vm4, %v9093_v19, %v9092_v25  ;;  %vm6829_vm5 = vcmp.ge.s32.totalorder %v9095_v29, 1  ;;  %v6842_v25 = vsel %vm2189_vm4, %v9098_v22, %v2170_v14  ;;  %v5618_v19 = vpop.eup %5617  ;;  %v6857_v14 = vmul.f32 %v801_v21, %v6525_v13 }
 0x1a6   : > { %9094 = vst [vmem:[#allocation56_spill] sm:$0xff] %v6825_v40  ;;  %v2431_v59 = vpack.c.bf16 %v2393_v32, %v6825_v40  ;;  %9099 = vst [vmem:[#allocation57_spill] sm:$0xff] %v6842_v25  ;;  %v2434_v29 = vpack.c.bf16 %v2395_v37, %v6842_v25  ;;  %v6851_v41 = vsel %vm2189_vm4, %v9101_v38, %v9100_v61  ;;  %v5472_v32 = vld [vmem:[#allocation7 + $0x18] sm:$0xff]   ;;  %v5620_v36 = vpop.eup %5619  ;;  %v9105_v55 = vrot.slane %v6792_v10, 1  ;;  %v5474_v61 = vld [vmem:[#allocation7 + $0x50] sm:$0xff]  }
 0x1a7   : > { %9102 = vst [vmem:[#allocation58_spill] sm:$0xff] %v6851_v41  ;;  %v6854_v40 = vmul.f32 %v798_v51, %v9103_v62  ;;  %v9106_v37 = vrot.slane %v6752_v60, 1  ;;  %v6868_v3 = vadd.s32 96, %v6167_v4  ;;  %5633 = vrcp.f32 %v745_v54  ;;  %v5622_v21 = vpop.eup %5621  ;;  %4902 = vmatpush3.bf16.msra.mxu0 %v5472_v32  ;;  %v5475_v25 = vld [vmem:[#allocation7 + $0x10] sm:$0xff]   ;;  %v5476_v32 = vld [vmem:[#allocation7 + $0x48] sm:$0xff]  }
 0x1a8   : > { %v6870_v38 = vmul.f32 %v5616_v16, %v682_v23  ;;  %v680_v51 = vadd.f32 2.0, %v5620_v36  ;;  %v9108_v13 = vand.u32 15, %v6478_v50  ;;  %5238 = vmatmul.mubr.bf16.gmra.mxu0 %v2431_v59  ;;  %v6885_v54 = vadd.s32 128, %v6167_v4  ;;  %v5624_v16 = vpop.eup %5623  ;;  %4903 = vmatprep.subr.bf16.mxu0 %v5474_v61 }
 0x1a9   : > { %9104 = vst [vmem:[#allocation27_spill] sm:$0xff] %v6854_v40  ;;  %v6865_v22 = vsel %vm2189_vm4, %v9106_v37, %v9105_v55  ;;  %v9111_v55 = vld [vmem:[#allocation20_spill] sm:$0xff]  ;;  %v6882_v37 = vadd.s32 112, %v6167_v4  ;;  %v800_v50 = vmul.f32 %v5622_v21, %v6715_v34  ;;  %5241 = vmatprep.mubr.bf16.mxu0 %v2434_v29  ;;  %v2176_v39 = vrot.slane %v6854_v40, 1 }
 0x1aa   : > { %9107 = vst [vmem:[#allocation59_spill] sm:$0xff] %v6865_v22  ;;  %vm6874_vm6 = vcmp.le.s32.totalorder %v9108_v13, 14  ;;  %v2397_v6 = vmul.f32 %v6851_v41, %v9111_v55  ;;  %v746_v23 = vadd.f32 2.0, %v6870_v38  ;;  %v6889_v13 = vmul.f32 %v5620_v36, %v680_v51  ;;  %v5626_v41 = vpop.eup %5625 }
 0x1ab   : > { %v2399_v59 = vmul.f32 %v6865_v22, %v9112_v20  ;;  %v802_v28 = vmul.f32 %v5618_v19, %v6701_v57  ;;  %v9113_v34 = vrot.slane %v6653_v8, 1  ;;  %v9114_v36 = vrot.slane %v6627_v52, 1  ;;  %4904 = vmatpush3.bf16.msra.mxu0 %v5475_v25  ;;  %v5479_v22 = vld [vmem:[#allocation7] sm:$0xff]  }
 0x1ac   : > { %v6906_v51 = vmul.f32 %v800_v50, %v6576_v0  ;;  %v803_v21 = vmul.f32 %v5626_v41, %v6719_v46  ;;  %5635 = vrcp.f32 %v746_v23  ;;  %v744_v57 = vadd.f32 2.0, %v6889_v13  ;;  %4905 = vmatprep.subr.bf16.mxu0 %v5476_v32  ;;  %v5478_v23 = vld [vmem:[#allocation7 + $0x40] sm:$0xff]  }
 0x1ad   : > { %v6903_v29 = vsel %vm2189_vm4, %v9114_v36, %v9113_v34  ;;  %v805_v19 = vmul.f32 %v5624_v16, %v6717_v17  ;;  %v9116_v20 = vrot.slane %v6752_v60, 1  ;;  %v9117_v55 = vrot.slane %v6747_v5, 1  ;;  %v5477_v16 = vld [vmem:[#allocation7 + $0x8] sm:$0xff]  }
 0x1ae   : > { %9115 = vst [vmem:[#allocation60_spill] sm:$0xff] %v6903_v29  ;;  %v2437_v31 = vpack.c.bf16 %v2397_v6, %v6903_v29  ;;  %v9119_v0 = vrot.slane %v6835_v56, 1  ;;  %v2178_v41 = vrot.slane %v6906_v51, 1  ;;  %v6928_v17 = vmul.f32 %v803_v21, %v6601_v18  ;;  %v5628_v36 = vpop.eup %5627 }
 0x1af   : > { %v6918_v61 = vsel %vm2189_vm4, %v9117_v55, %v9116_v20  ;;  %5637 = vrcp.f32 %v744_v57  ;;  %v6932_v50 = vmul.f32 %v802_v28, %v6539_v43  ;;  %v9121_v20 = vld [vmem:[#allocation15_spill] sm:$0xff]  ;;  %v6940_v34 = vsel %vm6829_vm5, 1.0, %v9027_v47  ;;  %v5630_v32 = vpop.eup %5629  ;;  %4906 = vmatpush3.bf16.msra.mxu0 %v5477_v16 }
 0x1b0   : > { %9118 = vst [vmem:[#allocation61_spill] sm:$0xff] %v6918_v61  ;;  %v6924_v46 = vsel %vm2189_vm4, %v2176_v39, %v9119_v0  ;;  %v2440_v6 = vpack.c.bf16 %v2399_v59, %v6918_v61  ;;  %v6935_v55 = vmul.f32 0.0, %v9121_v20  ;;  %v9122_v59 = vrot.slane %v6857_v14, 1  ;;  %5242 = vmatmul.mubr.bf16.gmra.mxu0 %v2437_v31  ;;  %v9125_v0 = vld [vmem:[#allocation23_spill] sm:$0xff]  ;;  %4907 = vmatprep.subr.bf16.mxu0 %v5478_v23 }
 0x1b1   : > { %9120 = vst [vmem:[#allocation62_spill] sm:$0xff] %v6924_v46  ;;  %v6953_v43 = vsel %vm6874_vm6, 1.0, %v9027_v47  ;;  %v2030_v21 = vrot.slane %v6510_v49, 7  ;;  %v6958_v57 = vmul.f32 %v805_v19, %v6590_v44  ;;  %v992_v18 = vand.u32 15, %v6885_v54  ;;  %v5632_v44 = vpop.eup %5631 }
 0x1b2   : > { %v6947_v25 = vsel %vm2189_vm4, %v2178_v41, %v9122_v59  ;;  %9124 = vst [vmem:[#allocation63_spill] sm:$0xff] %v6953_v43  ;;  %v2401_v59 = vmul.f32 %v6924_v46, %v9125_v0  ;;  %v2181_v62 = vrot.slane %v6928_v17, 1  ;;  %v804_v29 = vmul.f32 %v5630_v32, %v6794_v9  ;;  %5245 = vmatprep.mubr.bf16.mxu0 %v2440_v6 }
 0x1b3   : > { %9123 = vst [vmem:[#allocation15_spill] sm:$0xff] %v6947_v25  ;;  %v2403_v61 = vmul.f32 %v6947_v25, %v9126_v24  ;;  %v2180_v46 = vrot.slane %v6932_v50, 1  ;;  %v9127_v54 = vrot.slane %v6792_v10, 1  ;;  %v806_v9 = vmul.f32 %v5628_v36, %v6734_v11  ;;  %4908 = vmatpush3.bf16.msra.mxu0 %v5479_v22 }
 0x1b4   : > { %v6979_v6 = vmul.f32 %v804_v29, %v6632_v15  ;;  %v807_v16 = vmul.f32 %v5632_v44, %v6810_v35  ;;  %v9129_v32 = vrot.slane %v6548_v45, 7  ;;  %v5634_v31 = vpop.eup %5633  ;;  %v8855_v25 = vrot.slane %v6958_v57, 1  ;;  %v9140_v44 = vld [vmem:[#allocation42_spill] sm:$0xff] }
 0x1b5   : > { %v6975_v28 = vsel %vm2189_vm4, %v9127_v54, %v2176_v39  ;;  %v9130_v23 = vrot.slane %v6835_v56, 1  ;;  %vm7013_vm8 = vcmp.ge.s32.totalorder %v992_v18, 1  ;;  %v7039_v54 = vld [vmem:[#allocation7 + $0x238] sm:$0xff]  }
 0x1b6   : > { %9128 = vst [vmem:[#allocation64_spill] sm:$0xff] %v6975_v28  ;;  %v6986_v19 = vsel %vm2060_vm7, %v9129_v32, %v2030_v21  ;;  %v2443_v39 = vpack.c.bf16 %v2401_v59, %v6975_v28  ;;  %v2182_v35 = vrot.slane %v6979_v6, 1  ;;  %v7002_v29 = vmul.f32 %v807_v16, %v6639_v2  ;;  %5309 = vmatprep.subr.bf16.mxu0 %v7039_v54 }
 0x1b7   : > { %v6994_v11 = vsel %vm2189_vm4, %v9130_v23, %v2178_v41  ;;  %v6998_v15 = vmul.f32 %v6986_v19, %v9121_v20  ;;  %v7007_v59 = vsel %vm2189_vm4, %v2180_v46, %v2181_v62  ;;  %v7018_v2 = vmul.f32 %v806_v9, %v6608_v48  ;;  %v9139_v9 = vld [vmem:[#allocation33_spill] sm:$0xff] }
 0x1b8   : > { %9131 = vst [vmem:[#allocation65_spill] sm:$0xff] %v6994_v11  ;;  %v2446_v36 = vpack.c.bf16 %v2403_v61, %v6994_v11  ;;  %9133 = vst [vmem:[#allocation67_spill] sm:$0xff] %v7007_v59  ;;  %v809_v61 = vmul.f32 %v5634_v31, %v6798_v42  ;;  %v7025_v22 = vsel %vm2189_vm4, %v2182_v35, %v8855_v25  ;;  %v9137_v16 = vrot.slane %v6484_v1, 7 }
 0x1b9   : > { %9132 = vst [vmem:[#allocation66_spill] sm:$0xff] %v6998_v15  ;;  %9136 = vst [vmem:[#allocation68_spill] sm:$0xff] %v7025_v22  ;;  %v5636_v18 = vpop.eup %5635  ;;  %5246 = vmatmul.mubr.bf16.gmra.mxu0 %v2443_v39  ;;  %v2405_v42 = vmul.f32 %v7007_v59, %v9139_v9  ;;  %v2185_v11 = vrot.slane %v7002_v29, 1  ;;  %v9142_v31 = vrot.slane %v6857_v14, 1  ;;  %v9145_v15 = vld [vmem:[#allocation47_spill] sm:$0xff]  ;;  %v9147_v9 = vld [vmem:[#allocation49_spill] sm:$0xff] }
 0x1ba   : > { %v7031_v32 = vsel %vm2060_vm7, %v2030_v21, %v9137_v16  ;;  %v810_v21 = vmul.f32 %v5636_v18, %v6870_v38  ;;  %5249 = vmatprep.mubr.bf16.mxu0 %v2446_v36  ;;  %v9141_v16 = vld [vmem:[#allocation34_spill] sm:$0xff]  ;;  %v2184_v38 = vrot.slane %v7018_v2, 1  ;;  %v9144_v36 = vld [vmem:[#allocation44_spill] sm:$0xff] }
 0x1bb   : > { %9138 = vst [vmem:[#allocation69_spill] sm:$0xff] %v7031_v32  ;;  %v2407_v41 = vmul.f32 %v7025_v22, %v9141_v16  ;;  %v7053_v25 = vsel %vm2189_vm4, %v9142_v31, %v2180_v46  ;;  %v7058_v18 = vmul.f32 %v809_v61, %v9144_v36  ;;  %v7069_v46 = vsel %vm2189_vm4, %v2181_v62, %v2182_v35 }
 0x1bc   : > { %v5638_v48 = vpop.eup %5637  ;;  %9143 = vst [vmem:[#allocation42_spill] sm:$0xff] %v7053_v25  ;;  %v7061_v22 = vmul.f32 %v810_v21, %v9145_v15  ;;  %v2449_v16 = vpack.c.bf16 %v2405_v42, %v7053_v25  ;;  %9146 = vst [vmem:[#allocation44_spill] sm:$0xff] %v7069_v46  ;;  %v9151_v21 = vld [vmem:[#allocation35_spill] sm:$0xff]  ;;  %v9152_v62 = vrot.slane %v6548_v45, 7 }
 0x1bd   : > { %v808_v28 = vmul.f32 %v5638_v48, %v6889_v13  ;;  %v2452_v15 = vpack.c.bf16 %v2407_v41, %v7069_v46  ;;  %v7078_v13 = vsel %vm2189_vm4, %v2184_v38, %v2185_v11  ;;  %v8865_v36 = vrot.slane %v7058_v18, 1  ;;  %v9159_v46 = vld [vmem:[#allocation28_spill] sm:$0xff] }
 0x1be   : > { %v2059_v31 = vrot.slane %v7061_v22, 7  ;;  %9148 = vst [vmem:[#allocation47_spill] sm:$0xff] %v7078_v13  ;;  %v9149_v41 = vrot.slane %v6516_v7, 7  ;;  %v2409_v42 = vmul.f32 %v7078_v13, %v9151_v21  ;;  %v2352_v23 = vmul.f32 %v6986_v19, %v9159_v46 }
 0x1bf   : > { %v7073_v61 = vmul.f32 %v808_v28, %v9147_v9  ;;  %v9160_v13 = vrot.slane %v6528_v26, 7  ;;  %v9161_v21 = vrot.slane %v6484_v1, 7 }
 0x1c0   : > { %v7091_v9 = vsel %vm2060_vm7, %v2059_v31, %v9149_v41  ;;  %v9153_v35 = vmov %v9149_v41 }
 0x1c1   : > { %v2186_v28 = vrot.slane %v7073_v61, 1  ;;  %9150 = vst [vmem:[#allocation49_spill] sm:$0xff] %v7091_v9  ;;  %5250 = vmatmul.mubr.bf16.gmra.mxu0 %v2449_v16  ;;  %v7102_v39 = vsel %vm2060_vm7, %v9153_v35, %v9152_v62  ;;  %v2350_v59 = vmul.f32 %v7091_v9, %v9121_v20  ;;  %v7109_v16 = vpack.c.bf16 %v6484_v1, %v6510_v49 }
 0x1c2   : > { %5253 = vmatprep.mubr.bf16.mxu0 %v2452_v15  ;;  %v7120_v62 = vsel %vm7013_vm8, 1.0, %v9027_v47  ;;  %v2188_v20 = vrot.slane %v7061_v22, 1  ;;  %v9157_v35 = vrot.slane %v6958_v57, 1  ;;  %v7141_v25 = vsel %vm2060_vm7, %v9161_v21, %v9160_v13 }
 0x1c3   : > { %9154 = vst [vmem:[#allocation70_spill] sm:$0xff] %v7109_v16  ;;  %v7115_v48 = vsel %vm2189_vm4, %v2186_v28, %v8865_v36  ;;  %9156 = vst [vmem:[#allocation72_spill] sm:$0xff] %v7120_v62  ;;  %v2414_v49 = vpack.c.bf16 %v7102_v39, %v2350_v59  ;;  %v5480_v36 = vld [vmem:[#allocation7 + $0xb0] sm:$0xff]   ;;  %v9164_v59 = vrot.slane %v6558_v53, 7  ;;  %v7155_v1 = vsel %vm2189_vm4, %v2185_v11, %v2186_v28 }
 0x1c4   : > { %9155 = vst [vmem:[#allocation71_spill] sm:$0xff] %v7115_v48  ;;  %v7127_v15 = vsel %vm2189_vm4, %v9157_v35, %v2184_v38  ;;  %v2411_v41 = vmul.f32 %v7115_v48, %v6953_v43  ;;  %9162 = vst [vmem:[#allocation74_spill] sm:$0xff] %v7141_v25  ;;  %v9163_v38 = vrot.slane %v6544_v30, 7  ;;  %v7159_v13 = vpack.c.bf16 %v6558_v53, %v6528_v26  ;;  %v5767_v43 = vld [vmem:[#allocation7 + $0xb8] sm:$0xff]  }
 0x1c5   : > { %9158 = vst [vmem:[#allocation73_spill] sm:$0xff] %v7127_v15  ;;  %v2455_v48 = vpack.c.bf16 %v2409_v42, %v7127_v15  ;;  %2688 = vmatmul.mubr.bf16.vlgmr.msra.gmra.mxu1 %v2414_v49  ;;  %9165 = vst [vmem:[#allocation75_spill] sm:$0xff] %v7155_v1  ;;  %v2058_v21 = vrot.slane %v7058_v18, 7  ;;  %v9167_v42 = vrot.slane %v6528_v26, 7  ;;  %v862_v28 = vadd.s32 144, %v6167_v4  ;;  %v9171_v26 = vld [vmem:[#allocation32_spill] sm:$0xff] }
 0x1c6   : > { %v7149_v35 = vsel %vm2060_vm7, %v9164_v59, %v9163_v38  ;;  %9166 = vst [vmem:[#allocation76_spill] sm:$0xff] %v7159_v13  ;;  %5262 = vmatpush3.bf16.msra.mxu1 %v5767_v43  ;;  %2695 = vmatprep.mubr.bf16.mxu1 %v7109_v16  ;;  %v2458_v38 = vpack.c.bf16 %v2411_v41, %v7155_v1  ;;  %v9169_v49 = vrot.slane %v6516_v7, 1  ;;  %v2125_v43 = vmul.f32 0.0, %v7058_v18  ;;  %v9170_v41 = vld [vmem:[#allocation30_spill] sm:$0xff] }
 0x1c7   : > { %v7170_v11 = vsel %vm2060_vm7, %v9167_v42, %v9164_v59  ;;  %5263 = vmatprep.subr.bf16.mxu1 %v5480_v36  ;;  %v7182_v53 = vmul.f32 %v7141_v25, %v9170_v41  ;;  %v7186_v1 = vmul.f32 %v7149_v35, %v9171_v26  ;;  %v5481_v59 = vld [vmem:[#allocation7 + $0xa8] sm:$0xff]   ;;  %v2126_v7 = vmul.f32 0.0, %v7061_v22 }
 0x1c8   : > { %9168 = vst [vmem:[#allocation77_spill] sm:$0xff] %v7170_v11  ;;  %v7177_v45 = vsel %vm2189_vm4, %v2188_v20, %v9169_v49  ;;  %v2417_v15 = vpack.c.bf16 %v7031_v32, %v2352_v23  ;;  %v7193_v49 = vpack.c.bf16 %v6555_v12, %v6544_v30  ;;  %v9172_v24 = vrot.slane %v7073_v61, 7 }
 0x1c9   : > { %5254 = vmatmul.mubr.bf16.gmra.mxu0 %v2455_v48  ;;  %v2420_v52 = vpack.c.bf16 %v7170_v11, %v7182_v53  ;;  %v9174_v42 = vrot.slane %v6555_v12, 7  ;;  %v9175_v25 = vrot.slane %v6544_v30, 7  ;;  %v7213_v32 = vpack.c.bf16 %v9140_v44, %v6611_v58  ;;  %v9178_v48 = vld [vmem:[#allocation22_spill] sm:$0xff] }
 0x1ca   : > { %v7199_v0 = vsel %vm2060_vm7, %v9172_v24, %v2058_v21  ;;  %v7217_v24 = vsel %vm2060_vm7, %v2058_v21, %v2059_v31  ;;  %5257 = vmatprep.mubr.bf16.mxu0 %v2458_v38  ;;  %v2413_v53 = vmul.f32 %v7177_v45, %v9178_v48  ;;  %5264 = vmatpush3.bf16.msra.mxu1 %v5480_v36  ;;  %v1006_v11 = vand.u32 15, %v862_v28  ;;  %v5482_v21 = vld [vmem:[#allocation7 + $0xa0] sm:$0xff]  }
 0x1cb   : > { %9173 = vst [vmem:[#allocation30_spill] sm:$0xff] %v7199_v0  ;;  %v7209_v23 = vsel %vm2060_vm7, %v9175_v25, %v9174_v42  ;;  %9176 = vst [vmem:[#allocation78_spill] sm:$0xff] %v7213_v32  ;;  %v7223_v30 = vpack.c.bf16 %v6752_v60, %v6747_v5  ;;  %5265 = vmatprep.subr.bf16.mxu1 %v5481_v59  ;;  %v9180_v42 = vrot.slane %v6611_v58, 7  ;;  %v9181_v26 = vrot.slane %v6555_v12, 7 }
 0x1cc   : > { %9177 = vst [vmem:[#allocation79_spill] sm:$0xff] %v7217_v24  ;;  %v9182_v36 = vrot.slane %v6752_v60, 7  ;;  %v9183_v38 = vrot.slane %v6747_v5, 7  ;;  %vm1662_vm9 = vcmp.ge.s32.totalorder %v1006_v11, 1 }
 0x1cd   : > { %9179 = vst [vmem:[#allocation80_spill] sm:$0xff] %v7223_v30  ;;  %v7233_v31 = vsel %vm2060_vm7, %v9181_v26, %v9180_v42  ;;  %v9186_v30 = vrot.slane %v6653_v8, 7  ;;  %v7253_v26 = vmul.f32 %v7199_v0, %v6935_v55  ;;  %v9187_v42 = vrot.slane %v7058_v18, 1  ;;  %2696 = vmatmul.mubr.bf16.gmra.mxu1 %v2417_v15 }
 0x1ce   : > { %v7241_v28 = vsel %vm2060_vm7, %v9183_v38, %v9182_v36  ;;  %v9185_v25 = vmov %v9183_v38  ;;  %v2255_v36 = vpack.c.bf16 %v2126_v7, %v2125_v43  ;;  %v7266_v38 = vmul.f32 0.0, %v7217_v24  ;;  %2703 = vmatprep.mubr.bf16.mxu1 %v7159_v13  ;;  %5266 = vmatpush3.bf16.msra.mxu1 %v5481_v59 }
 0x1cf   : > { %9184 = vst [vmem:[#allocation81_spill] sm:$0xff] %v7241_v28  ;;  %v7249_v12 = vsel %vm2060_vm7, %v9186_v30, %v9185_v25  ;;  %v7259_v48 = vsel %vm2189_vm4, %v9187_v42, %v2188_v20  ;;  %v9189_v30 = vrot.slane %v6854_v40, 7  ;;  %v9190_v55 = vrot.slane %v6792_v10, 7  ;;  %5267 = vmatprep.subr.bf16.mxu1 %v5482_v21 }
 0x1d0   : > { %v7263_v5 = vmul.f32 %v7249_v12, %v7120_v62  ;;  %v9193_v7 = vrot.slane %v6752_v60, 7  ;;  %v2461_v15 = vpack.c.bf16 %v2413_v53, %v7259_v48  ;;  %v7289_v42 = vsel %vm1662_vm9, 1.0, %v9027_v47 }
 0x1d1   : > { %v7274_v25 = vsel %vm2060_vm7, %v9190_v55, %v9189_v30  ;;  %v9192_v20 = vmov %v9190_v55  ;;  %v7293_v30 = vpack.c.bf16 %v6906_v51, %v6835_v56  ;;  %v7297_v60 = vmul.f32 %v7091_v9, %v9159_v46  ;;  %v5483_v55 = vld [vmem:[#allocation7 + $0x98] sm:$0xff]  }
 0x1d2   : > { %9188 = vst [vmem:[#allocation82_spill] sm:$0xff] %v7263_v5  ;;  %9191 = vst [vmem:[#allocation83_spill] sm:$0xff] %v7274_v25  ;;  %v7282_v43 = vsel %vm2060_vm7, %v9193_v7, %v9192_v20  ;;  %v864_v59 = vadd.s32 160, %v6167_v4  ;;  %v9196_v20 = vrot.slane %v6906_v51, 7  ;;  %v9197_v7 = vrot.slane %v6835_v56, 7  ;;  %5258 = vmatmul.mubr.bf16.gmra.mxu0 %v2461_v15  ;;  %5268 = vmatpush3.bf16.msra.mxu1 %v5482_v21 }
 0x1d3   : > { %9194 = vst [vmem:[#allocation84_spill] sm:$0xff] %v7293_v30  ;;  %v7301_v53 = vmul.f32 %v7282_v43, %v7289_v42  ;;  %v9200_v5 = vrot.slane %v6854_v40, 7  ;;  %v7322_v9 = vpack.c.bf16 %v6932_v50, %v6857_v14  ;;  %v7326_v62 = vmul.f32 %v7249_v12, %v7289_v42  ;;  %3153 = vmatprep.mubr.bf16.mxu0 %v2255_v36 }
 0x1d4   : > { %v7310_v11 = vsel %vm2060_vm7, %v9197_v7, %v9196_v20  ;;  %v9199_v30 = vmov %v9197_v7  ;;  %v866_v46 = vadd.s32 176, %v6167_v4  ;;  %v2254_v56 = vpack.c.bf16 %v7266_v38, %v7253_v26  ;;  %5269 = vmatprep.subr.bf16.mxu1 %v5483_v55 }
 0x1d5   : > { %9195 = vst [vmem:[#allocation85_spill] sm:$0xff] %v7301_v53  ;;  %9198 = vst [vmem:[#allocation86_spill] sm:$0xff] %v7310_v11  ;;  %v7318_v10 = vsel %vm2060_vm7, %v9200_v5, %v9199_v30  ;;  %v1020_v7 = vand.u32 15, %v864_v59  ;;  %v9203_v5 = vrot.slane %v6932_v50, 7  ;;  %v9204_v30 = vrot.slane %v6857_v14, 7  ;;  %2704 = vmatmul.mubr.bf16.gmra.mxu1 %v2420_v52  ;;  %v9281_v11 = vld [vmem:[#allocation67_spill] sm:$0xff] }
 0x1d6   : > { %9201 = vst [vmem:[#allocation87_spill] sm:$0xff] %v7322_v9  ;;  %9202 = vst [vmem:[#allocation88_spill] sm:$0xff] %v7326_v62  ;;  %v1034_v40 = vand.u32 15, %v866_v46  ;;  %v9207_v38 = vmov %v9196_v20  ;;  %v7353_v20 = vpack.c.bf16 %v6979_v6, %v6928_v17  ;;  %v868_v21 = vadd.s32 192, %v6167_v4  ;;  %2711 = vmatprep.mubr.bf16.mxu1 %v7193_v49  ;;  %5270 = vmatpush3.bf16.msra.mxu1 %v5483_v55 }
 0x1d7   : > { %v7339_v9 = vsel %vm2060_vm7, %v9204_v30, %v9203_v5  ;;  %v9206_v26 = vmov %v9204_v30  ;;  %v5484_v5 = vld [vmem:[#allocation7 + $0x90] sm:$0xff]   ;;  %vm1664_vm10 = vcmp.ge.s32.totalorder %v1020_v7, 1  ;;  %v9209_v36 = vrot.slane %v6979_v6, 7 }
 0x1d8   : > { %9205 = vst [vmem:[#allocation89_spill] sm:$0xff] %v7339_v9  ;;  %v7349_v59 = vsel %vm2060_vm7, %v9207_v38, %v9206_v26  ;;  %9208 = vst [vmem:[#allocation90_spill] sm:$0xff] %v7353_v20  ;;  %v9210_v46 = vrot.slane %v6928_v17, 7  ;;  %v9213_v30 = vrot.slane %v6932_v50, 7  ;;  %v7373_v7 = vsel %vm1664_vm10, 1.0, %v9027_v47  ;;  %5271 = vmatprep.subr.bf16.mxu1 %v5484_v5  ;;  %v5485_v20 = vld [vmem:[#allocation7 + $0x88] sm:$0xff]  }
 0x1d9   : > { %vm1666_vm11 = vcmp.ge.s32.totalorder %v1034_v40, 1  ;;  %v7377_v38 = vpack.c.bf16 %v7018_v2, %v6958_v57  ;;  %v870_v15 = vadd.s32 208, %v6167_v4  ;;  %v7382_v17 = vmul.f32 %v7318_v10, %v7373_v7  ;;  %v9280_v9 = vld [vmem:[#allocation34_spill] sm:$0xff] }
 0x1da   : > { %v7362_v14 = vsel %vm2060_vm7, %v9210_v46, %v9209_v36  ;;  %v9212_v51 = vmov %v9210_v46  ;;  %v7385_v50 = vsel %vm1666_vm11, 1.0, %v9027_v47  ;;  %v7389_v36 = vmul.f32 %v7282_v43, %v7373_v7  ;;  %3154 = vmatmul.mubr.bf16.vlgmr.msra.gmra.mxu0 %v2254_v56  ;;  %5272 = vmatpush3.bf16.msra.mxu1 %v5484_v5 }
 0x1db   : > { %9211 = vst [vmem:[#allocation91_spill] sm:$0xff] %v7362_v14  ;;  %v7370_v26 = vsel %vm2060_vm7, %v9213_v30, %v9212_v51  ;;  %9214 = vst [vmem:[#allocation92_spill] sm:$0xff] %v7377_v38  ;;  %v1048_v46 = vand.u32 15, %v868_v21  ;;  %v7394_v40 = vmul.f32 %v7349_v59, %v7385_v50  ;;  %v7398_v52 = vmul.f32 %v7318_v10, %v7385_v50  ;;  %v5488_v21 = vld [vmem:[#allocation7 + $0x230] sm:$0xff]  }
 0x1dc   : > { %9215 = vst [vmem:[#allocation93_spill] sm:$0xff] %v7382_v17  ;;  %9216 = vst [vmem:[#allocation94_spill] sm:$0xff] %v7385_v50  ;;  %v1062_v51 = vand.u32 15, %v870_v15  ;;  %v9220_v30 = vrot.slane %v7018_v2, 7  ;;  %v9221_v38 = vrot.slane %v6958_v57, 7  ;;  %v9224_v15 = vrot.slane %v6979_v6, 7  ;;  %5273 = vmatprep.subr.bf16.mxu1 %v5485_v20  ;;  %5310 = vmatpush3.bf16.msra.mxu0 %v7039_v54 }
 0x1dd   : > { %9217 = vst [vmem:[#allocation95_spill] sm:$0xff] %v7389_v36  ;;  %9218 = vst [vmem:[#allocation96_spill] sm:$0xff] %v7394_v40  ;;  %vm1668_vm12 = vcmp.ge.s32.totalorder %v1048_v46, 1  ;;  %v9225_v57 = vand.u32 15, %v6868_v3  ;;  %v7448_v3 = vpack.c.bf16 %v7073_v61, %v7002_v29  ;;  %v9236_v55 = vrot.slane %v7073_v61, 7  ;;  %v5487_v40 = vld [vmem:[#allocation7 + $0x80] sm:$0xff]   ;;  %5311 = vmatprep.subr.bf16.mxu0 %v5488_v21 }
 0x1de   : > { %9219 = vst [vmem:[#allocation97_spill] sm:$0xff] %v7398_v52  ;;  %v7406_v62 = vsel %vm2060_vm7, %v9221_v38, %v9220_v30  ;;  %v9223_v53 = vmov %v9221_v38  ;;  %v7423_v30 = vsel %vm1668_vm12, 1.0, %v9027_v47  ;;  %vm1670_vm13 = vcmp.ge.s32.totalorder %v1062_v51, 1  ;;  %v9243_v61 = vld [vmem:[#allocation12_spill] sm:$0xff]  ;;  %5274 = vmatpush3.bf16.msra.mxu1 %v5485_v20 }
 0x1df   : > { %9222 = vst [vmem:[#allocation98_spill] sm:$0xff] %v7406_v62  ;;  %v7418_v50 = vsel %vm2060_vm7, %v9224_v15, %v9223_v53  ;;  %vm7429_vm14 = vcmp.ge.s32.totalorder %v9225_v57, 1  ;;  %v9228_v53 = vand.u32 15, %v6882_v37  ;;  %v7441_v15 = vmul.f32 %v7370_v26, %v7423_v30  ;;  %9232 = vst [vmem:[#allocation100_spill] sm:$0xff] %v7448_v3  ;;  %v9234_v37 = vld [vmem:[#allocation41_spill] sm:$0xff]  ;;  %5275 = vmatprep.subr.bf16.mxu1 %v5487_v40  ;;  %v9279_v62 = vld [vmem:[#allocation15_spill] sm:$0xff] }
 0x1e0   : > { %v7444_v51 = vsel %vm1670_vm13, 1.0, %v9027_v47  ;;  %v7452_v56 = vmul.f32 %v7349_v59, %v7423_v30  ;;  %3161 = vmatprep.mubr.bf16.mxu0 %v9234_v37  ;;  %v9237_v38 = vrot.slane %v7002_v29, 7  ;;  %v9240_v36 = vrot.slane %v7018_v2, 7  ;;  %5312 = vmatpush3.bf16.msra.mxu0 %v5488_v21 }
 0x1e1   : > { %vm7435_vm15 = vcmp.ge.s32.totalorder %v9228_v53, 1  ;;  %9231 = vst [vmem:[#allocation99_spill] sm:$0xff] %v7441_v15  ;;  %v7457_v57 = vmul.f32 %v7418_v50, %v7444_v51  ;;  %v872_v53 = vadd.s32 224, %v6167_v4  ;;  %v874_v29 = vadd.s32 240, %v6167_v4 }
 0x1e2   : > { %9233 = vst [vmem:[#allocation101_spill] sm:$0xff] %v7452_v56  ;;  %v7466_v52 = vsel %vm2060_vm7, %v9237_v38, %v9236_v55  ;;  %v9239_v3 = vmov %v9237_v38  ;;  %v7483_v55 = vpack.c.bf16 %v7061_v22, %v7058_v18  ;;  %v7490_v38 = vmul.f32 %v7370_v26, %v7444_v51  ;;  %5276 = vmatpush3.bf16.msra.mxu1 %v5487_v40  ;;  %v9259_v40 = vld [vmem:[#allocation32_spill] sm:$0xff] }
 0x1e3   : > { %9235 = vst [vmem:[#allocation41_spill] sm:$0xff] %v7457_v57  ;;  %9238 = vst [vmem:[#allocation102_spill] sm:$0xff] %v7466_v52  ;;  %v7474_v5 = vsel %vm2060_vm7, %v9240_v36, %v9239_v3  ;;  %v1076_v36 = vand.u32 15, %v872_v53  ;;  %v5489_v3 = vld [vmem:[#allocation7 + $0x228] sm:$0xff]   ;;  %v1933_v37 = vmul.f32 0.0, %v9243_v61  ;;  %v2040_v54 = vrot.slane %v6643_v27, 7 }
 0x1e4   : > { %9241 = vst [vmem:[#allocation103_spill] sm:$0xff] %v7483_v55  ;;  %9242 = vst [vmem:[#allocation104_spill] sm:$0xff] %v7490_v38  ;;  %v9244_v22 = vpack.c.bf16 %v7209_v23, %v7186_v1  ;;  %v9245_v18 = vrot.slane %v9140_v44, 7  ;;  %v9246_v56 = vrot.slane %v6611_v58, 7  ;;  %v1090_v2 = vand.u32 15, %v874_v29  ;;  %v9248_v61 = vld [vmem:[#allocation36_spill] sm:$0xff]  ;;  %5313 = vmatprep.subr.bf16.mxu0 %v5489_v3 }
 0x1e5   : > { %v7506_v55 = vmul.f32 0.0, %v7259_v48  ;;  %v2358_v57 = vmul.f32 %v7233_v31, %v9248_v61  ;;  %vm1672_vm0 = vcmp.ge.s32.totalorder %v1076_v36, 1  ;;  %v7514_v58 = vmul.f32 %v7177_v45, %v1933_v37  ;;  %v5492_v36 = vld [vmem:[#allocation7 + $0x1f8] sm:$0xff]   ;;  %v9256_v44 = vld [vmem:[#allocation24_spill] sm:$0xff]  ;;  %5314 = vmatpush3.bf16.msra.mxu0 %v5489_v3 }
 0x1e6   : > { %2712 = vmatmul.mubr.bf16.gmra.mxu1 %v9244_v22  ;;  %v7503_v53 = vsel %vm2060_vm7, %v9246_v56, %v9245_v18  ;;  %v2257_v56 = vpack.c.bf16 %v7102_v39, %v7297_v60  ;;  %v9250_v29 = vrot.slane %v6593_v33, 7  ;;  %v9251_v22 = vmov %v9245_v18  ;;  %5029 = vmatprep.subr.bf16.mxu1 %v5492_v36  ;;  %v5491_v36 = vld [vmem:[#allocation7 + $0x218] sm:$0xff]  }
 0x1e7   : > { %9247 = vst [vmem:[#allocation105_spill] sm:$0xff] %v7506_v55  ;;  %2719 = vmatprep.mubr.bf16.mxu1 %v7213_v32  ;;  %9249 = vst [vmem:[#allocation36_spill] sm:$0xff] %v7514_v58  ;;  %v7527_v20 = vsel %vm1672_vm0, 1.0, %v9027_v47  ;;  %vm1674_vm1 = vcmp.ge.s32.totalorder %v1090_v2, 1  ;;  %v2097_v21 = vmul.f32 %v6986_v19, %v9170_v41  ;;  %v2426_v2 = vpack.c.bf16 %v7503_v53, %v2358_v57  ;;  %v9260_v19 = vld [vmem:[#allocation74_spill] sm:$0xff] }
 0x1e8   : > { %v7524_v18 = vsel %vm2060_vm7, %v9251_v22, %v9250_v29  ;;  %v7531_v37 = vmul.f32 %v7474_v5, %v7527_v20  ;;  %v7534_v60 = vsel %vm1674_vm1, 1.0, %v9027_v47  ;;  %v5490_v29 = vld [vmem:[#allocation7 + $0x220] sm:$0xff]   ;;  %v7540_v22 = vmul.f32 %v7418_v50, %v7527_v20  ;;  %3162 = vmatmul.mubr.bf16.gmra.mxu0 %v2257_v56 }
 0x1e9   : > { %v7547_v1 = vmul.f32 %v7199_v0, %v7534_v60  ;;  %v7551_v38 = vmul.f32 %v7474_v5, %v7534_v60  ;;  %v2041_v55 = vrot.slane %v9256_v44, 7  ;;  %3169 = vmatprep.mubr.bf16.mxu0 %v7109_v16  ;;  %v2360_v56 = vmul.f32 %v7524_v18, %v6940_v34  ;;  %5315 = vmatprep.subr.bf16.mxu0 %v5490_v29  ;;  %v9261_v16 = vld [vmem:[#allocation43_spill] sm:$0xff]  ;;  %v9287_v0 = vld [vmem:[#allocation42_spill] sm:$0xff] }
 0x1ea   : > { %9252 = vst [vmem:[#allocation106_spill] sm:$0xff] %v7531_v37  ;;  %9253 = vst [vmem:[#allocation107_spill] sm:$0xff] %v7540_v22  ;;  %v7563_v58 = vmul.f32 %v7149_v35, %v9248_v61  ;;  %v7571_v17 = vpack.c.bf16 %v6621_v63, %v6593_v33  ;;  %v7575_v37 = vmul.f32 %v9260_v19, %v9259_v40  ;;  %v7580_v57 = vsel %vm7429_vm14, 1.0, %v9027_v47  ;;  %v9263_v22 = vld [vmem:[#allocation69_spill] sm:$0xff] }
 0x1eb   : > { %9254 = vst [vmem:[#allocation108_spill] sm:$0xff] %v7547_v1  ;;  %9255 = vst [vmem:[#allocation109_spill] sm:$0xff] %v7551_v38  ;;  %v7585_v3 = vsel %vm7435_vm15, 1.0, %v9027_v47  ;;  %v2042_v15 = vrot.slane %v9261_v16, 7  ;;  %v7589_v38 = vmul.f32 0.0, %v7102_v39  ;;  %v2260_v1 = vpack.c.bf16 %v9263_v22, %v2097_v21  ;;  %v9265_v47 = vld [vmem:[#allocation77_spill] sm:$0xff]  ;;  %5316 = vmatpush3.bf16.msra.mxu0 %v5490_v29 }
 0x1ec   : > { %9257 = vst [vmem:[#allocation24_spill] sm:$0xff] %v7563_v58  ;;  %9258 = vst [vmem:[#allocation110_spill] sm:$0xff] %v7571_v17  ;;  %v9264_v32 = vrot.slane %v6621_v63, 7  ;;  %v2263_v46 = vpack.c.bf16 %v9265_v47, %v7575_v37  ;;  %v9267_v52 = vrot.slane %v6593_v33, 7  ;;  %v7611_v21 = vpack.c.bf16 %v9256_v44, %v6643_v27  ;;  %5317 = vmatprep.subr.bf16.mxu0 %v5491_v36  ;;  %v9271_v44 = vld [vmem:[#allocation59_spill] sm:$0xff]  ;;  %v9278_v58 = vld [vmem:[#allocation33_spill] sm:$0xff] }
 0x1ed   : > { %9262 = vst [vmem:[#allocation32_spill] sm:$0xff] %v7589_v38  ;;  %v7622_v33 = vpack.c.bf16 %v6653_v8, %v9261_v16  ;;  %v9269_v63 = vrot.slane %v6653_v8, 7  ;;  %v9272_v37 = vld [vmem:[#allocation31_spill] sm:$0xff]  ;;  %v9273_v16 = vld [vmem:[#allocation62_spill] sm:$0xff]  ;;  %v9274_v8 = vld [vmem:[#allocation20_spill] sm:$0xff]  ;;  %v7648_v29 = vsel %vm2060_vm7, %v2041_v55, %v2042_v15  ;;  %v7656_v14 = vmul.f32 %v9279_v62, %v9278_v58 }
 0x1ee   : > { %2720 = vmatmul.mubr.bf16.gmra.mxu1 %v2426_v2  ;;  %v7596_v6 = vsel %vm2060_vm7, %v9264_v32, %v2040_v54  ;;  %v9266_v24 = vmov %v9264_v32  ;;  %v7615_v32 = vsel %vm2060_vm7, %v2040_v54, %v2041_v55  ;;  %v9270_v54 = vld [vmem:[#allocation23_spill] sm:$0xff]  ;;  %v7640_v22 = vmul.f32 %v9273_v16, %v9272_v37  ;;  %v5495_v55 = vld [vmem:[#allocation7 + $0x208] sm:$0xff]  }
 0x1ef   : > { %2727 = vmatprep.mubr.bf16.mxu1 %v7571_v17  ;;  %v7607_v39 = vsel %vm2060_vm7, %v9267_v52, %v9266_v24  ;;  %9268 = vst [vmem:[#allocation74_spill] sm:$0xff] %v7622_v33  ;;  %v7628_v24 = vsel %vm2060_vm7, %v2042_v15, %v9269_v63  ;;  %v7632_v27 = vmul.f32 %v7596_v6, %v7580_v57  ;;  %v5494_v52 = vld [vmem:[#allocation7 + $0x210] sm:$0xff]   ;;  %v9276_v63 = vld [vmem:[#allocation21_spill] sm:$0xff] }
 0x1f0   : > { %v2429_v2 = vpack.c.bf16 %v7607_v39, %v2360_v56  ;;  %v7636_v56 = vmul.f32 %v9271_v44, %v9270_v54  ;;  %v7644_v17 = vmul.f32 %v9271_v44, %v9274_v8  ;;  %3170 = vmatmul.mubr.bf16.gmra.mxu0 %v2260_v1  ;;  %v7652_v38 = vmul.f32 %v9273_v16, %v9276_v63  ;;  %v9283_v44 = vld [vmem:[#allocation61_spill] sm:$0xff]  ;;  %v9291_v63 = vld [vmem:[#allocation63_spill] sm:$0xff] }
 0x1f1   : > { %v7660_v33 = vmul.f32 %v9281_v11, %v9280_v9  ;;  %3177 = vmatprep.mubr.bf16.mxu0 %v7159_v13  ;;  %v7671_v16 = vmul.f32 %v9279_v62, %v9270_v54  ;;  %5318 = vmatpush3.bf16.msra.mxu0 %v5491_v36  ;;  %v9286_v8 = vld [vmem:[#allocation65_spill] sm:$0xff]  ;;  %v7681_v15 = vmul.f32 %v9281_v11, %v9272_v37  ;;  %v9289_v54 = vld [vmem:[#allocation35_spill] sm:$0xff]  ;;  %v9290_v36 = vld [vmem:[#allocation68_spill] sm:$0xff]  ;;  %v1994_v11 = vmul.f32 0.0, %v7534_v60 }
 0x1f2   : > { %9275 = vst [vmem:[#allocation43_spill] sm:$0xff] %v7644_v17  ;;  %9277 = vst [vmem:[#allocation77_spill] sm:$0xff] %v7652_v38  ;;  %5319 = vmatprep.subr.bf16.mxu0 %v5494_v52  ;;  %v7687_v17 = vmul.f32 %v9290_v36, %v9289_v54  ;;  %v9292_v38 = vld [vmem:[#allocation47_spill] sm:$0xff]  ;;  %v7695_v1 = vmul.f32 %v9290_v36, %v9278_v58  ;;  %v9293_v62 = vld [vmem:[#allocation22_spill] sm:$0xff]  ;;  %v7766_v60 = vmul.f32 %v7249_v12, %v7585_v3 }
 0x1f3   : > { %9282 = vst [vmem:[#allocation23_spill] sm:$0xff] %v7660_v33  ;;  %9285 = vst [vmem:[#allocation59_spill] sm:$0xff] %v7671_v16  ;;  %v7691_v4 = vmul.f32 %v9292_v38, %v9291_v63  ;;  %v7701_v37 = vmul.f32 %v9292_v38, %v9280_v9  ;;  %v9294_v13 = vld [vmem:[#allocation71_spill] sm:$0xff]  ;;  %v9295_v58 = vld [vmem:[#allocation44_spill] sm:$0xff]  ;;  %v7720_v38 = vmul.f32 %v7177_v45, %v9291_v63 }
 0x1f4   : > { %9288 = vst [vmem:[#allocation31_spill] sm:$0xff] %v7681_v15  ;;  %v7705_v16 = vmul.f32 %v9294_v13, %v9293_v62  ;;  %v7709_v33 = vmul.f32 %v9294_v13, %v9289_v54  ;;  %v9296_v36 = vld [vmem:[#allocation73_spill] sm:$0xff]  ;;  %v2432_v62 = vpack.c.bf16 %v7615_v32, %v7632_v27  ;;  %v9297_v54 = vld [vmem:[#allocation75_spill] sm:$0xff]  ;;  %v5498_v15 = vld [vmem:[#allocation7 + $0x200] sm:$0xff]   ;;  %v7738_v27 = vmul.f32 %v7149_v35, %v9170_v41 }
 0x1f5   : > { %5320 = vmatpush3.bf16.msra.mxu0 %v5494_v52  ;;  %v9298_v45 = vld [vmem:[#allocation28_spill] sm:$0xff]  ;;  %v7742_v52 = vmul.f32 %v7233_v31, %v9259_v40  ;;  %v7747_v13 = vmul.f32 %v7524_v18, %v9248_v61  ;;  %v7751_v9 = vmul.f32 %v7596_v6, %v6940_v34  ;;  %9300 = vst [vmem:[#allocation33_spill] sm:$0xff] %v7766_v60  ;;  %v9318_v60 = vld [vmem:[#allocation49_spill] sm:$0xff]  ;;  %v9327_v61 = vld [vmem:[#allocation27_spill] sm:$0xff] }
 0x1f6   : > { %2728 = vmatmul.mubr.bf16.gmra.mxu1 %v2429_v2  ;;  %5321 = vmatprep.subr.bf16.mxu0 %v5495_v55  ;;  %v7734_v63 = vmul.f32 %v9260_v19, %v9298_v45  ;;  %v7755_v19 = vmul.f32 %v7648_v29, %v7580_v57  ;;  %v9301_v35 = vld [vmem:[#allocation72_spill] sm:$0xff]  ;;  %v7782_v12 = vmul.f32 %v7318_v10, %v7289_v42  ;;  %v9309_v42 = vld [vmem:[#allocation30_spill] sm:$0xff]  ;;  %v9317_v2 = vld [vmem:[#allocation79_spill] sm:$0xff] }
 0x1f7   : > { %2735 = vmatprep.mubr.bf16.mxu1 %v7611_v21  ;;  %v7776_v41 = vmul.f32 %v7282_v43, %v9301_v35  ;;  %v7796_v45 = vmul.f32 %v7418_v50, %v7423_v30  ;;  %v7800_v10 = vmul.f32 %v7474_v5, %v7444_v51  ;;  %v9313_v43 = vld [vmem:[#allocation89_spill] sm:$0xff]  ;;  %v9314_v30 = vld [vmem:[#allocation91_spill] sm:$0xff]  ;;  %v9315_v51 = vld [vmem:[#allocation98_spill] sm:$0xff] }
 0x1f8   : > { %3178 = vmatmul.mubr.bf16.gmra.mxu0 %v2263_v46  ;;  %9299 = vst [vmem:[#allocation62_spill] sm:$0xff] %v7755_v19  ;;  %9303 = vst [vmem:[#allocation34_spill] sm:$0xff] %v7782_v12  ;;  %v9305_v46 = vld [vmem:[#allocation94_spill] sm:$0xff]  ;;  %v7822_v19 = vmul.f32 %v9318_v60, %v1994_v11  ;;  %v9363_v50 = vld [vmem:[#allocation40_spill] sm:$0xff] }
 0x1f9   : > { %3185 = vmatprep.mubr.bf16.mxu0 %v7193_v49  ;;  %5322 = vmatpush3.bf16.msra.mxu0 %v5495_v55  ;;  %9302 = vst [vmem:[#allocation15_spill] sm:$0xff] %v7776_v41  ;;  %v7786_v55 = vmul.f32 %v7349_v59, %v7373_v7  ;;  %v7790_v40 = vmul.f32 %v7370_v26, %v9305_v46  ;;  %9307 = vst [vmem:[#allocation65_spill] sm:$0xff] %v7796_v45  ;;  %v9311_v7 = vld [vmem:[#allocation74_spill] sm:$0xff]  ;;  %v9320_v46 = vld [vmem:[#allocation24_spill] sm:$0xff] }
 0x1fa   : > { %5323 = vmatprep.subr.bf16.mxu0 %v5498_v15  ;;  %9308 = vst [vmem:[#allocation42_spill] sm:$0xff] %v7800_v10  ;;  %v7804_v59 = vmul.f32 %v9309_v42, %v7527_v20  ;;  %v2364_v26 = vmul.f32 %v7648_v29, %v7585_v3  ;;  %v9316_v20 = vld [vmem:[#allocation102_spill] sm:$0xff]  ;;  %9319 = vst [vmem:[#allocation68_spill] sm:$0xff] %v7822_v19  ;;  %v9321_v12 = vpack.c.bf16 %v7209_v23, %v9320_v46  ;;  %v9324_v10 = vld [vmem:[#allocation80_spill] sm:$0xff] }
 0x1fb   : > { %9304 = vst [vmem:[#allocation67_spill] sm:$0xff] %v7786_v55  ;;  %9306 = vst [vmem:[#allocation61_spill] sm:$0xff] %v7790_v40  ;;  %v2103_v42 = vmul.f32 %v7233_v31, %v6940_v34  ;;  %v9325_v60 = vld [vmem:[#allocation110_spill] sm:$0xff]  ;;  %v9326_v46 = vld [vmem:[#allocation25_spill] sm:$0xff]  ;;  %v2107_v31 = vmul.f32 %v7596_v6, %v7585_v3 }
 0x1fc   : > { %9310 = vst [vmem:[#allocation35_spill] sm:$0xff] %v7804_v59  ;;  %v2435_v5 = vpack.c.bf16 %v7628_v24, %v2364_v26  ;;  %v7840_v41 = vpack.c.bf16 %v9327_v61, %v9326_v46  ;;  %v9329_v26 = vld [vmem:[#allocation82_spill] sm:$0xff]  ;;  %v9333_v61 = vld [vmem:[#allocation84_spill] sm:$0xff] }
 0x1fd   : > { %5324 = vmatpush3.bf16.msra.mxu0 %v5498_v15  ;;  %v9323_v15 = vld [vmem:[#allocation78_spill] sm:$0xff]  ;;  %v2269_v11 = vpack.c.bf16 %v7503_v53, %v2103_v42  ;;  %v9330_v19 = vpack.c.bf16 %v7241_v28, %v9329_v26  ;;  %v9334_v42 = vld [vmem:[#allocation93_spill] sm:$0xff]  ;;  %v9337_v6 = vld [vmem:[#allocation96_spill] sm:$0xff] }
 0x1fe   : > { %2736 = vmatmul.mubr.bf16.gmra.mxu1 %v2432_v62  ;;  %v9312_v62 = vld [vmem:[#allocation86_spill] sm:$0xff]  ;;  %9328 = vst [vmem:[#allocation63_spill] sm:$0xff] %v7840_v41  ;;  %v9338_v46 = vpack.c.bf16 %v9313_v43, %v9337_v6 }
 0x1ff   : > { %2743 = vmatprep.mubr.bf16.mxu1 %v9311_v7  ;;  %v9339_v26 = vld [vmem:[#allocation90_spill] sm:$0xff] }
 0x200   : > { %3186 = vmatmul.mubr.bf16.gmra.mxu0 %v9321_v12  ;;  %v2105_v12 = vmul.f32 %v7524_v18, %v7580_v57  ;;  %v9331_v18 = vld [vmem:[#allocation85_spill] sm:$0xff]  ;;  %v9367_v40 = vld [vmem:[#allocation46_spill] sm:$0xff] }
 0x201   : > { %3193 = vmatprep.mubr.bf16.mxu0 %v9323_v15  ;;  %v9332_v57 = vpack.c.bf16 %v7274_v25, %v9331_v18  ;;  %v9344_v18 = vld [vmem:[#allocation92_spill] sm:$0xff] }
 0x202   : > { %v2272_v34 = vpack.c.bf16 %v7607_v39, %v2105_v12  ;;  %v9336_v12 = vld [vmem:[#allocation87_spill] sm:$0xff] }
 0x206   : > { %2744 = vmatmul.mubr.bf16.gmra.mxu1 %v2435_v5  ;;  %v2275_v5 = vpack.c.bf16 %v7615_v32, %v2107_v31 }
 0x207   : > { %2751 = vmatprep.mubr.bf16.mxu1 %v9324_v10 }
 0x208   : > { %3194 = vmatmul.mubr.bf16.gmra.mxu0 %v2269_v11  ;;  %v9335_v11 = vpack.c.bf16 %v9312_v62, %v9334_v42 }
 0x209   : > { %3201 = vmatprep.mubr.bf16.mxu0 %v9325_v60 }
 0x20e   : > { %2752 = vmatmul.mubr.bf16.gmra.mxu1 %v9330_v19  ;;  %v2109_v19 = vmul.f32 %v7648_v29, %v9301_v35  ;;  %v9342_v35 = vld [vmem:[#allocation99_spill] sm:$0xff] }
 0x20f   : > { %2759 = vmatprep.mubr.bf16.mxu1 %v7840_v41  ;;  %v9343_v31 = vpack.c.bf16 %v9314_v30, %v9342_v35  ;;  %v9355_v35 = vld [vmem:[#allocation101_spill] sm:$0xff] }
 0x210   : > { %3202 = vmatmul.mubr.bf16.gmra.mxu0 %v2272_v34  ;;  %v2278_v3 = vpack.c.bf16 %v7628_v24, %v2109_v19  ;;  %v9340_v34 = vld [vmem:[#allocation88_spill] sm:$0xff]  ;;  %v9347_v19 = vld [vmem:[#allocation41_spill] sm:$0xff] }
 0x211   : > { %3209 = vmatprep.mubr.bf16.mxu0 %v7611_v21  ;;  %v9341_v29 = vpack.c.bf16 %v7241_v28, %v9340_v34  ;;  %v9348_v42 = vpack.c.bf16 %v9315_v51, %v9347_v19  ;;  %v9359_v19 = vld [vmem:[#allocation36_spill] sm:$0xff] }
 0x216   : > { %2760 = vmatmul.mubr.bf16.gmra.mxu1 %v9332_v57  ;;  %v9345_v57 = vld [vmem:[#allocation95_spill] sm:$0xff] }
 0x217   : > { %2767 = vmatprep.mubr.bf16.mxu1 %v9333_v61 }
 0x218   : > { %3210 = vmatmul.mubr.bf16.gmra.mxu0 %v2275_v5  ;;  %v9346_v5 = vpack.c.bf16 %v7274_v25, %v9345_v57  ;;  %v9357_v57 = vld [vmem:[#allocation108_spill] sm:$0xff]  ;;  %v9383_v25 = vld [vmem:[#allocation109_spill] sm:$0xff] }
 0x219   : > { %3217 = vmatprep.mubr.bf16.mxu0 %v9311_v7 }
 0x21e   : > { %2768 = vmatmul.mubr.bf16.gmra.mxu1 %v9335_v11  ;;  %v9349_v11 = vld [vmem:[#allocation100_spill] sm:$0xff] }
 0x21f   : > { %2775 = vmatprep.mubr.bf16.mxu1 %v9336_v12 }
 0x220   : > { %3218 = vmatmul.mubr.bf16.gmra.mxu0 %v2278_v3  ;;  %v9350_v3 = vld [vmem:[#allocation97_spill] sm:$0xff] }
 0x221   : > { %3225 = vmatprep.mubr.bf16.mxu0 %v9324_v10  ;;  %v9351_v6 = vpack.c.bf16 %v9312_v62, %v9350_v3  ;;  %v5502_v62 = vld [vmem:[#allocation7 + $0x1a0] sm:$0xff]  }
 0x226   : > { %2776 = vmatmul.mubr.bf16.gmra.mxu1 %v9338_v46  ;;  %v9352_v46 = vld [vmem:[#allocation106_spill] sm:$0xff] }
 0x227   : > { %2783 = vmatprep.mubr.bf16.mxu1 %v9339_v26  ;;  %v9353_v34 = vpack.c.bf16 %v9316_v20, %v9352_v46 }
 0x228   : > { %3226 = vmatmul.mubr.bf16.gmra.mxu0 %v9341_v29  ;;  %v9354_v29 = vld [vmem:[#allocation103_spill] sm:$0xff] }
 0x229   : > { %3233 = vmatprep.mubr.bf16.mxu0 %v7840_v41  ;;  %v9384_v41 = vpack.c.bf16 %v9316_v20, %v9383_v25  ;;  %v5506_v25 = vld [vmem:[#allocation7 + $0x190] sm:$0xff]  }
 0x22e   : > { %2784 = vmatmul.mubr.bf16.gmra.mxu1 %v9343_v31  ;;  %v9356_v31 = vpack.c.bf16 %v9313_v43, %v9355_v35  ;;  %v5493_v35 = vld [vmem:[#allocation7 + $0x1b8] sm:$0xff]   ;;  %v9378_v43 = vld [vmem:[#allocation26_spill] sm:$0xff] }
 0x22f   : > { %2791 = vmatprep.mubr.bf16.mxu1 %v9344_v18 }
 0x230   : > { %3234 = vmatmul.mubr.bf16.gmra.mxu0 %v9346_v5  ;;  %v9358_v5 = vpack.c.bf16 %v9317_v2, %v9357_v57  ;;  %v9368_v57 = vld [vmem:[#allocation48_spill] sm:$0xff] }
 0x231   : > { %3241 = vmatprep.mubr.bf16.mxu0 %v9333_v61  ;;  %v9379_v61 = vld [vmem:[#allocation18_spill] sm:$0xff] }
 0x236   : > { %2792 = vmatmul.mubr.bf16.gmra.mxu1 %v9348_v42  ;;  %v9360_v42 = vld [vmem:[#allocation105_spill] sm:$0xff] }
 0x237   : > { %2799 = vmatprep.mubr.bf16.mxu1 %v9349_v11  ;;  %v9361_v3 = vpack.c.bf16 %v9359_v19, %v9360_v42  ;;  %v5497_v19 = vld [vmem:[#allocation7 + $0x1b0] sm:$0xff]   ;;  %v9370_v42 = vld [vmem:[#allocation16_spill] sm:$0xff] }
 0x238   : > { %3242 = vmatmul.mubr.bf16.gmra.mxu0 %v9351_v6  ;;  %v9362_v6 = vld [vmem:[#allocation14_spill] sm:$0xff] }
 0x239   : > { %3249 = vmatprep.mubr.bf16.mxu0 %v9336_v12  ;;  %v2227_v46 = vmul.f32 %v9363_v50, %v9362_v6 }
 0x23e   : > { %2800 = vmatmul.mubr.bf16.gmra.mxu1 %v9353_v34  ;;  %v9364_v34 = vld [vmem:[#allocation104_spill] sm:$0xff] }
 0x23f   : > { %2807 = vmatprep.mubr.bf16.mxu1 %v9354_v29  ;;  %v9365_v59 = vpack.c.bf16 %v9314_v30, %v9364_v34  ;;  %v9366_v29 = vld [vmem:[#allocation39_spill] sm:$0xff]  ;;  %v9372_v34 = vld [vmem:[#allocation17_spill] sm:$0xff] }
 0x240   : > { %3250 = vmatmul.mubr.bf16.gmra.mxu0 %v9356_v31  ;;  %v5496_v31 = vld [vmem:[#allocation7 + $0x1f0] sm:$0xff]   ;;  %v2262_v45 = vpack.c.bf16 %v2227_v46, %v9366_v29  ;;  %v9376_v46 = vld [vmem:[#allocation51_spill] sm:$0xff] }
 0x241   : > { %3257 = vmatprep.mubr.bf16.mxu0 %v9339_v26  ;;  %v5499_v26 = vld [vmem:[#allocation7 + $0x1e8] sm:$0xff]  }
 0x246   : > { %2808 = vmatmul.mubr.bf16.gmra.mxu1 %v9358_v5  ;;  %v9369_v5 = vpack.c.bf16 %v9367_v40, %v9368_v57  ;;  %v5500_v40 = vld [vmem:[#allocation7 + $0x1a8] sm:$0xff]  }
 0x247   : > { %5277 = vmatprep.mubr.bf16.mxu1 %v9361_v3  ;;  %v9371_v3 = vld [vmem:[#allocation50_spill] sm:$0xff] }
 0x248   : > { %3258 = vmatmul.mubr.bf16.gmra.mxu0 %v9365_v59  ;;  %v2229_v2 = vmul.f32 %v9371_v3, %v9370_v42  ;;  %v9373_v59 = vld [vmem:[#allocation52_spill] sm:$0xff] }
 0x249   : > { %3265 = vmatprep.mubr.bf16.mxu0 %v9344_v18  ;;  %v2231_v30 = vmul.f32 %v9373_v59, %v9372_v34  ;;  %v9374_v18 = vld [vmem:[#allocation107_spill] sm:$0xff] }
 0x24a   : > { %v9375_v55 = vpack.c.bf16 %v9315_v51, %v9374_v18  ;;  %v9380_v18 = vld [vmem:[#allocation29_spill] sm:$0xff]  ;;  %v9381_v51 = vld [vmem:[#allocation19_spill] sm:$0xff] }
 0x24b   : > { %v2268_v12 = vpack.c.bf16 %v2231_v30, %v9378_v43  ;;  %v9385_v30 = vld [vmem:[#allocation13_spill] sm:$0xff] }
 0x24e   : > { %5278 = vmatmul.mubr.bf16.vlgmr.msra.gmra.mxu1 %v9369_v5 }
 0x24f   : > { %5030 = vmatpush3.bf16.msra.mxu1 %v5493_v35  ;;  %5281 = vmatprep.mubr.bf16.mxu1 %v2262_v45  ;;  %v2265_v35 = vpack.c.bf16 %v2229_v2, %v9376_v46  ;;  %v5501_v45 = vld [vmem:[#allocation7 + $0x1e0] sm:$0xff]   ;;  %v9382_v2 = vld [vmem:[#allocation54_spill] sm:$0xff] }
 0x250   : > { %5031 = vmatprep.subr.bf16.mxu1 %v5496_v31  ;;  %3266 = vmatmul.mubr.bf16.gmra.mxu0 %v9375_v55  ;;  %v9377_v31 = vld [vmem:[#allocation12_spill] sm:$0xff]  ;;  %v2233_v55 = vmul.f32 %v9380_v18, %v9379_v61 }
 0x251   : > { %3273 = vmatprep.mubr.bf16.mxu0 %v9349_v11  ;;  %v3508_v5 = vmul.f32 %v9363_v50, %v9377_v31  ;;  %v5503_v11 = vld [vmem:[#allocation7 + $0x1d8] sm:$0xff]   ;;  %v9387_v31 = vld [vmem:[#allocation56_spill] sm:$0xff] }
 0x252   : > { %v5504_v50 = vld [vmem:[#allocation7 + $0x198] sm:$0xff]  }
 0x253   : > { %5032 = vmatpush3.bf16.msra.mxu1 %v5497_v19  ;;  %v3541_v19 = vpack.c.bf16 %v3508_v5, %v9366_v29  ;;  %v3512_v29 = vmul.f32 %v9373_v59, %v9362_v6  ;;  %v7944_v10 = vpop.f32.mrf.mxu0  ;;  %v5508_v6 = vld [vmem:[#allocation7 + $0x188] sm:$0xff]  }
 0x254   : > { %5033 = vmatprep.subr.bf16.mxu1 %v5499_v26  ;;  %v2235_v26 = vmul.f32 %v9382_v2, %v9381_v51 }
 0x255   : > { %v7946_v59 = vpop.f32.mrf.mxu0 }
 0x256   : > { %5282 = vmatmul.mubr.bf16.gmra.mxu1 %v2265_v35  ;;  %v2274_v5 = vpack.c.bf16 %v2235_v26, %v9387_v31  ;;  %v9392_v26 = vld [vmem:[#allocation57_spill] sm:$0xff] }
 0x257   : > { %5285 = vmatprep.mubr.bf16.mxu1 %v2268_v12  ;;  %5034 = vmatpush3.bf16.msra.mxu1 %v5500_v40  ;;  %v3510_v12 = vmul.f32 %v9371_v3, %v9385_v30  ;;  %v9386_v40 = vld [vmem:[#allocation53_spill] sm:$0xff]  ;;  %v9391_v30 = vld [vmem:[#allocation58_spill] sm:$0xff] }
 0x258   : > { %5035 = vmatprep.subr.bf16.mxu1 %v5501_v45  ;;  %3274 = vmatmul.mubr.bf16.gmra.mxu0 %v9384_v41  ;;  %v2271_v35 = vpack.c.bf16 %v2233_v55, %v9386_v40  ;;  %v5505_v45 = vld [vmem:[#allocation7 + $0x1d0] sm:$0xff]   ;;  %v5507_v3 = vld [vmem:[#allocation7 + $0x1c8] sm:$0xff]   ;;  %v3547_v55 = vpack.c.bf16 %v3512_v29, %v9378_v43  ;;  %v3516_v43 = vmul.f32 %v9382_v2, %v9372_v34  ;;  %v7954_v29 = vpop.f32.mrf.mxu0 }
 0x259   : > { %5325 = vmatprep.mubr.bf16.mxu0 %v3541_v19  ;;  %v3544_v41 = vpack.c.bf16 %v3510_v12, %v9376_v46  ;;  %v9389_v19 = vld [vmem:[#allocation55_spill] sm:$0xff]  ;;  %v3514_v46 = vmul.f32 %v9380_v18, %v9370_v42  ;;  %v5509_v12 = vld [vmem:[#allocation7 + $0x1c0] sm:$0xff]   ;;  %v3520_v18 = vmul.f32 %v9391_v30, %v9381_v51 }
 0x25b   : > { %5036 = vmatpush3.bf16.msra.mxu1 %v5502_v62  ;;  %v9388_v62 = vld [vmem:[#allocation20_spill] sm:$0xff] }
 0x25c   : > { %5037 = vmatprep.subr.bf16.mxu1 %v5503_v11  ;;  %v2237_v20 = vmul.f32 %v9389_v19, %v9388_v62  ;;  %v9390_v11 = vld [vmem:[#allocation21_spill] sm:$0xff] }
 0x25d   : > { %v2239_v28 = vmul.f32 %v9391_v30, %v9390_v11 }
 0x25e   : > { %5286 = vmatmul.mubr.bf16.gmra.mxu1 %v2271_v35  ;;  %v9393_v35 = vld [vmem:[#allocation60_spill] sm:$0xff] }
 0x25f   : > { %5289 = vmatprep.mubr.bf16.mxu1 %v2274_v5  ;;  %5038 = vmatpush3.bf16.msra.mxu1 %v5504_v50  ;;  %v2277_v50 = vpack.c.bf16 %v2237_v20, %v9392_v26  ;;  %v5510_v5 = vld [vmem:[#allocation7 + $0x180] sm:$0xff]   ;;  %v3553_v20 = vpack.c.bf16 %v3516_v43, %v9387_v31  ;;  %v3559_v11 = vpack.c.bf16 %v3520_v18, %v9393_v35  ;;  %v9408_v18 = vld [vmem:[#allocation31_spill] sm:$0xff] }
 0x260   : > { %5039 = vmatprep.subr.bf16.mxu1 %v5505_v45  ;;  %5326 = vmatmul.mubr.bf16.vlgmr.msra.gmra.mxu0 %v3544_v41  ;;  %v2280_v45 = vpack.c.bf16 %v2239_v28, %v9393_v35  ;;  %v3550_v41 = vpack.c.bf16 %v3514_v46, %v9386_v40  ;;  %v3518_v28 = vmul.f32 %v9389_v19, %v9379_v61  ;;  %v9395_v31 = vld [vmem:[#allocation64_spill] sm:$0xff] }
 0x261   : > { %5329 = vmatprep.mubr.bf16.mxu0 %v3547_v55  ;;  %v9394_v40 = vpack.c.bf16 %v7636_v56, %v9283_v44  ;;  %v9396_v62 = vpack.c.bf16 %v7640_v22, %v9395_v31  ;;  %v9397_v56 = vpack.c.bf16 %v7656_v14, %v9286_v8  ;;  %v9398_v22 = vld [vmem:[#allocation23_spill] sm:$0xff] }
 0x262   : > { %v3556_v55 = vpack.c.bf16 %v3518_v28, %v9392_v26  ;;  %v9399_v30 = vpack.c.bf16 %v9398_v22, %v9287_v0  ;;  %v9400_v26 = vld [vmem:[#allocation43_spill] sm:$0xff] }
 0x263   : > { %5040 = vmatpush3.bf16.msra.mxu1 %v5506_v25  ;;  %v7956_v25 = vpop.f32.mrf.mxu0 }
 0x264   : > { %5041 = vmatprep.subr.bf16.mxu1 %v5507_v3 }
 0x265   : > { %v7960_v42 = vpop.f32.mrf.mxu0 }
 0x266   : > { %5290 = vmatmul.mubr.bf16.gmra.mxu1 %v2277_v50  ;;  %v9401_v50 = vpack.c.bf16 %v9400_v26, %v9283_v44  ;;  %v9415_v26 = vld [vmem:[#allocation66_spill] sm:$0xff] }
 0x267   : > { %5293 = vmatprep.mubr.bf16.mxu1 %v2280_v45  ;;  %5042 = vmatpush3.bf16.msra.mxu1 %v5508_v6  ;;  %v7962_v34 = vpop.f32.mrf.mxu0  ;;  %v9404_v45 = vpack.c.bf16 %v7687_v17, %v9295_v58 }
 0x268   : > { %5043 = vmatprep.subr.bf16.mxu1 %v5509_v12  ;;  %5330 = vmatmul.mubr.bf16.gmra.mxu0 %v3550_v41  ;;  %v9402_v12 = vld [vmem:[#allocation77_spill] sm:$0xff] }
 0x269   : > { %5333 = vmatprep.mubr.bf16.mxu0 %v3553_v20  ;;  %v7968_v2 = vpop.f32.mrf.mxu0  ;;  %v9403_v43 = vpack.c.bf16 %v9402_v12, %v9395_v31  ;;  %v9406_v20 = vld [vmem:[#allocation59_spill] sm:$0xff]  ;;  %v9417_v12 = vld [vmem:[#allocation76_spill] sm:$0xff] }
 0x26a   : > { %v9407_v28 = vpack.c.bf16 %v9406_v20, %v9286_v8  ;;  %v9412_v8 = vpack.c.bf16 %v7695_v1, %v9295_v58 }
 0x26b   : > { %5044 = vmatpush3.bf16.msra.mxu1 %v5510_v5  ;;  %v7976_v3 = vpop.f32.mrf.mxu0  ;;  %v9405_v5 = vpack.c.bf16 %v7691_v4, %v9296_v36  ;;  %v9410_v4 = vpack.c.bf16 %v7705_v16, %v9297_v54 }
 0x26d   : > { %v7980_v61 = vpop.f32.mrf.mxu0 }
 0x26e   : > { %5294 = vmatmul.mubr.bf16.gmra.mxu1 %v9394_v40  ;;  %v9409_v40 = vpack.c.bf16 %v9408_v18, %v9287_v0  ;;  %v9413_v0 = vpack.c.bf16 %v7701_v37, %v9296_v36  ;;  %v9419_v37 = vpack.c.bf16 %v7709_v33, %v9297_v54  ;;  %v9422_v33 = vpack.c.bf16 %v9265_v47, %v7734_v63 }
 0x26f   : > { %5297 = vmatprep.mubr.bf16.mxu1 %v9396_v62  ;;  %v7982_v51 = vpop.f32.mrf.mxu0  ;;  %v9411_v62 = vld [vmem:[#allocation70_spill] sm:$0xff] }
 0x270   : > { %5334 = vmatmul.mubr.bf16.gmra.mxu0 %v3556_v55 }
 0x271   : > { %5337 = vmatprep.mubr.bf16.mxu0 %v3559_v11  ;;  %v7984_v19 = vpop.f32.mrf.mxu0 }
 0x273   : > { %v7992_v6 = vpop.f32.mrf.mxu0 }
 0x275   : > { %v7994_v46 = vpop.f32.mrf.mxu0 }
 0x276   : > { %5298 = vmatmul.mubr.bf16.gmra.mxu1 %v9397_v56 }
 0x277   : > { %5301 = vmatprep.mubr.bf16.mxu1 %v9399_v30  ;;  %v8002_v35 = vpop.f32.mrf.mxu0  ;;  %v9414_v30 = vld [vmem:[#allocation69_spill] sm:$0xff] }
 0x278   : > { %5338 = vmatmul.mubr.bf16.gmra.mxu0 %v9401_v50  ;;  %v9416_v50 = vpack.c.bf16 %v9414_v30, %v9415_v26 }
 0x279   : > { %5341 = vmatprep.mubr.bf16.mxu0 %v9403_v43  ;;  %v8004_v14 = vpop.f32.mrf.mxu0  ;;  %v9418_v43 = vld [vmem:[#allocation22_spill] sm:$0xff] }
 0x27b   : > { %v8012_v41 = vpop.f32.mrf.mxu0 }
 0x27d   : > { %v8014_v44 = vpop.f32.mrf.mxu0 }
 0x27e   : > { %5302 = vmatmul.mubr.bf16.gmra.mxu1 %v9404_v45  ;;  %v2027_v45 = vmul.f32 0.0, %v9418_v43 }
 0x27f   : > { %5305 = vmatprep.mubr.bf16.mxu1 %v9405_v5  ;;  %v8022_v31 = vpop.f32.mrf.mxu0 }
 0x280   : > { %5342 = vmatmul.mubr.bf16.gmra.mxu0 %v9407_v28  ;;  %v9420_v28 = vpack.c.bf16 %v7720_v38, %v7259_v48 }
 0x281   : > { %5345 = vmatprep.mubr.bf16.mxu0 %v9409_v40  ;;  %v8024_v17 = vpop.f32.mrf.mxu0  ;;  %v3537_v40 = vmul.f32 0.0, %v9368_v57 }
 0x283   : > { %v8030_v55 = vpop.f32.mrf.mxu0 }
 0x285   : > { %v8032_v11 = vpop.f32.mrf.mxu0  ;;  %v4773_v16 = vpop.f32.mrf.mxu1 }
 0x286   : > { %5306 = vmatmul.mubr.bf16.gmra.mxu1 %v9410_v4 }
 0x287   : > { %3812 = vmatprep.mubr.bf16.mxu1 %v9411_v62  ;;  %v8040_v56 = vpop.f32.mrf.mxu0  ;;  %v4774_v1 = vpop.f32.mrf.mxu1 }
 0x288   : > { %5346 = vmatmul.mubr.bf16.gmra.mxu0 %v9412_v8  ;;  %v4775_v58 = vadd.f32 %v4774_v1, %v4773_v16  ;;  %v9421_v8 = vld [vmem:[#allocation45_spill] sm:$0xff] }
 0x289   : > { %5349 = vmatprep.mubr.bf16.mxu0 %v9413_v0  ;;  %v8042_v22 = vpop.f32.mrf.mxu0  ;;  %v4776_v36 = vpop.f32.mrf.mxu1  ;;  %v3538_v0 = vmul.f32 %v9421_v8, %v2027_v45 }
 0x28a   : > { %v2851_v18 = vadd.f32 %v4775_v58, %v7946_v59 }
 0x28b   : > { %v8049_v5 = vpop.f32.mrf.mxu0  ;;  %v4777_v62 = vpop.f32.mrf.mxu1  ;;  %v3586_v54 = vpack.c.bf16 %v3538_v0, %v3537_v40 }
 0x28c   : > { %v4778_v16 = vadd.f32 %v4777_v62, %v4776_v36 }
 0x28d   : > { %v8051_v20 = vpop.f32.mrf.mxu0  ;;  %v4779_v26 = vpop.f32.mrf.mxu1 }
 0x28e   : > { %3813 = vmatmul.mubr.bf16.vlgmr.msra.gmra.mxu1 %v9416_v50  ;;  %v2854_v48 = vadd.f32 %v4778_v16, %v7956_v25 }
 0x28f   : > { %3820 = vmatprep.mubr.bf16.mxu1 %v9417_v12  ;;  %v8061_v4 = vpop.f32.mrf.mxu0  ;;  %v4780_v57 = vpop.f32.mrf.mxu1 }
 0x290   : > { %5350 = vmatmul.mubr.bf16.gmra.mxu0 %v9419_v37  ;;  %v4781_v59 = vadd.f32 %v4780_v57, %v4779_v26 }
 0x291   : > { %5353 = vmatprep.mubr.bf16.mxu0 %v9420_v28  ;;  %v8064_v30 = vpop.f32.mrf.mxu0  ;;  %v4782_v12 = vpop.f32.mrf.mxu1 }
 0x292   : > { %v2859_v43 = vadd.f32 %v7944_v10, %v4781_v59 }
 0x293   : > { %v8071_v38 = vpop.f32.mrf.mxu0  ;;  %v4783_v1 = vpop.f32.mrf.mxu1 }
 0x294   : > { %v4784_v47 = vadd.f32 %v4783_v1, %v4782_v12 }
 0x295   : > { %v8073_v50 = vpop.f32.mrf.mxu0  ;;  %v4785_v25 = vpop.f32.mrf.mxu1 }
 0x296   : > { %3821 = vmatmul.mubr.bf16.gmra.mxu1 %v9422_v33  ;;  %v2862_v58 = vadd.f32 %v7954_v29, %v4784_v47 }
 0x297   : > { %3828 = vmatprep.mubr.bf16.mxu1 %v7193_v49  ;;  %v8076_v45 = vpop.f32.mrf.mxu0  ;;  %v9423_v49 = vpack.c.bf16 %v7209_v23, %v7738_v27  ;;  %v4786_v36 = vpop.f32.mrf.mxu1  ;;  %v9424_v23 = vpack.c.bf16 %v7503_v53, %v7742_v52 }
 0x298   : > { %5354 = vmatmul.mubr.bf16.gmra.mxu0 %v3586_v54  ;;  %v4787_v28 = vadd.f32 %v4786_v36, %v4785_v25 }
 0x299   : > { %v8078_v63 = vpop.f32.mrf.mxu0  ;;  %v4788_v40 = vpop.f32.mrf.mxu1 }
 0x29a   : > { %v2867_v62 = vadd.f32 %v4787_v28, %v7962_v34 }
 0x29b   : > { %v8085_v37 = vpop.f32.mrf.mxu0  ;;  %v4789_v0 = vpop.f32.mrf.mxu1 }
 0x29c   : > { %v4790_v26 = vadd.f32 %v4789_v0, %v4788_v40 }
 0x29d   : > { %v4909_v10 = vpop.f32.mrf.mxu0 }
 0x29e   : > { %3829 = vmatmul.mubr.bf16.gmra.mxu1 %v9423_v49  ;;  %v2870_v27 = vadd.f32 %v4790_v26, %v7976_v3 }
 0x29f   : > { %3836 = vmatprep.mubr.bf16.mxu1 %v9323_v15  ;;  %v4910_v8 = vpop.f32.mrf.mxu0 }
 0x2a0   : > { %v4911_v16 = vadd.f32 %v4910_v8, %v4909_v10 }
 0x2a1   : > { %v4912_v33 = vpop.f32.mrf.mxu0 }
 0x2a2   : > { %v8093_v15 = vadd.f32 %v4911_v16, %v2851_v18 }
 0x2a3   : > { %v4913_v29 = vpop.f32.mrf.mxu0 }
 0x2a4   : > { %v4914_v59 = vadd.f32 %v4913_v29, %v4912_v33 }
 0x2a6   : > { %v4791_v54 = vpop.f32.mrf.mxu1  ;;  %3837 = vmatmul.mubr.bf16.gmra.mxu1 %v9424_v23  ;;  %v8096_v25 = vadd.f32 %v4914_v59, %v2854_v48 }
 0x2a7   : > { %3844 = vmatprep.mubr.bf16.mxu1 %v9325_v60  ;;  %v9425_v60 = vpack.c.bf16 %v7607_v39, %v7747_v13 }
 0x2a8   : > { %v4792_v57 = vpop.f32.mrf.mxu1  ;;  %v4915_v12 = vpop.f32.mrf.mxu0 }
 0x2a9   : > { %v4793_v34 = vadd.f32 %v4792_v57, %v4791_v54 }
 0x2aa   : > { %v4794_v1 = vpop.f32.mrf.mxu1  ;;  %v4916_v49 = vpop.f32.mrf.mxu0 }
 0x2ab   : > { %v2875_v47 = vadd.f32 %v7960_v42, %v4793_v34  ;;  %v4917_v53 = vadd.f32 %v4916_v49, %v4915_v12 }
 0x2ac   : > { %v4795_v36 = vpop.f32.mrf.mxu1  ;;  %v4918_v28 = vpop.f32.mrf.mxu0 }
 0x2ad   : > { %v4796_v52 = vadd.f32 %v4795_v36, %v4794_v1  ;;  %v8103_v10 = vadd.f32 %v4917_v53, %v2859_v43 }
 0x2ae   : > { %v4797_v3 = vpop.f32.mrf.mxu1  ;;  %3845 = vmatmul.mubr.bf16.gmra.mxu1 %v9425_v60  ;;  %v4919_v40 = vpop.f32.mrf.mxu0 }
 0x2af   : > { %v2878_v18 = vadd.f32 %v7968_v2, %v4796_v52  ;;  %3852 = vmatprep.mubr.bf16.mxu1 %v7611_v21  ;;  %v4920_v48 = vadd.f32 %v4919_v40, %v4918_v28  ;;  %v9426_v21 = vpack.c.bf16 %v7615_v32, %v7751_v9 }
 0x2b0   : > { %v4798_v42 = vpop.f32.mrf.mxu1  ;;  %v4921_v0 = vpop.f32.mrf.mxu0 }
 0x2b1   : > { %v4799_v8 = vadd.f32 %v4798_v42, %v4797_v3  ;;  %v8106_v33 = vadd.f32 %v4920_v48, %v2862_v58 }
 0x2b2   : > { %v4800_v16 = vpop.f32.mrf.mxu1  ;;  %v4922_v54 = vpop.f32.mrf.mxu0 }
 0x2b3   : > { %v2883_v26 = vadd.f32 %v4799_v8, %v7982_v51  ;;  %v4923_v39 = vadd.f32 %v4922_v54, %v4921_v0 }
 0x2b4   : > { %v4801_v23 = vpop.f32.mrf.mxu1  ;;  %v4924_v29 = vpop.f32.mrf.mxu0 }
 0x2b5   : > { %v4802_v13 = vadd.f32 %v4801_v23, %v4800_v16  ;;  %v8113_v57 = vadd.f32 %v4923_v39, %v2867_v62 }
 0x2b6   : > { %v4803_v2 = vpop.f32.mrf.mxu1  ;;  %3853 = vmatmul.mubr.bf16.gmra.mxu1 %v9426_v21  ;;  %v4925_v59 = vpop.f32.mrf.mxu0 }
 0x2b7   : > { %v2886_v43 = vadd.f32 %v4802_v13, %v7992_v6  ;;  %3860 = vmatprep.mubr.bf16.mxu1 %v9311_v7  ;;  %v4926_v58 = vadd.f32 %v4925_v59, %v4924_v29  ;;  %v9427_v6 = vld [vmem:[#allocation62_spill] sm:$0xff]  ;;  %v9429_v7 = vld [vmem:[#allocation80_spill] sm:$0xff] }
 0x2b8   : > { %v4804_v51 = vpop.f32.mrf.mxu1  ;;  %v4927_v12 = vpop.f32.mrf.mxu0  ;;  %v9428_v3 = vpack.c.bf16 %v7628_v24, %v9427_v6  ;;  %v9430_v24 = vld [vmem:[#allocation81_spill] sm:$0xff] }
 0x2b9   : > { %v4805_v34 = vadd.f32 %v4804_v51, %v4803_v2  ;;  %v8115_v49 = vadd.f32 %v4926_v58, %v2870_v27  ;;  %v9431_v2 = vld [vmem:[#allocation33_spill] sm:$0xff] }
 0x2ba   : > { %v4806_v1 = vpop.f32.mrf.mxu1  ;;  %v4928_v36 = vpop.f32.mrf.mxu0  ;;  %v9432_v21 = vpack.c.bf16 %v9430_v24, %v9431_v2 }
 0x2bb   : > { %v4929_v52 = vadd.f32 %v4928_v36, %v4927_v12 }
 0x2bc   : > { %v4807_v53 = vpop.f32.mrf.mxu1  ;;  %v4930_v32 = vpop.f32.mrf.mxu0 }
 0x2bd   : > { %v4808_v28 = vadd.f32 %v4807_v53, %v4806_v1  ;;  %v8121_v62 = vadd.f32 %v4929_v52, %v2875_v47  ;;  %v9433_v47 = vld [vmem:[#allocation63_spill] sm:$0xff] }
 0x2be   : > { %v4809_v9 = vpop.f32.mrf.mxu1  ;;  %3861 = vmatmul.mubr.bf16.gmra.mxu1 %v9428_v3  ;;  %v4931_v60 = vpop.f32.mrf.mxu0 }
 0x2bf   : > { %3868 = vmatprep.mubr.bf16.mxu1 %v9429_v7  ;;  %v4932_v42 = vadd.f32 %v4931_v60, %v4930_v32 }
 0x2c0   : > { %v4810_v40 = vpop.f32.mrf.mxu1  ;;  %v4933_v27 = vpop.f32.mrf.mxu0 }
 0x2c1   : > { %v4811_v48 = vadd.f32 %v4810_v40, %v4809_v9  ;;  %v8123_v0 = vadd.f32 %v4932_v42, %v2878_v18  ;;  %v2891_v9 = vadd.f32 %v7980_v61, %v4805_v34  ;;  %v9434_v40 = vld [vmem:[#allocation83_spill] sm:$0xff] }
 0x2c2   : > { %v4812_v8 = vpop.f32.mrf.mxu1  ;;  %v4934_v16 = vpop.f32.mrf.mxu0  ;;  %v9435_v42 = vld [vmem:[#allocation15_spill] sm:$0xff] }
 0x2c3   : > { %v4935_v23 = vadd.f32 %v4934_v16, %v4933_v27  ;;  %v9437_v27 = vld [vmem:[#allocation84_spill] sm:$0xff] }
 0x2c4   : > { %v4813_v54 = vpop.f32.mrf.mxu1  ;;  %v4936_v13 = vpop.f32.mrf.mxu0 }
 0x2c5   : > { %v4814_v39 = vadd.f32 %v4813_v54, %v4812_v8  ;;  %v8129_v59 = vadd.f32 %v4935_v23, %v2883_v26  ;;  %v9436_v26 = vpack.c.bf16 %v9434_v40, %v9435_v42 }
 0x2c6   : > { %v4815_v29 = vpop.f32.mrf.mxu1  ;;  %3869 = vmatmul.mubr.bf16.gmra.mxu1 %v9432_v21  ;;  %v4937_v51 = vpop.f32.mrf.mxu0  ;;  %v2899_v21 = vadd.f32 %v4811_v48, %v8002_v35 }
 0x2c7   : > { %3876 = vmatprep.mubr.bf16.mxu1 %v9433_v47  ;;  %v4938_v12 = vadd.f32 %v4937_v51, %v4936_v13 }
 0x2c8   : > { %v4816_v58 = vpop.f32.mrf.mxu1  ;;  %v4939_v18 = vpop.f32.mrf.mxu0 }
 0x2c9   : > { %v4817_v1 = vadd.f32 %v4816_v58, %v4815_v29  ;;  %v8131_v53 = vadd.f32 %v4938_v12, %v2886_v43  ;;  %v2894_v43 = vadd.f32 %v7984_v19, %v4808_v28 }
 0x2ca   : > { %v4818_v36 = vpop.f32.mrf.mxu1  ;;  %v4940_v52 = vpop.f32.mrf.mxu0 }
 0x2cb   : > { %v4941_v6 = vadd.f32 %v4940_v52, %v4939_v18  ;;  %v9438_v18 = vld [vmem:[#allocation86_spill] sm:$0xff] }
 0x2cc   : > { %v4819_v32 = vpop.f32.mrf.mxu1  ;;  %v4942_v7 = vpop.f32.mrf.mxu0 }
 0x2cd   : > { %v4820_v3 = vadd.f32 %v4819_v32, %v4818_v36  ;;  %v8138_v8 = vadd.f32 %v4941_v6, %v2891_v9  ;;  %v9439_v36 = vld [vmem:[#allocation34_spill] sm:$0xff]  ;;  %v9441_v32 = vld [vmem:[#allocation87_spill] sm:$0xff]  ;;  %v2902_v6 = vadd.f32 %v4814_v39, %v8012_v41 }
 0x2ce   : > { %v4821_v60 = vpop.f32.mrf.mxu1  ;;  %3877 = vmatmul.mubr.bf16.gmra.mxu1 %v9436_v26  ;;  %v4943_v16 = vpop.f32.mrf.mxu0  ;;  %v9440_v52 = vpack.c.bf16 %v9438_v18, %v9439_v36 }
 0x2cf   : > { %3884 = vmatprep.mubr.bf16.mxu1 %v9437_v27  ;;  %v4944_v23 = vadd.f32 %v4943_v16, %v4942_v7  ;;  %v2907_v27 = vadd.f32 %v7994_v46, %v4817_v1 }
 0x2d0   : > { %v4822_v54 = vpop.f32.mrf.mxu1  ;;  %v4945_v29 = vpop.f32.mrf.mxu0 }
 0x2d1   : > { %v4823_v13 = vadd.f32 %v4822_v54, %v4821_v60  ;;  %v8141_v34 = vadd.f32 %v4944_v23, %v2894_v43 }
 0x2d2   : > { %v4824_v61 = vpop.f32.mrf.mxu1  ;;  %v4946_v24 = vpop.f32.mrf.mxu0 }
 0x2d3   : > { %v4947_v47 = vadd.f32 %v4946_v24, %v4945_v29  ;;  %v9442_v29 = vld [vmem:[#allocation89_spill] sm:$0xff] }
 0x2d4   : > { %v4825_v2 = vpop.f32.mrf.mxu1  ;;  %v4948_v58 = vpop.f32.mrf.mxu0 }
 0x2d5   : > { %v4826_v51 = vadd.f32 %v4825_v2, %v4824_v61  ;;  %v8148_v19 = vadd.f32 %v4947_v47, %v2899_v21  ;;  %v9443_v61 = vld [vmem:[#allocation67_spill] sm:$0xff]  ;;  %v9445_v2 = vld [vmem:[#allocation90_spill] sm:$0xff]  ;;  %v2910_v47 = vadd.f32 %v8004_v14, %v4820_v3 }
 0x2d6   : > { %v4827_v12 = vpop.f32.mrf.mxu1  ;;  %3885 = vmatmul.mubr.bf16.gmra.mxu1 %v9440_v52  ;;  %v4949_v28 = vpop.f32.mrf.mxu0  ;;  %v9444_v24 = vpack.c.bf16 %v9442_v29, %v9443_v61 }
 0x2d7   : > { %3892 = vmatprep.mubr.bf16.mxu1 %v9441_v32  ;;  %v4950_v7 = vadd.f32 %v4949_v28, %v4948_v58  ;;  %v2915_v32 = vadd.f32 %v4823_v13, %v8022_v31 }
 0x2d8   : > { %v4828_v9 = vpop.f32.mrf.mxu1  ;;  %v4951_v40 = vpop.f32.mrf.mxu0 }
 0x2d9   : > { %v4829_v60 = vadd.f32 %v4828_v9, %v4827_v12  ;;  %v8151_v48 = vadd.f32 %v4950_v7, %v2902_v6 }
 0x2da   : > { %v4830_v35 = vpop.f32.mrf.mxu1  ;;  %v4952_v42 = vpop.f32.mrf.mxu0 }
 0x2db   : > { %v4953_v16 = vadd.f32 %v4952_v42, %v4951_v40  ;;  %v9446_v40 = vld [vmem:[#allocation91_spill] sm:$0xff] }
 0x2dc   : > { %v4831_v26 = vpop.f32.mrf.mxu1  ;;  %v4954_v43 = vpop.f32.mrf.mxu0 }
 0x2dd   : > { %v4832_v54 = vadd.f32 %v4831_v26, %v4830_v35  ;;  %v8158_v41 = vadd.f32 %v4953_v16, %v2907_v27  ;;  %v9447_v35 = vld [vmem:[#allocation61_spill] sm:$0xff]  ;;  %v9449_v26 = vld [vmem:[#allocation92_spill] sm:$0xff]  ;;  %v2918_v16 = vadd.f32 %v4826_v51, %v8030_v55 }
 0x2de   : > { %v4833_v23 = vpop.f32.mrf.mxu1  ;;  %3893 = vmatmul.mubr.bf16.gmra.mxu1 %v9444_v24  ;;  %v4955_v39 = vpop.f32.mrf.mxu0  ;;  %v9448_v42 = vpack.c.bf16 %v9446_v40, %v9447_v35 }
 0x2df   : > { %3900 = vmatprep.mubr.bf16.mxu1 %v9445_v2  ;;  %v4956_v58 = vadd.f32 %v4955_v39, %v4954_v43  ;;  %v2923_v2 = vadd.f32 %v8014_v44, %v4829_v60 }
 0x2e0   : > { %v4834_v21 = vpop.f32.mrf.mxu1  ;;  %v4957_v18 = vpop.f32.mrf.mxu0 }
 0x2e1   : > { %v4835_v12 = vadd.f32 %v4834_v21, %v4833_v23  ;;  %v8161_v1 = vadd.f32 %v4956_v58, %v2910_v47 }
 0x2e2   : > { %v4836_v46 = vpop.f32.mrf.mxu1  ;;  %v4958_v36 = vpop.f32.mrf.mxu0 }
 0x2e3   : > { %v4959_v28 = vadd.f32 %v4958_v36, %v4957_v18  ;;  %v9450_v18 = vld [vmem:[#allocation98_spill] sm:$0xff] }
 0x2e4   : > { %v4837_v52 = vpop.f32.mrf.mxu1  ;;  %v4960_v6 = vpop.f32.mrf.mxu0 }
 0x2e5   : > { %v4838_v9 = vadd.f32 %v4837_v52, %v4836_v46  ;;  %v8168_v14 = vadd.f32 %v4959_v28, %v2915_v32  ;;  %v9451_v46 = vld [vmem:[#allocation65_spill] sm:$0xff]  ;;  %v9453_v52 = vld [vmem:[#allocation100_spill] sm:$0xff]  ;;  %v2926_v28 = vadd.f32 %v8024_v17, %v4832_v54 }
 0x2e6   : > { %v4839_v7 = vpop.f32.mrf.mxu1  ;;  %3901 = vmatmul.mubr.bf16.gmra.mxu1 %v9448_v42  ;;  %v4961_v3 = vpop.f32.mrf.mxu0  ;;  %v9452_v36 = vpack.c.bf16 %v9450_v18, %v9451_v46  ;;  %v9458_v18 = vld [vmem:[#allocation38_spill] sm:$0xff] }
 0x2e7   : > { %3908 = vmatprep.mubr.bf16.mxu1 %v9449_v26  ;;  %v4962_v43 = vadd.f32 %v4961_v3, %v4960_v6  ;;  %v2931_v26 = vadd.f32 %v4835_v12, %v8040_v56  ;;  %v3506_v56 = vmul.f32 0.0, %v9458_v18 }
 0x2e8   : > { %v4840_v27 = vpop.f32.mrf.mxu1  ;;  %v4963_v29 = vpop.f32.mrf.mxu0 }
 0x2e9   : > { %v4841_v23 = vadd.f32 %v4840_v27, %v4839_v7  ;;  %v8171_v13 = vadd.f32 %v4962_v43, %v2918_v16 }
 0x2ea   : > { %v4842_v31 = vpop.f32.mrf.mxu1  ;;  %v4964_v61 = vpop.f32.mrf.mxu0 }
 0x2eb   : > { %v4965_v39 = vadd.f32 %v4964_v61, %v4963_v29  ;;  %v9454_v29 = vld [vmem:[#allocation102_spill] sm:$0xff] }
 0x2ec   : > { %v4843_v24 = vpop.f32.mrf.mxu1  ;;  %v4966_v47 = vpop.f32.mrf.mxu0 }
 0x2ed   : > { %v4844_v21 = vadd.f32 %v4843_v24, %v4842_v31  ;;  %v8178_v55 = vadd.f32 %v4965_v39, %v2923_v2  ;;  %v9455_v31 = vld [vmem:[#allocation42_spill] sm:$0xff]  ;;  %v9457_v24 = vld [vmem:[#allocation103_spill] sm:$0xff]  ;;  %v2934_v39 = vadd.f32 %v4838_v9, %v8049_v5 }
 0x2ee   : > { %v4845_v58 = vpop.f32.mrf.mxu1  ;;  %3909 = vmatmul.mubr.bf16.gmra.mxu1 %v9452_v36  ;;  %v4967_v51 = vpop.f32.mrf.mxu0  ;;  %v9456_v61 = vpack.c.bf16 %v9454_v29, %v9455_v31  ;;  %v9459_v36 = vld [vmem:[#allocation37_spill] sm:$0xff]  ;;  %v9460_v5 = vld [vmem:[#allocation79_spill] sm:$0xff] }
 0x2ef   : > { %3916 = vmatprep.mubr.bf16.mxu1 %v9453_v52  ;;  %v4968_v6 = vadd.f32 %v4967_v51, %v4966_v47  ;;  %v3505_v52 = vmul.f32 0.0, %v9459_v36  ;;  %v9461_v9 = vld [vmem:[#allocation35_spill] sm:$0xff]  ;;  %v2942_v31 = vadd.f32 %v8042_v22, %v4844_v21  ;;  %v9463_v36 = vld [vmem:[#allocation32_spill] sm:$0xff] }
 0x2f0   : > { %v4846_v32 = vpop.f32.mrf.mxu1  ;;  %v4969_v40 = vpop.f32.mrf.mxu0 }
 0x2f1   : > { %v4847_v7 = vadd.f32 %v4846_v32, %v4845_v58  ;;  %v8181_v60 = vadd.f32 %v4968_v6, %v2926_v28  ;;  %v2939_v6 = vadd.f32 %v8032_v11, %v4841_v23 }
 0x2f2   : > { %v4848_v44 = vpop.f32.mrf.mxu1  ;;  %v4970_v35 = vpop.f32.mrf.mxu0 }
 0x2f3   : > { %v4971_v3 = vadd.f32 %v4970_v35, %v4969_v40  ;;  %v3585_v35 = vpack.c.bf16 %v3506_v56, %v3505_v52  ;;  %v9464_v52 = vld [vmem:[#allocation68_spill] sm:$0xff] }
 0x2f4   : > { %v4849_v42 = vpop.f32.mrf.mxu1  ;;  %v4972_v16 = vpop.f32.mrf.mxu0 }
 0x2f5   : > { %v4850_v27 = vadd.f32 %v4849_v42, %v4848_v44  ;;  %v8188_v17 = vadd.f32 %v4971_v3, %v2931_v26  ;;  %v9462_v3 = vpack.c.bf16 %v9460_v5, %v9461_v9 }
 0x2f6   : > { %v4851_v43 = vpop.f32.mrf.mxu1  ;;  %3917 = vmatmul.mubr.bf16.gmra.mxu1 %v9456_v61  ;;  %v4973_v54 = vpop.f32.mrf.mxu0 }
 0x2f7   : > { %3924 = vmatprep.mubr.bf16.mxu1 %v9457_v24  ;;  %v4974_v47 = vadd.f32 %v4973_v54, %v4972_v16 }
 0x2f8   : > { %v4852_v2 = vpop.f32.mrf.mxu1  ;;  %v4975_v12 = vpop.f32.mrf.mxu0 }
 0x2f9   : > { %v4853_v58 = vadd.f32 %v4852_v2, %v4851_v43  ;;  %v8193_v51 = vadd.f32 %v4974_v47, %v2934_v39  ;;  %v2947_v47 = vadd.f32 %v4847_v7, %v8061_v4 }
 0x2fa   : > { %v4854_v46 = vpop.f32.mrf.mxu1  ;;  %v4976_v32 = vpop.f32.mrf.mxu0 }
 0x2fb   : > { %v4977_v40 = vadd.f32 %v4976_v32, %v4975_v12  ;;  %v9465_v32 = vpack.c.bf16 %v9463_v36, %v9464_v52  ;;  %v2955_v9 = vadd.f32 %v8051_v20, %v4853_v58 }
 0x2fc   : > { %v4855_v28 = vpop.f32.mrf.mxu1  ;;  %v4978_v42 = vpop.f32.mrf.mxu0 }
 0x2fd   : > { %v4856_v44 = vadd.f32 %v4855_v28, %v4854_v46  ;;  %v8199_v16 = vadd.f32 %v4977_v40, %v2939_v6  ;;  %v2950_v6 = vadd.f32 %v4850_v27, %v8071_v38 }
 0x2fe   : > { %v4857_v26 = vpop.f32.mrf.mxu1  ;;  %3925 = vmatmul.mubr.bf16.gmra.mxu1 %v9462_v3  ;;  %v4979_v43 = vpop.f32.mrf.mxu0 }
 0x2ff   : > { %3932 = vmatprep.mubr.bf16.mxu1 %v3585_v35  ;;  %v4980_v61 = vadd.f32 %v4979_v43, %v4978_v42 }
 0x300   : > { %v4858_v29 = vpop.f32.mrf.mxu1  ;;  %v4981_v54 = vpop.f32.mrf.mxu0 }
 0x301   : > { %v4859_v24 = vadd.f32 %v4858_v29, %v4857_v26  ;;  %v8202_v23 = vadd.f32 %v4980_v61, %v2942_v31 }
 0x302   : > { %v4860_v11 = vpop.f32.mrf.mxu1  ;;  %v4982_v2 = vpop.f32.mrf.mxu0 }
 0x303   : > { %v4983_v18 = vadd.f32 %v4982_v2, %v4981_v54 }
 0x304   : > { %v4861_v39 = vpop.f32.mrf.mxu1  ;;  %v4984_v12 = vpop.f32.mrf.mxu0 }
 0x305   : > { %v4862_v56 = vadd.f32 %v4861_v39, %v4860_v11  ;;  %v8208_v28 = vadd.f32 %v4983_v18, %v2947_v47  ;;  %v2958_v11 = vadd.f32 %v8064_v30, %v4856_v44 }
 0x306   : > { %v4863_v46 = vpop.f32.mrf.mxu1  ;;  %3933 = vmatmul.mubr.bf16.gmra.mxu1 %v9465_v32  ;;  %v4985_v22 = vpop.f32.mrf.mxu0 }
 0x307   : > { %v4986_v40 = vadd.f32 %v4985_v22, %v4984_v12 }
 0x308   : > { %v4864_v21 = vpop.f32.mrf.mxu1  ;;  %v4987_v42 = vpop.f32.mrf.mxu0 }
 0x309   : > { %v4865_v35 = vadd.f32 %v4864_v21, %v4863_v46  ;;  %v8211_v5 = vadd.f32 %v4986_v40, %v2950_v6  ;;  %v2963_v46 = vadd.f32 %v4859_v24, %v8076_v45  ;;  %v2966_v21 = vadd.f32 %v4862_v56, %v8085_v37 }
 0x30a   : > { %v4866_v26 = vpop.f32.mrf.mxu1  ;;  %v4988_v4 = vpop.f32.mrf.mxu0 }
 0x30b   : > { %v4989_v3 = vadd.f32 %v4988_v4, %v4987_v42 }
 0x30c   : > { %v4867_v7 = vpop.f32.mrf.mxu1  ;;  %v4990_v29 = vpop.f32.mrf.mxu0 }
 0x30d   : > { %v4868_v43 = vadd.f32 %v4867_v7, %v4866_v26  ;;  %v8217_v54 = vadd.f32 %v4989_v3, %v2955_v9 }
 0x30e   : > { %v5279_v31 = vpop.f32.mrf.mxu1  ;;  %v4991_v38 = vpop.f32.mrf.mxu0 }
 0x30f   : > { %v8215_v61 = vadd.f32 %v5279_v31, %v8103_v10  ;;  %v4992_v2 = vadd.f32 %v4991_v38, %v4990_v29 }
 0x310   : > { %v3316_v27 = vpop.f32.mrf.mxu1  ;;  %v4993_v47 = vpop.f32.mrf.mxu0 }
 0x311   : > { %v8221_v39 = vadd.f32 %v3316_v27, %v8093_v15  ;;  %v8226_v58 = vadd.f32 %v4992_v2, %v2958_v11 }
 0x312   : > { %v5280_v18 = vpop.f32.mrf.mxu1  ;;  %v4994_v12 = vpop.f32.mrf.mxu0 }
 0x313   : > { %v8224_v20 = vadd.f32 %v5280_v18, %v8106_v33  ;;  %v4995_v36 = vadd.f32 %v4994_v12, %v4993_v47 }
 0x314   : > { %v3319_v10 = vpop.f32.mrf.mxu1  ;;  %v4996_v30 = vpop.f32.mrf.mxu0 }
 0x315   : > { %v8230_v52 = vadd.f32 %v3319_v10, %v8096_v25  ;;  %v8235_v32 = vadd.f32 %v4995_v36, %v2963_v46 }
 0x316   : > { %v5283_v44 = vpop.f32.mrf.mxu1  ;;  %v4997_v22 = vpop.f32.mrf.mxu0 }
 0x317   : > { %v8233_v15 = vadd.f32 %v5283_v44, %v8121_v62  ;;  %v4998_v6 = vadd.f32 %v4997_v22, %v4996_v30  ;;  %v2971_v62 = vadd.f32 %v8073_v50, %v4865_v35 }
 0x318   : > { %v3332_v33 = vpop.f32.mrf.mxu1  ;;  %v4999_v45 = vpop.f32.mrf.mxu0 }
 0x319   : > { %v8239_v40 = vadd.f32 %v3332_v33, %v8113_v57  ;;  %v3271_v42 = vadd.f32 %v4998_v6, %v2966_v21 }
 0x31a   : > { %v5284_v24 = vpop.f32.mrf.mxu1  ;;  %v5000_v26 = vpop.f32.mrf.mxu0 }
 0x31b   : > { %v8242_v25 = vadd.f32 %v5284_v24, %v8123_v0  ;;  %v5001_v7 = vadd.f32 %v5000_v26, %v4999_v45  ;;  %v2974_v0 = vadd.f32 %v8078_v63, %v4868_v43 }
 0x31c   : > { %v3335_v4 = vpop.f32.mrf.mxu1  ;;  %v5002_v3 = vpop.f32.mrf.mxu0 }
 0x31d   : > { %v8246_v9 = vadd.f32 %v3335_v4, %v8115_v49  ;;  %v3276_v57 = vadd.f32 %v5001_v7, %v2971_v62 }
 0x31e   : > { %v5287_v37 = vpop.f32.mrf.mxu1  ;;  %v5003_v29 = vpop.f32.mrf.mxu0 }
 0x31f   : > { %v8249_v56 = vadd.f32 %v5287_v37, %v8138_v8  ;;  %v5004_v38 = vadd.f32 %v5003_v29, %v5002_v3 }
 0x320   : > { %v3348_v31 = vpop.f32.mrf.mxu1 }
 0x321   : > { %v8253_v27 = vadd.f32 %v3348_v31, %v8129_v59  ;;  %v3279_v49 = vadd.f32 %v5004_v38, %v2974_v0 }
 0x322   : > { %v5288_v11 = vpop.f32.mrf.mxu1 }
 0x323   : > { %v8256_v50 = vadd.f32 %v5288_v11, %v8141_v34 }
 0x324   : > { %v3351_v35 = vpop.f32.mrf.mxu1 }
 0x325   : > { %v8259_v2 = vadd.f32 %v3351_v35, %v8131_v53 }
 0x326   : > { %v5291_v8 = vpop.f32.mrf.mxu1 }
 0x327   : > { %v8262_v47 = vadd.f32 %v5291_v8, %v8158_v41 }
 0x328   : > { %v3364_v18 = vpop.f32.mrf.mxu1 }
 0x329   : > { %v8265_v63 = vadd.f32 %v3364_v18, %v8148_v19 }
 0x32a   : > { %v5292_v43 = vpop.f32.mrf.mxu1 }
 0x32b   : > { %v8268_v59 = vadd.f32 %v5292_v43, %v8161_v1 }
 0x32c   : > { %v3367_v12 = vpop.f32.mrf.mxu1 }
 0x32d   : > { %v8271_v34 = vadd.f32 %v3367_v12, %v8151_v48 }
 0x32e   : > { %v5295_v10 = vpop.f32.mrf.mxu1 }
 0x32f   : > { %v8274_v53 = vadd.f32 %v5295_v10, %v8178_v55 }
 0x330   : > { %v3380_v46 = vpop.f32.mrf.mxu1 }
 0x331   : > { %v8277_v41 = vadd.f32 %v3380_v46, %v8168_v14 }
 0x332   : > { %v5296_v36 = vpop.f32.mrf.mxu1 }
 0x333   : > { %v8280_v19 = vadd.f32 %v5296_v36, %v8181_v60 }
 0x334   : > { %v3383_v30 = vpop.f32.mrf.mxu1 }
 0x335   : > { %v8283_v1 = vadd.f32 %v3383_v30, %v8171_v13 }
 0x336   : > { %v5299_v44 = vpop.f32.mrf.mxu1 }
 0x337   : > { %v8286_v48 = vadd.f32 %v5299_v44, %v8199_v16 }
 0x338   : > { %v3396_v22 = vpop.f32.mrf.mxu1 }
 0x339   : > { %v8289_v55 = vadd.f32 %v3396_v22, %v8188_v17 }
 0x33a   : > { %v5300_v33 = vpop.f32.mrf.mxu1 }
 0x33b   : > { %v8292_v14 = vadd.f32 %v5300_v33, %v8202_v23 }
 0x33c   : > { %v3399_v21 = vpop.f32.mrf.mxu1 }
 0x33d   : > { %v8295_v60 = vadd.f32 %v3399_v21, %v8193_v51 }
 0x33e   : > { %v5303_v6 = vpop.f32.mrf.mxu1 }
 0x33f   : > { %v8298_v13 = vadd.f32 %v5303_v6, %v8217_v54  ;;  %v5327_v54 = vpop.f32.mrf.mxu0 }
 0x340   : > { %v3412_v45 = vpop.f32.mrf.mxu1 }
 0x341   : > { %v8301_v16 = vadd.f32 %v3412_v45, %v8208_v28 }
 0x342   : > { %v5304_v24 = vpop.f32.mrf.mxu1 }
 0x343   : > { %v8304_v17 = vadd.f32 %v5304_v24, %v8226_v58  ;;  %v3975_v58 = vpop.f32.mrf.mxu0 }
 0x344   : > { %v3415_v26 = vpop.f32.mrf.mxu1 }
 0x345   : > { %v8307_v23 = vadd.f32 %v3415_v26, %v8211_v5  ;;  %v5328_v5 = vpop.f32.mrf.mxu0 }
 0x346   : > { %v5307_v4 = vpop.f32.mrf.mxu1 }
 0x347   : > { %v8309_v62 = vadd.f32 %v5307_v4, %v3276_v57  ;;  %v8321_v57 = vld [vmem:[%s8771_s4] ss:$0 sm:$0xff]  ;;  %v3978_v18 = vpop.f32.mrf.mxu0 }
 0x348   : > { %v3428_v51 = vpop.f32.mrf.mxu1 }
 0x349   : > { %v8312_v7 = vadd.f32 %v3428_v51, %v8235_v32  ;;  %v5331_v44 = vpop.f32.mrf.mxu0 }
 0x34a   : > { %v5308_v3 = vpop.f32.mrf.mxu1 }
 0x34b   : > { %v8314_v37 = vadd.f32 %v5308_v3, %v3279_v49  ;;  %v3991_v4 = vpop.f32.mrf.mxu0 }
 0x34c   : > { %v3431_v28 = vpop.f32.mrf.mxu1 }
 0x34d   : > { %v8316_v29 = vadd.f32 %v3431_v28, %v3271_v42 }
 0x34e   : > { %v5045_v31 = vpop.f32.mrf.mxu1 }
 0x350   : > { %v5046_v0 = vpop.f32.mrf.mxu1 }
 0x351   : > { %v5047_v38 = vadd.f32 %v5046_v0, %v5045_v31 }
 0x352   : > { %v5048_v11 = vpop.f32.mrf.mxu1 }
 0x353   : > { %v3976_v35 = vadd.f32 %v5047_v38, %v3975_v58  ;;  %v5332_v38 = vpop.f32.mrf.mxu0 }
 0x354   : > { %v5049_v32 = vpop.f32.mrf.mxu1 }
 0x355   : > { %v4102_v8 = vadd.f32 %v3976_v35, %v8221_v39  ;;  %v5050_v49 = vadd.f32 %v5049_v32, %v5048_v11 }
 0x356   : > { %v5051_v43 = vpop.f32.mrf.mxu1 }
 0x357   : > { %v8325_v42 = vadd.f32 %v8321_v57, %v4102_v8  ;;  %v3979_v12 = vadd.f32 %v5050_v49, %v3978_v18 }
 0x358   : > { %v5052_v10 = vpop.f32.mrf.mxu1 }
 0x359   : > { %v4173_v46 = vmin.f32 %v8325_v42, 20.0  ;;  %v4103_v36 = vadd.f32 %v3979_v12, %v8230_v52  ;;  %v5053_v30 = vadd.f32 %v5052_v10, %v5051_v43  ;;  %v3994_v43 = vpop.f32.mrf.mxu0 }
 0x35a   : > { %v5054_v22 = vpop.f32.mrf.mxu1 }
 0x35b   : > { %v4205_v33 = vmul.f32 1.442695, %v4173_v46  ;;  %v8330_v21 = vadd.f32 %v8321_v57, %v4103_v36  ;;  %v3984_v39 = vadd.f32 %v5327_v54, %v5053_v30 }
 0x35c   : > { %v5055_v6 = vpop.f32.mrf.mxu1 }
 0x35d   : > { %5639 = vpow2.f32 %v4205_v33  ;;  %v4174_v45 = vmin.f32 %v8330_v21, 20.0  ;;  %v4104_v24 = vadd.f32 %v3984_v39, %v8215_v61  ;;  %v5056_v26 = vadd.f32 %v5055_v6, %v5054_v22  ;;  %v8349_v6 = vpop.f32.mrf.mxu0 }
 0x35e   : > { %v5057_v51 = vpop.f32.mrf.mxu1 }
 0x35f   : > { %v4207_v3 = vmul.f32 1.442695, %v4174_v45  ;;  %v8335_v52 = vadd.f32 %v8321_v57, %v4104_v24  ;;  %v3987_v28 = vadd.f32 %v5328_v5, %v5056_v26 }
 0x360   : > { %v5058_v58 = vpop.f32.mrf.mxu1 }
 0x361   : > { %5641 = vpow2.f32 %v4207_v3  ;;  %v4175_v31 = vmin.f32 %v8335_v52, 20.0  ;;  %v4105_v54 = vadd.f32 %v3987_v28, %v8224_v20  ;;  %v5059_v0 = vadd.f32 %v5058_v58, %v5057_v51 }
 0x362   : > { %v5060_v11 = vpop.f32.mrf.mxu1 }
 0x363   : > { %v4209_v35 = vmul.f32 1.442695, %v4175_v31  ;;  %v8340_v61 = vadd.f32 %v8321_v57, %v4105_v54  ;;  %v3992_v32 = vadd.f32 %v5059_v0, %v3991_v4  ;;  %v4007_v31 = vpop.f32.mrf.mxu0 }
 0x364   : > { %v5061_v8 = vpop.f32.mrf.mxu1 }
 0x365   : > { %5643 = vpow2.f32 %v4209_v35  ;;  %v4176_v49 = vmin.f32 %v8340_v61, 20.0  ;;  %v4106_v5 = vadd.f32 %v3992_v32, %v8239_v40  ;;  %v5062_v18 = vadd.f32 %v5061_v8, %v5060_v11 }
 0x366   : > { %v5063_v12 = vpop.f32.mrf.mxu1 }
 0x367   : > { %v4211_v10 = vmul.f32 1.442695, %v4176_v49  ;;  %v8345_v20 = vadd.f32 %v8321_v57, %v4106_v5  ;;  %v3995_v46 = vadd.f32 %v5062_v18, %v3994_v43 }
 0x368   : > { %v5064_v36 = vpop.f32.mrf.mxu1 }
 0x369   : > { %5645 = vpow2.f32 %v4211_v10  ;;  %v4177_v30 = vmin.f32 %v8345_v20, 20.0  ;;  %v4107_v22 = vadd.f32 %v3995_v46, %v8246_v9  ;;  %v5065_v33 = vadd.f32 %v5064_v36, %v5063_v12  ;;  %v5336_v12 = vpop.f32.mrf.mxu0 }
 0x36a   : > { %v5640_v39 = vpop.eup %5639  ;;  %v5066_v45 = vpop.f32.mrf.mxu1 }
 0x36b   : > { %v4269_v40 = vadd.f32 2.0, %v5640_v39  ;;  %v4213_v24 = vmul.f32 1.442695, %v4177_v30  ;;  %v8352_v26 = vadd.f32 %v8321_v57, %v4107_v22  ;;  %v4000_v4 = vadd.f32 %v5331_v44, %v5065_v33 }
 0x36c   : > { %v5067_v51 = vpop.f32.mrf.mxu1 }
 0x36d   : > { %v8354_v3 = vmul.f32 %v5640_v39, %v4269_v40  ;;  %5647 = vpow2.f32 %v4213_v24  ;;  %v4178_v28 = vmin.f32 %v8352_v26, 20.0  ;;  %v4108_v58 = vadd.f32 %v4000_v4, %v8233_v15 }
 0x36e   : > { %v5642_v9 = vpop.eup %5641  ;;  %v5068_v54 = vadd.f32 %v5067_v51, %v5066_v45  ;;  %v5069_v0 = vpop.f32.mrf.mxu1 }
 0x36f   : > { %v4333_v11 = vadd.f32 2.0, %v8354_v3  ;;  %v4270_v35 = vadd.f32 2.0, %v5642_v9  ;;  %v4215_v32 = vmul.f32 1.442695, %v4178_v28  ;;  %v8360_v8 = vadd.f32 %v8321_v57, %v4108_v58  ;;  %v4010_v51 = vpop.f32.mrf.mxu0 }
 0x370   : > { %v4003_v44 = vadd.f32 %v5332_v38, %v5068_v54  ;;  %v5070_v49 = vpop.f32.mrf.mxu1 }
 0x371   : > { %5649 = vrcp.f32 %v4333_v11  ;;  %v8362_v5 = vmul.f32 %v5642_v9, %v4270_v35  ;;  %v4179_v18 = vmin.f32 %v8360_v8, 20.0  ;;  %v5071_v43 = vadd.f32 %v5070_v49, %v5069_v0  ;;  %v8382_v49 = vpop.f32.mrf.mxu0 }
 0x372   : > { %v5644_v15 = vpop.eup %5643  ;;  %5651 = vpow2.f32 %v4215_v32  ;;  %v4109_v10 = vadd.f32 %v4003_v44, %v8242_v25  ;;  %v5072_v46 = vpop.f32.mrf.mxu1 }
 0x373   : > { %v4334_v36 = vadd.f32 2.0, %v8362_v5  ;;  %v4271_v30 = vadd.f32 2.0, %v5644_v15  ;;  %v4217_v22 = vmul.f32 1.442695, %v4179_v18  ;;  %v4008_v33 = vadd.f32 %v5071_v43, %v4007_v31 }
 0x374   : > { %v8368_v38 = vadd.f32 %v8321_v57, %v4109_v10  ;;  %v5073_v39 = vpop.f32.mrf.mxu1 }
 0x375   : > { %5653 = vrcp.f32 %v4334_v36  ;;  %v8370_v45 = vmul.f32 %v5644_v15, %v4271_v30  ;;  %v4110_v40 = vadd.f32 %v4008_v33, %v8253_v27  ;;  %v5074_v24 = vadd.f32 %v5073_v39, %v5072_v46 }
 0x376   : > { %v5646_v4 = vpop.eup %5645  ;;  %5655 = vpow2.f32 %v4217_v22  ;;  %v4180_v25 = vmin.f32 %v8368_v38, 20.0  ;;  %v5075_v28 = vpop.f32.mrf.mxu1 }
 0x377   : > { %v4335_v58 = vadd.f32 2.0, %v8370_v45  ;;  %v4272_v9 = vadd.f32 2.0, %v5646_v4  ;;  %v8376_v31 = vadd.f32 %v8321_v57, %v4110_v40  ;;  %v4011_v54 = vadd.f32 %v5074_v24, %v4010_v51  ;;  %v4023_v24 = vpop.f32.mrf.mxu0 }
 0x378   : > { %v4219_v0 = vmul.f32 1.442695, %v4180_v25  ;;  %v5076_v11 = vpop.f32.mrf.mxu1 }
 0x379   : > { %5657 = vrcp.f32 %v4335_v58  ;;  %v8378_v35 = vmul.f32 %v5646_v4, %v4272_v9  ;;  %v4181_v27 = vmin.f32 %v8376_v31, 20.0  ;;  %v4111_v32 = vadd.f32 %v4011_v54, %v8259_v2 }
 0x37a   : > { %v5648_v44 = vpop.eup %5647  ;;  %5659 = vpow2.f32 %v4219_v0  ;;  %v5077_v18 = vadd.f32 %v5076_v11, %v5075_v28  ;;  %v5078_v43 = vpop.f32.mrf.mxu1 }
 0x37b   : > { %v4336_v15 = vadd.f32 2.0, %v8378_v35  ;;  %v4273_v10 = vadd.f32 2.0, %v5648_v44  ;;  %v4221_v46 = vmul.f32 1.442695, %v4181_v27  ;;  %v8386_v36 = vadd.f32 %v8321_v57, %v4111_v32 }
 0x37c   : > { %v4016_v30 = vadd.f32 %v8349_v6, %v5077_v18  ;;  %v5079_v22 = vpop.f32.mrf.mxu1  ;;  %v8400_v18 = vpop.f32.mrf.mxu0 }
 0x37d   : > { %5661 = vrcp.f32 %v4336_v15  ;;  %v8389_v33 = vmul.f32 %v5648_v44, %v4273_v10  ;;  %v4182_v2 = vmin.f32 %v8386_v36, 20.0  ;;  %v5080_v39 = vadd.f32 %v5079_v22, %v5078_v43  ;;  %v5768_v10 = vld [vmem:[%s6125_s30] sm:$0xff] }
 0x37e   : > { %v5650_v40 = vpop.eup %5649  ;;  %5663 = vpow2.f32 %v4221_v46  ;;  %v4112_v4 = vadd.f32 %v4016_v30, %v8249_v56  ;;  %v5081_v51 = vpop.f32.mrf.mxu1 }
 0x37f   : > { %v5652_v25 = vpop.eup %5651  ;;  %v4397_v28 = vmul.f32 %v5650_v40, %v8354_v3  ;;  %v4337_v58 = vadd.f32 2.0, %v8389_v33  ;;  %v4223_v9 = vmul.f32 1.442695, %v4182_v2  ;;  %v4019_v6 = vadd.f32 %v5336_v12, %v5080_v39 }
 0x380   : > { %v4274_v54 = vadd.f32 2.0, %v5652_v25  ;;  %v8396_v0 = vadd.f32 %v8321_v57, %v4112_v4  ;;  %v5082_v11 = vpop.f32.mrf.mxu1 }
 0x381   : > { %v4429_v27 = vmul.f32 %v4397_v28, %v8325_v42  ;;  %5665 = vrcp.f32 %v4337_v58  ;;  %v4113_v32 = vadd.f32 %v4019_v6, %v8256_v50  ;;  %v5083_v56 = vadd.f32 %v5082_v11, %v5081_v51 }
 0x382   : > { %v5654_v44 = vpop.eup %5653  ;;  %v8402_v3 = vmul.f32 %v5652_v25, %v4274_v54  ;;  %5667 = vpow2.f32 %v4223_v9  ;;  %v4183_v12 = vmin.f32 %v8396_v0, 20.0  ;;  %v5084_v43 = vpop.f32.mrf.mxu1  ;;  %v5769_v54 = vld [vmem:[%s6125_s30 + $0x8] sm:$0xff] }
 0x383   : > { %v5656_v15 = vpop.eup %5655  ;;  %v4461_v46 = vadd.f32 %v5768_v10, %v4429_v27  ;;  %v4398_v30 = vmul.f32 %v5654_v44, %v8362_v5  ;;  %v8408_v42 = vadd.f32 %v8321_v57, %v4113_v32  ;;  %v4024_v50 = vadd.f32 %v5083_v56, %v4023_v24  ;;  %v4026_v24 = vpop.f32.mrf.mxu0 }
 0x384   : > { %v4338_v22 = vadd.f32 2.0, %v8402_v3  ;;  %v4275_v2 = vadd.f32 2.0, %v5656_v15  ;;  %v4225_v39 = vmul.f32 1.442695, %v4183_v12  ;;  %v5085_v40 = vpop.f32.mrf.mxu1 }
 0x385   : > { %4493 = vst [vmem:[%s8413_s11] sm:$0xff] %v4461_v46  ;;  %v4430_v4 = vmul.f32 %v4398_v30, %v8330_v21  ;;  %v4184_v51 = vmin.f32 %v8408_v42, 20.0  ;;  %v4114_v5 = vadd.f32 %v4024_v50, %v8265_v63  ;;  %v5086_v25 = vadd.f32 %v5085_v40, %v5084_v43  ;;  %v8429_v46 = vpop.f32.mrf.mxu0 }
 0x386   : > { %v5658_v28 = vpop.eup %5657  ;;  %5669 = vrcp.f32 %v4338_v22  ;;  %v8419_v58 = vmul.f32 %v5656_v15, %v4275_v2  ;;  %v5087_v9 = vpop.f32.mrf.mxu1 }
 0x387   : > { %v5660_v6 = vpop.eup %5659  ;;  %v4462_v11 = vadd.f32 %v5769_v54, %v4430_v4  ;;  %v4399_v27 = vmul.f32 %v5658_v28, %v8370_v45  ;;  %5671 = vpow2.f32 %v4225_v39  ;;  %v4227_v32 = vmul.f32 1.442695, %v4184_v51  ;;  %v5770_v39 = vld [vmem:[%s6125_s30 + $0x10] sm:$0xff] }
 0x388   : > { %v4339_v21 = vadd.f32 2.0, %v8419_v58  ;;  %v4276_v56 = vadd.f32 2.0, %v5660_v6  ;;  %v8425_v63 = vadd.f32 %v8321_v57, %v4114_v5  ;;  %v4027_v44 = vadd.f32 %v5086_v25, %v4026_v24  ;;  %v5088_v12 = vpop.f32.mrf.mxu1 }
 0x389   : > { %4494 = vst [vmem:[%s8413_s11 + $0x8] sm:$0xff] %v4462_v11  ;;  %v4431_v43 = vmul.f32 %v4399_v27, %v8335_v52  ;;  %5673 = vpow2.f32 %v4227_v32  ;;  %v5089_v15 = vadd.f32 %v5088_v12, %v5087_v9  ;;  %v4039_v11 = vpop.f32.mrf.mxu0 }
 0x38a   : > { %v5662_v10 = vpop.eup %5661  ;;  %5675 = vrcp.f32 %v4339_v21  ;;  %v8431_v45 = vmul.f32 %v5660_v6, %v4276_v56  ;;  %v4185_v30 = vmin.f32 %v8425_v63, 20.0  ;;  %v4115_v50 = vadd.f32 %v4027_v44, %v8271_v34  ;;  %v5090_v22 = vpop.f32.mrf.mxu1  ;;  %v5771_v21 = vld [vmem:[%s6125_s30 + $0x18] sm:$0xff] }
 0x38b   : > { %v5664_v2 = vpop.eup %5663  ;;  %v4463_v40 = vadd.f32 %v5770_v39, %v4431_v43  ;;  %v4400_v4 = vmul.f32 %v5662_v10, %v8378_v35  ;;  %v4032_v52 = vadd.f32 %v8382_v49, %v5089_v15 }
 0x38c   : > { %v4340_v51 = vadd.f32 2.0, %v8431_v45  ;;  %v4277_v5 = vadd.f32 2.0, %v5664_v2  ;;  %v4229_v25 = vmul.f32 1.442695, %v4185_v30  ;;  %v8440_v28 = vadd.f32 %v8321_v57, %v4115_v50  ;;  %v5091_v24 = vpop.f32.mrf.mxu1 }
 0x38d   : > { %4495 = vst [vmem:[%s8413_s11 + $0x10] sm:$0xff] %v4463_v40  ;;  %v4432_v34 = vmul.f32 %v4400_v4, %v8340_v61  ;;  %v4116_v9 = vadd.f32 %v4032_v52, %v8262_v47  ;;  %v5092_v6 = vadd.f32 %v5091_v24, %v5090_v22  ;;  %v5772_v52 = vld [vmem:[%s6125_s30 + $0x20] sm:$0xff] }
 0x38e   : > { %v5666_v54 = vpop.eup %5665  ;;  %5677 = vrcp.f32 %v4340_v51  ;;  %v8445_v35 = vmul.f32 %v5664_v2, %v4277_v5  ;;  %v4186_v49 = vmin.f32 %v8440_v28, 20.0  ;;  %v5093_v27 = vpop.f32.mrf.mxu1 }
 0x38f   : > { %v5668_v32 = vpop.eup %5667  ;;  %v4464_v56 = vadd.f32 %v5771_v21, %v4432_v34  ;;  %v4401_v44 = vmul.f32 %v5666_v54, %v8389_v33  ;;  %5679 = vpow2.f32 %v4229_v25  ;;  %v8451_v61 = vadd.f32 %v8321_v57, %v4116_v9  ;;  %v8458_v2 = vpop.f32.mrf.mxu0 }
 0x390   : > { %v4341_v47 = vadd.f32 2.0, %v8445_v35  ;;  %v4278_v12 = vadd.f32 2.0, %v5668_v32  ;;  %v4231_v43 = vmul.f32 1.442695, %v4186_v49  ;;  %v4035_v15 = vadd.f32 %v8400_v18, %v5092_v6  ;;  %v5094_v10 = vpop.f32.mrf.mxu1 }
 0x391   : > { %4496 = vst [vmem:[%s8413_s11 + $0x18] sm:$0xff] %v4464_v56  ;;  %v4433_v30 = vmul.f32 %v4401_v44, %v8345_v20  ;;  %v4187_v50 = vmin.f32 %v8451_v61, 20.0  ;;  %v5095_v22 = vadd.f32 %v5094_v10, %v5093_v27  ;;  %v4042_v27 = vpop.f32.mrf.mxu0 }
 0x392   : > { %5681 = vrcp.f32 %v4341_v47  ;;  %v8460_v33 = vmul.f32 %v5668_v32, %v4278_v12  ;;  %v4117_v39 = vadd.f32 %v4035_v15, %v8268_v59  ;;  %v5096_v40 = vpop.f32.mrf.mxu1 }
 0x393   : > { %v5670_v4 = vpop.eup %5669  ;;  %v4465_v51 = vadd.f32 %v5772_v52, %v4433_v30  ;;  %5683 = vpow2.f32 %v4231_v43  ;;  %v4233_v18 = vmul.f32 1.442695, %v4187_v50  ;;  %v4040_v5 = vadd.f32 %v5095_v22, %v4039_v11  ;;  %v5773_v43 = vld [vmem:[%s6125_s30 + $0x28] sm:$0xff] }
 0x394   : > { %v5672_v25 = vpop.eup %5671  ;;  %v4402_v20 = vmul.f32 %v5670_v4, %v8402_v3  ;;  %v4342_v24 = vadd.f32 2.0, %v8460_v33  ;;  %v8467_v34 = vadd.f32 %v8321_v57, %v4117_v39  ;;  %v5097_v9 = vpop.f32.mrf.mxu1 }
 0x395   : > { %4497 = vst [vmem:[%s8413_s11 + $0x20] sm:$0xff] %v4465_v51  ;;  %v4279_v6 = vadd.f32 2.0, %v5672_v25  ;;  %5685 = vpow2.f32 %v4233_v18  ;;  %v4118_v59 = vadd.f32 %v4040_v5, %v8277_v41  ;;  %v5098_v54 = vadd.f32 %v5097_v9, %v5096_v40  ;;  %v8485_v40 = vpop.f32.mrf.mxu0 }
 0x396   : > { %v5674_v49 = vpop.eup %5673  ;;  %v4434_v11 = vmul.f32 %v4402_v20, %v8352_v26  ;;  %5687 = vrcp.f32 %v4342_v24  ;;  %v4188_v3 = vmin.f32 %v8467_v34, 20.0  ;;  %v5099_v32 = vpop.f32.mrf.mxu1  ;;  %v5774_v24 = vld [vmem:[%s6125_s30 + $0x30] sm:$0xff] }
 0x397   : > { %v5676_v21 = vpop.eup %5675  ;;  %v8473_v56 = vmul.f32 %v5672_v25, %v4279_v6  ;;  %v4280_v44 = vadd.f32 2.0, %v5674_v49  ;;  %v8476_v47 = vadd.f32 %v8321_v57, %v4118_v59  ;;  %v4043_v12 = vadd.f32 %v5098_v54, %v4042_v27  ;;  %v4055_v27 = vpop.f32.mrf.mxu0 }
 0x398   : > { %v4466_v41 = vadd.f32 %v5773_v43, %v4434_v11  ;;  %v4403_v15 = vmul.f32 %v5676_v21, %v8419_v58  ;;  %v4235_v10 = vmul.f32 1.442695, %v4188_v3  ;;  %v5100_v30 = vpop.f32.mrf.mxu1  ;;  %v5775_v43 = vld [vmem:[%s6125_s30 + $0x38] sm:$0xff] }
 0x399   : > { %v4343_v26 = vadd.f32 2.0, %v8473_v56  ;;  %v8481_v50 = vmul.f32 %v5674_v49, %v4280_v44  ;;  %v4189_v22 = vmin.f32 %v8476_v47, 20.0  ;;  %v4119_v39 = vadd.f32 %v4043_v12, %v8283_v1 }
 0x39a   : > { %4498 = vst [vmem:[%s8413_s11 + $0x28] sm:$0xff] %v4466_v41  ;;  %v4435_v4 = vmul.f32 %v4403_v15, %v8360_v8  ;;  %5689 = vpow2.f32 %v4235_v10  ;;  %v5101_v52 = vadd.f32 %v5100_v30, %v5099_v32  ;;  %v5102_v51 = vpop.f32.mrf.mxu1 }
 0x39b   : > { %v5678_v58 = vpop.eup %5677  ;;  %5691 = vrcp.f32 %v4343_v26  ;;  %v4344_v18 = vadd.f32 2.0, %v8481_v50  ;;  %v4237_v5 = vmul.f32 1.442695, %v4189_v22  ;;  %v8491_v25 = vadd.f32 %v8321_v57, %v4119_v39  ;;  %v8510_v39 = vpop.f32.mrf.mxu0 }
 0x39c   : > { %v5680_v20 = vpop.eup %5679  ;;  %v4467_v1 = vadd.f32 %v5774_v24, %v4435_v4  ;;  %v4404_v9 = vmul.f32 %v5678_v58, %v8431_v45  ;;  %v4048_v6 = vadd.f32 %v8429_v46, %v5101_v52  ;;  %v5103_v8 = vpop.f32.mrf.mxu1 }
 0x39d   : > { %5693 = vrcp.f32 %v4344_v18  ;;  %v4281_v59 = vadd.f32 2.0, %v5680_v20  ;;  %v4190_v54 = vmin.f32 %v8491_v25, 20.0  ;;  %v5104_v49 = vadd.f32 %v5103_v8, %v5102_v51 }
 0x39e   : > { %4499 = vst [vmem:[%s8413_s11 + $0x30] sm:$0xff] %v4467_v1  ;;  %v4436_v11 = vmul.f32 %v4404_v9, %v8368_v38  ;;  %5695 = vpow2.f32 %v4237_v5  ;;  %v4120_v3 = vadd.f32 %v4048_v6, %v8274_v53  ;;  %v5105_v32 = vpop.f32.mrf.mxu1 }
 0x39f   : > { %v5682_v21 = vpop.eup %5681  ;;  %v8500_v45 = vmul.f32 %v5680_v20, %v4281_v59  ;;  %v4239_v46 = vmul.f32 1.442695, %v4190_v54  ;;  %v4051_v44 = vadd.f32 %v8458_v2, %v5104_v49  ;;  %v4058_v49 = vpop.f32.mrf.mxu0 }
 0x3a0   : > { %v5684_v12 = vpop.eup %5683  ;;  %v4468_v41 = vadd.f32 %v5775_v43, %v4436_v11  ;;  %v4405_v15 = vmul.f32 %v5682_v21, %v8445_v35  ;;  %v8506_v10 = vadd.f32 %v8321_v57, %v4120_v3  ;;  %v5106_v38 = vpop.f32.mrf.mxu1 }
 0x3a1   : > { %v4345_v30 = vadd.f32 2.0, %v8500_v45  ;;  %v4282_v53 = vadd.f32 2.0, %v5684_v12  ;;  %5697 = vpow2.f32 %v4239_v46  ;;  %v4121_v26 = vadd.f32 %v4051_v44, %v8280_v19  ;;  %v5776_v19 = vld [vmem:[%s6125_s30 + $0x40] sm:$0xff] }
 0x3a2   : > { %v5686_v22 = vpop.eup %5685  ;;  %4500 = vst [vmem:[%s8413_s11 + $0x38] sm:$0xff] %v4468_v41  ;;  %v4437_v2 = vmul.f32 %v4405_v15, %v8376_v31  ;;  %v4191_v4 = vmin.f32 %v8506_v10, 20.0  ;;  %v5107_v35 = vadd.f32 %v5106_v38, %v5105_v32  ;;  %v5108_v52 = vpop.f32.mrf.mxu1 }
 0x3a3   : > { %v5688_v51 = vpop.eup %5687  ;;  %5699 = vrcp.f32 %v4345_v30  ;;  %v8515_v58 = vmul.f32 %v5684_v12, %v4282_v53  ;;  %v4283_v18 = vadd.f32 2.0, %v5686_v22  ;;  %v8518_v5 = vadd.f32 %v8321_v57, %v4121_v26  ;;  %v5777_v12 = vld [vmem:[%s6125_s30 + $0x48] sm:$0xff]  ;;  %v8536_v26 = vpop.f32.mrf.mxu0 }
 0x3a4   : > { %v4469_v20 = vadd.f32 %v5776_v19, %v4437_v2  ;;  %v4406_v24 = vmul.f32 %v5688_v51, %v8460_v33  ;;  %v4241_v1 = vmul.f32 1.442695, %v4191_v4  ;;  %v4056_v9 = vadd.f32 %v5107_v35, %v4055_v27  ;;  %v5109_v31 = vpop.f32.mrf.mxu1 }
 0x3a5   : > { %v4346_v6 = vadd.f32 2.0, %v8515_v58  ;;  %v8523_v8 = vmul.f32 %v5686_v22, %v4283_v18  ;;  %v4192_v59 = vmin.f32 %v8518_v5, 20.0  ;;  %v5110_v54 = vadd.f32 %v5109_v31, %v5108_v52 }
 0x3a6   : > { %4501 = vst [vmem:[%s8413_s11 + $0x40] sm:$0xff] %v4469_v20  ;;  %v4438_v11 = vmul.f32 %v4406_v24, %v8386_v36  ;;  %5701 = vpow2.f32 %v4241_v1  ;;  %v4122_v3 = vadd.f32 %v4056_v9, %v8289_v55  ;;  %v5111_v32 = vpop.f32.mrf.mxu1  ;;  %v5778_v1 = vld [vmem:[%s6125_s30 + $0x50] sm:$0xff] }
 0x3a7   : > { %v5690_v33 = vpop.eup %5689  ;;  %5703 = vrcp.f32 %v4346_v6  ;;  %v4347_v27 = vadd.f32 2.0, %v8523_v8  ;;  %v4243_v21 = vmul.f32 1.442695, %v4192_v59  ;;  %v4059_v46 = vadd.f32 %v5110_v54, %v4058_v49  ;;  %v4071_v59 = vpop.f32.mrf.mxu0 }
 0x3a8   : > { %v5692_v44 = vpop.eup %5691  ;;  %v4470_v43 = vadd.f32 %v5777_v12, %v4438_v11  ;;  %v4284_v41 = vadd.f32 2.0, %v5690_v33  ;;  %v8532_v15 = vadd.f32 %v8321_v57, %v4122_v3  ;;  %v5112_v38 = vpop.f32.mrf.mxu1  ;;  %v5779_v11 = vld [vmem:[%s6125_s30 + $0x58] sm:$0xff] }
 0x3a9   : > { %v4407_v36 = vmul.f32 %v5692_v44, %v8473_v56  ;;  %5705 = vrcp.f32 %v4347_v27  ;;  %v4123_v55 = vadd.f32 %v4059_v46, %v8295_v60  ;;  %v5113_v30 = vadd.f32 %v5112_v38, %v5111_v32 }
 0x3aa   : > { %v5694_v53 = vpop.eup %5693  ;;  %4502 = vst [vmem:[%s8413_s11 + $0x48] sm:$0xff] %v4470_v43  ;;  %v8539_v22 = vmul.f32 %v5690_v33, %v4284_v41  ;;  %5707 = vpow2.f32 %v4243_v21  ;;  %v4193_v2 = vmin.f32 %v8532_v15, 20.0  ;;  %v5114_v4 = vpop.f32.mrf.mxu1 }
 0x3ab   : > { %v5696_v35 = vpop.eup %5695  ;;  %v4439_v52 = vmul.f32 %v4407_v36, %v8396_v0  ;;  %v4408_v56 = vmul.f32 %v5694_v53, %v8481_v50  ;;  %v8545_v51 = vadd.f32 %v8321_v57, %v4123_v55  ;;  %v4064_v60 = vadd.f32 %v8485_v40, %v5113_v30  ;;  %v8566_v41 = vpop.f32.mrf.mxu0 }
 0x3ac   : > { %v4348_v18 = vadd.f32 2.0, %v8539_v22  ;;  %v4285_v19 = vadd.f32 2.0, %v5696_v35  ;;  %v4245_v20 = vmul.f32 1.442695, %v4193_v2  ;;  %v5115_v24 = vpop.f32.mrf.mxu1 }
 0x3ad   : > { %v4471_v9 = vadd.f32 %v5778_v1, %v4439_v52  ;;  %v4440_v31 = vmul.f32 %v4408_v56, %v8408_v42  ;;  %v4194_v0 = vmin.f32 %v8545_v51, 20.0  ;;  %v4124_v50 = vadd.f32 %v4064_v60, %v8286_v48  ;;  %v5780_v60 = vld [vmem:[%s6125_s30 + $0x60] sm:$0xff] }
 0x3ae   : > { %v5698_v6 = vpop.eup %5697  ;;  %5709 = vrcp.f32 %v4348_v18  ;;  %v8553_v40 = vmul.f32 %v5696_v35, %v4285_v19  ;;  %v5116_v54 = vadd.f32 %v5115_v24, %v5114_v4  ;;  %v5117_v49 = vpop.f32.mrf.mxu1 }
 0x3af   : > { %4503 = vst [vmem:[%s8413_s11 + $0x50] sm:$0xff] %v4471_v9  ;;  %v4472_v3 = vadd.f32 %v5779_v11, %v4440_v31  ;;  %v4286_v32 = vadd.f32 2.0, %v5698_v6  ;;  %5711 = vpow2.f32 %v4245_v20  ;;  %v4247_v33 = vmul.f32 1.442695, %v4194_v0 }
 0x3b0   : > { %v5700_v27 = vpop.eup %5699  ;;  %v4349_v42 = vadd.f32 2.0, %v8553_v40  ;;  %v8559_v21 = vadd.f32 %v8321_v57, %v4124_v50  ;;  %v4067_v48 = vadd.f32 %v8510_v39, %v5116_v54  ;;  %v5118_v46 = vpop.f32.mrf.mxu1 }
 0x3b1   : > { %4504 = vst [vmem:[%s8413_s11 + $0x58] sm:$0xff] %v4472_v3  ;;  %v4409_v44 = vmul.f32 %v5700_v27, %v8500_v45  ;;  %v8564_v12 = vmul.f32 %v5698_v6, %v4286_v32  ;;  %5713 = vpow2.f32 %v4247_v33  ;;  %v5119_v43 = vadd.f32 %v5118_v46, %v5117_v49  ;;  %v5781_v3 = vld [vmem:[%s6125_s30 + $0x68] sm:$0xff] }
 0x3b2   : > { %5715 = vrcp.f32 %v4349_v42  ;;  %v4195_v38 = vmin.f32 %v8559_v21, 20.0  ;;  %v4125_v36 = vadd.f32 %v4067_v48, %v8292_v14  ;;  %v5120_v55 = vpop.f32.mrf.mxu1 }
 0x3b3   : > { %v5702_v30 = vpop.eup %5701  ;;  %v4441_v39 = vmul.f32 %v4409_v44, %v8425_v63  ;;  %v4350_v53 = vadd.f32 2.0, %v8564_v12  ;;  %v4072_v2 = vadd.f32 %v5119_v43, %v4071_v59  ;;  %v4074_v63 = vpop.f32.mrf.mxu0  ;;  %v5782_v43 = vld [vmem:[%s6125_s30 + $0x70] sm:$0xff] }
 0x3b4   : > { %v5704_v45 = vpop.eup %5703  ;;  %v4287_v4 = vadd.f32 2.0, %v5702_v30  ;;  %v4249_v35 = vmul.f32 1.442695, %v4195_v38  ;;  %v8573_v52 = vadd.f32 %v8321_v57, %v4125_v36  ;;  %v5121_v56 = vpop.f32.mrf.mxu1 }
 0x3b5   : > { %v4473_v18 = vadd.f32 %v5780_v60, %v4441_v39  ;;  %v4410_v19 = vmul.f32 %v5704_v45, %v8515_v58  ;;  %5717 = vrcp.f32 %v4350_v53  ;;  %v4126_v14 = vadd.f32 %v4072_v2, %v8301_v16  ;;  %v8591_v42 = vpop.f32.mrf.mxu0 }
 0x3b6   : > { %v5706_v20 = vpop.eup %5705  ;;  %v8578_v24 = vmul.f32 %v5702_v30, %v4287_v4  ;;  %5719 = vpow2.f32 %v4249_v35  ;;  %v4196_v1 = vmin.f32 %v8573_v52, 20.0  ;;  %v5122_v9 = vadd.f32 %v5121_v56, %v5120_v55  ;;  %v5123_v31 = vpop.f32.mrf.mxu1 }
 0x3b7   : > { %v5708_v0 = vpop.eup %5707  ;;  %4505 = vst [vmem:[%s8413_s11 + $0x60] sm:$0xff] %v4473_v18  ;;  %v4442_v50 = vmul.f32 %v4410_v19, %v8440_v28  ;;  %v4411_v6 = vmul.f32 %v5706_v20, %v8523_v8  ;;  %v8585_v58 = vadd.f32 %v8321_v57, %v4126_v14  ;;  %v4087_v56 = vpop.f32.mrf.mxu0 }
 0x3b8   : > { %v4351_v16 = vadd.f32 2.0, %v8578_v24  ;;  %v4288_v59 = vadd.f32 2.0, %v5708_v0  ;;  %v4251_v54 = vmul.f32 1.442695, %v4196_v1  ;;  %v4075_v49 = vadd.f32 %v5122_v9, %v4074_v63  ;;  %v5124_v11 = vpop.f32.mrf.mxu1 }
 0x3b9   : > { %v4474_v32 = vadd.f32 %v5781_v3, %v4442_v50  ;;  %v4443_v33 = vmul.f32 %v4411_v6, %v8451_v61  ;;  %v4197_v27 = vmin.f32 %v8585_v58, 20.0  ;;  %v5125_v28 = vadd.f32 %v5124_v11, %v5123_v31 }
 0x3ba   : > { %5721 = vrcp.f32 %v4351_v16  ;;  %v8593_v8 = vmul.f32 %v5708_v0, %v4288_v59  ;;  %v4127_v48 = vadd.f32 %v4075_v49, %v8307_v23  ;;  %v5126_v46 = vpop.f32.mrf.mxu1 }
 0x3bb   : > { %v5710_v44 = vpop.eup %5709  ;;  %4506 = vst [vmem:[%s8413_s11 + $0x68] sm:$0xff] %v4474_v32  ;;  %v4475_v38 = vadd.f32 %v5782_v43, %v4443_v33  ;;  %5723 = vpow2.f32 %v4251_v54  ;;  %v4253_v36 = vmul.f32 1.442695, %v4197_v27  ;;  %v4080_v61 = vadd.f32 %v8536_v26, %v5125_v28  ;;  %v8621_v54 = vpop.f32.mrf.mxu0  ;;  %v5784_v27 = vld [vmem:[%s6125_s30 + $0x80] sm:$0xff] }
 0x3bc   : > { %v5712_v55 = vpop.eup %5711  ;;  %v4412_v30 = vmul.f32 %v5710_v44, %v8539_v22  ;;  %v4352_v39 = vadd.f32 2.0, %v8593_v8  ;;  %v8602_v53 = vadd.f32 %v8321_v57, %v4127_v48  ;;  %v5127_v2 = vpop.f32.mrf.mxu1 }
 0x3bd   : > { %4507 = vst [vmem:[%s8413_s11 + $0x70] sm:$0xff] %v4475_v38  ;;  %v4289_v23 = vadd.f32 2.0, %v5712_v55  ;;  %5725 = vpow2.f32 %v4253_v36  ;;  %v4128_v45 = vadd.f32 %v4080_v61, %v8298_v13  ;;  %v5128_v4 = vadd.f32 %v5127_v2, %v5126_v46  ;;  %v5783_v13 = vld [vmem:[%s6125_s30 + $0x78] sm:$0xff]  ;;  %v4090_v38 = vpop.f32.mrf.mxu0 }
 0x3be   : > { %v5714_v35 = vpop.eup %5713  ;;  %v4444_v26 = vmul.f32 %v4412_v30, %v8467_v34  ;;  %5727 = vrcp.f32 %v4352_v39  ;;  %v4198_v22 = vmin.f32 %v8602_v53, 20.0  ;;  %v5129_v60 = vpop.f32.mrf.mxu1  ;;  %v5785_v39 = vld [vmem:[%s6125_s30 + $0x88] sm:$0xff] }
 0x3bf   : > { %v5716_v18 = vpop.eup %5715  ;;  %v8608_v19 = vmul.f32 %v5712_v55, %v4289_v23  ;;  %v4290_v14 = vadd.f32 2.0, %v5714_v35  ;;  %v8611_v20 = vadd.f32 %v8321_v57, %v4128_v45  ;;  %v4083_v63 = vadd.f32 %v8566_v41, %v5128_v4 }
 0x3c0   : > { %v4476_v1 = vadd.f32 %v5783_v13, %v4444_v26  ;;  %v4413_v9 = vmul.f32 %v5716_v18, %v8553_v40  ;;  %v4255_v31 = vmul.f32 1.442695, %v4198_v22  ;;  %v5130_v34 = vpop.f32.mrf.mxu1 }
 0x3c1   : > { %v4353_v0 = vadd.f32 2.0, %v8608_v19  ;;  %v8617_v50 = vmul.f32 %v5714_v35, %v4290_v14  ;;  %v4199_v6 = vmin.f32 %v8611_v20, 20.0  ;;  %v4129_v16 = vadd.f32 %v4083_v63, %v8304_v17 }
 0x3c2   : > { %v5718_v59 = vpop.eup %5717  ;;  %4508 = vst [vmem:[%s8413_s11 + $0x78] sm:$0xff] %v4476_v1  ;;  %v4445_v41 = vmul.f32 %v4413_v9, %v8476_v47  ;;  %5729 = vpow2.f32 %v4255_v31  ;;  %v5131_v49 = vadd.f32 %v5130_v34, %v5129_v60  ;;  %v5132_v40 = vpop.f32.mrf.mxu1  ;;  %v5786_v34 = vld [vmem:[%s6125_s30 + $0x90] sm:$0xff] }
 0x3c3   : > { %v5720_v11 = vpop.eup %5719  ;;  %v4414_v3 = vmul.f32 %v5718_v59, %v8564_v12  ;;  %5731 = vrcp.f32 %v4353_v0  ;;  %v4354_v32 = vadd.f32 2.0, %v8617_v50  ;;  %v4257_v33 = vmul.f32 1.442695, %v4199_v6 }
 0x3c4   : > { %v4477_v28 = vadd.f32 %v5784_v27, %v4445_v41  ;;  %v4291_v17 = vadd.f32 2.0, %v5720_v11  ;;  %v8629_v48 = vadd.f32 %v8321_v57, %v4129_v16  ;;  %v4088_v46 = vadd.f32 %v5131_v49, %v4087_v56  ;;  %v5133_v47 = vpop.f32.mrf.mxu1  ;;  %v5787_v27 = vld [vmem:[%s6125_s30 + $0x98] sm:$0xff] }
 0x3c5   : > { %v4446_v44 = vmul.f32 %v4414_v3, %v8491_v25  ;;  %5733 = vrcp.f32 %v4354_v32  ;;  %v5134_v43 = vadd.f32 %v5133_v47, %v5132_v40 }
 0x3c6   : > { %4509 = vst [vmem:[%s8413_s11 + $0x80] sm:$0xff] %v4477_v28  ;;  %v8633_v12 = vmul.f32 %v5720_v11, %v4291_v17  ;;  %5735 = vpow2.f32 %v4257_v33  ;;  %v4200_v36 = vmin.f32 %v8629_v48, 20.0  ;;  %v4130_v61 = vadd.f32 %v4088_v46, %v8312_v7  ;;  %v5135_v55 = vpop.f32.mrf.mxu1  ;;  %v5788_v46 = vld [vmem:[%s8771_s4] ss:$0 sm:$0xff] }
 0x3c7   : > { %v5722_v30 = vpop.eup %5721  ;;  %v4478_v2 = vadd.f32 %v5785_v39, %v4446_v44  ;;  %v4091_v23 = vadd.f32 %v5134_v43, %v4090_v38 }
 0x3c8   : > { %v5724_v45 = vpop.eup %5723  ;;  %v4415_v25 = vmul.f32 %v5722_v30, %v8578_v24  ;;  %v4355_v4 = vadd.f32 2.0, %v8633_v12  ;;  %v4259_v35 = vmul.f32 1.442695, %v4200_v36  ;;  %v8641_v56 = vadd.f32 %v8321_v57, %v4130_v61  ;;  %v5136_v26 = vpop.f32.mrf.mxu1 }
 0x3c9   : > { %4510 = vst [vmem:[%s8413_s11 + $0x88] sm:$0xff] %v4478_v2  ;;  %v4292_v22 = vadd.f32 2.0, %v5724_v45  ;;  %v4131_v7 = vadd.f32 %v4091_v23, %v8316_v29  ;;  %v5137_v60 = vadd.f32 %v5136_v26, %v5135_v55 }
 0x3ca   : > { %v5726_v18 = vpop.eup %5725  ;;  %v4447_v14 = vmul.f32 %v4415_v25, %v8506_v10  ;;  %5737 = vrcp.f32 %v4355_v4  ;;  %v4201_v63 = vmin.f32 %v8641_v56, 20.0  ;;  %v5138_v24 = vpop.f32.mrf.mxu1 }
 0x3cb   : > { %v5728_v13 = vpop.eup %5727  ;;  %v8647_v1 = vmul.f32 %v5724_v45, %v4292_v22  ;;  %v4293_v9 = vadd.f32 2.0, %v5726_v18  ;;  %5739 = vpow2.f32 %v4259_v35  ;;  %v8650_v31 = vadd.f32 %v8321_v57, %v4131_v7 }
 0x3cc   : > { %v4479_v0 = vadd.f32 %v5786_v34, %v4447_v14  ;;  %v4416_v29 = vmul.f32 %v5728_v13, %v8593_v8  ;;  %v4261_v6 = vmul.f32 1.442695, %v4201_v63  ;;  %v4096_v10 = vadd.f32 %v8591_v42, %v5137_v60  ;;  %v5139_v16 = vpop.f32.mrf.mxu1 }
 0x3cd   : > { %v4356_v59 = vadd.f32 2.0, %v8647_v1  ;;  %v8656_v41 = vmul.f32 %v5726_v18, %v4293_v9  ;;  %v4202_v49 = vmin.f32 %v8650_v31, 20.0  ;;  %v5140_v40 = vadd.f32 %v5139_v16, %v5138_v24  ;;  %v5791_v24 = vld [vmem:[%s6125_s30 + $0xb0] sm:$0xff] }
 0x3ce   : > { %4511 = vst [vmem:[%s8413_s11 + $0x90] sm:$0xff] %v4479_v0  ;;  %v4448_v57 = vmul.f32 %v4416_v29, %v8518_v5  ;;  %5741 = vpow2.f32 %v4261_v6  ;;  %v4132_v11 = vadd.f32 %v4096_v10, %v8309_v62 }
 0x3cf   : > { %v5730_v8 = vpop.eup %5729  ;;  %5743 = vrcp.f32 %v4356_v59  ;;  %v4357_v42 = vadd.f32 2.0, %v8656_v41  ;;  %v4263_v3 = vmul.f32 1.442695, %v4202_v49  ;;  %v4099_v32 = vadd.f32 %v8621_v54, %v5140_v40  ;;  %v5792_v49 = vld [vmem:[%s6125_s30 + $0xb8] sm:$0xff] }
 0x3d0   : > { %v5732_v33 = vpop.eup %5731  ;;  %v4480_v28 = vadd.f32 %v5787_v27, %v4448_v57  ;;  %v4294_v17 = vadd.f32 2.0, %v5730_v8  ;;  %v8668_v5 = vadd.f32 %v5788_v46, %v4132_v11 }
 0x3d1   : > { %v4417_v62 = vmul.f32 %v5732_v33, %v8608_v19  ;;  %5745 = vrcp.f32 %v4357_v42  ;;  %v4133_v47 = vadd.f32 %v4099_v32, %v8314_v37  ;;  %v5789_v37 = vld [vmem:[%s6125_s30 + $0xa0] sm:$0xff] }
 0x3d2   : > { %v5734_v44 = vpop.eup %5733  ;;  %4512 = vst [vmem:[%s8413_s11 + $0x98] sm:$0xff] %v4480_v28  ;;  %v4326_v43 = vmul.f32 %v5730_v8, %v4294_v17  ;;  %5747 = vpow2.f32 %v4263_v3  ;;  %v4203_v54 = vmin.f32 %v8668_v5, 20.0  ;;  %v5793_v8 = vld [vmem:[%s6125_s30 + $0xc0] sm:$0xff] }
 0x3d3   : > { %v5736_v38 = vpop.eup %5735  ;;  %v4449_v36 = vmul.f32 %v4417_v62, %v8532_v15  ;;  %v4418_v61 = vmul.f32 %v5734_v44, %v8617_v50  ;;  %v8676_v55 = vadd.f32 %v5788_v46, %v4133_v47  ;;  %v5790_v15 = vld [vmem:[%s6125_s30 + $0xa8] sm:$0xff] }
 0x3d4   : > { %v4358_v30 = vadd.f32 2.0, %v4326_v43  ;;  %v4295_v19 = vadd.f32 2.0, %v5736_v38  ;;  %v4265_v39 = vmul.f32 1.442695, %v4203_v54  ;;  %v5794_v46 = vld [vmem:[%s6125_s30 + $0xc8] sm:$0xff] }
 0x3d5   : > { %v4481_v2 = vadd.f32 %v5789_v37, %v4449_v36  ;;  %v4450_v23 = vmul.f32 %v4418_v61, %v8545_v51  ;;  %v4204_v45 = vmin.f32 %v8676_v55, 20.0 }
 0x3d6   : > { %5749 = vrcp.f32 %v4358_v30  ;;  %v4327_v25 = vmul.f32 %v5736_v38, %v4295_v19 }
 0x3d7   : > { %v5738_v4 = vpop.eup %5737  ;;  %4513 = vst [vmem:[%s8413_s11 + $0xa0] sm:$0xff] %v4481_v2  ;;  %v4482_v35 = vadd.f32 %v5790_v15, %v4450_v23  ;;  %5751 = vpow2.f32 %v4265_v39  ;;  %v4267_v50 = vmul.f32 1.442695, %v4204_v45  ;;  %v5796_v2 = vld [vmem:[%s6125_s30 + $0xd8] sm:$0xff] }
 0x3d8   : > { %v5740_v26 = vpop.eup %5739  ;;  %v4419_v22 = vmul.f32 %v5738_v4, %v8633_v12  ;;  %v4359_v7 = vadd.f32 2.0, %v4327_v25 }
 0x3d9   : > { %4514 = vst [vmem:[%s8413_s11 + $0xa8] sm:$0xff] %v4482_v35  ;;  %v4296_v60 = vadd.f32 2.0, %v5740_v26  ;;  %5753 = vpow2.f32 %v4267_v50 }
 0x3da   : > { %v4451_v51 = vmul.f32 %v4419_v22, %v8559_v21  ;;  %5755 = vrcp.f32 %v4359_v7 }
 0x3db   : > { %v5742_v18 = vpop.eup %5741  ;;  %v4328_v14 = vmul.f32 %v5740_v26, %v4296_v60 }
 0x3dc   : > { %v5744_v63 = vpop.eup %5743  ;;  %v4483_v13 = vadd.f32 %v5791_v24, %v4451_v51  ;;  %v4297_v9 = vadd.f32 2.0, %v5742_v18  ;;  %v5799_v51 = vld [vmem:[%s6125_s30 + $0xf0] sm:$0xff] }
 0x3dd   : > { %v4420_v34 = vmul.f32 %v5744_v63, %v8647_v1  ;;  %v4360_v0 = vadd.f32 2.0, %v4328_v14 }
 0x3de   : > { %v5746_v12 = vpop.eup %5745  ;;  %4515 = vst [vmem:[%s8413_s11 + $0xb0] sm:$0xff] %v4483_v13  ;;  %v4329_v29 = vmul.f32 %v5742_v18, %v4297_v9 }
 0x3df   : > { %v5748_v6 = vpop.eup %5747  ;;  %v4452_v10 = vmul.f32 %v4420_v34, %v8573_v52  ;;  %v4421_v21 = vmul.f32 %v5746_v12, %v8656_v41  ;;  %5757 = vrcp.f32 %v4360_v0 }
 0x3e0   : > { %v4361_v16 = vadd.f32 2.0, %v4329_v29  ;;  %v4298_v59 = vadd.f32 2.0, %v5748_v6 }
 0x3e1   : > { %v4484_v40 = vadd.f32 %v5792_v49, %v4452_v10  ;;  %v4453_v57 = vmul.f32 %v4421_v21, %v8585_v58 }
 0x3e2   : > { %5759 = vrcp.f32 %v4361_v16  ;;  %v4330_v1 = vmul.f32 %v5748_v6, %v4298_v59 }
 0x3e3   : > { %v5750_v11 = vpop.eup %5749  ;;  %4516 = vst [vmem:[%s8413_s11 + $0xb8] sm:$0xff] %v4484_v40  ;;  %v4485_v42 = vadd.f32 %v5793_v8, %v4453_v57 }
 0x3e4   : > { %v5752_v3 = vpop.eup %5751  ;;  %v4422_v52 = vmul.f32 %v5750_v11, %v4326_v43  ;;  %v4362_v32 = vadd.f32 2.0, %v4330_v1 }
 0x3e5   : > { %4517 = vst [vmem:[%s8413_s11 + $0xc0] sm:$0xff] %v4485_v42  ;;  %v4299_v41 = vadd.f32 2.0, %v5752_v3 }
 0x3e6   : > { %v5754_v33 = vpop.eup %5753  ;;  %v4454_v27 = vmul.f32 %v4422_v52, %v8602_v53  ;;  %5761 = vrcp.f32 %v4362_v32  ;;  %v5795_v53 = vld [vmem:[%s6125_s30 + $0xd0] sm:$0xff] }
 0x3e7   : > { %v5756_v28 = vpop.eup %5755  ;;  %v4331_v58 = vmul.f32 %v5752_v3, %v4299_v41  ;;  %v4300_v17 = vadd.f32 2.0, %v5754_v33 }
 0x3e8   : > { %v4486_v62 = vadd.f32 %v5794_v46, %v4454_v27  ;;  %v4423_v47 = vmul.f32 %v5756_v28, %v4327_v25  ;;  %v5797_v25 = vld [vmem:[%s6125_s30 + $0xe0] sm:$0xff] }
 0x3e9   : > { %v4363_v44 = vadd.f32 2.0, %v4331_v58  ;;  %v4332_v54 = vmul.f32 %v5754_v33, %v4300_v17 }
 0x3ea   : > { %4518 = vst [vmem:[%s8413_s11 + $0xc8] sm:$0xff] %v4486_v62  ;;  %v4455_v43 = vmul.f32 %v4423_v47, %v8611_v20 }
 0x3eb   : > { %5763 = vrcp.f32 %v4363_v44  ;;  %v4364_v38 = vadd.f32 2.0, %v4332_v54 }
 0x3ec   : > { %v5758_v36 = vpop.eup %5757  ;;  %v4487_v61 = vadd.f32 %v5795_v53, %v4455_v43 }
 0x3ed   : > { %v4424_v30 = vmul.f32 %v5758_v36, %v4328_v14  ;;  %5765 = vrcp.f32 %v4364_v38 }
 0x3ee   : > { %4519 = vst [vmem:[%s8413_s11 + $0xd0] sm:$0xff] %v4487_v61 }
 0x3ef   : > { %v5760_v19 = vpop.eup %5759  ;;  %v4456_v39 = vmul.f32 %v4424_v30, %v8629_v48  ;;  %v5798_v48 = vld [vmem:[%s6125_s30 + $0xe8] sm:$0xff] }
 0x3f0   : > { %v4425_v37 = vmul.f32 %v5760_v19, %v4329_v29 }
 0x3f1   : > { %v4488_v23 = vadd.f32 %v5796_v2, %v4456_v39 }
 0x3f2   : > { %v4457_v20 = vmul.f32 %v4425_v37, %v8641_v56 }
 0x3f3   : > { %v5762_v45 = vpop.eup %5761  ;;  %4520 = vst [vmem:[%s8413_s11 + $0xd8] sm:$0xff] %v4488_v23 }
 0x3f4   : > { %v4489_v4 = vadd.f32 %v5797_v25, %v4457_v20  ;;  %v4426_v15 = vmul.f32 %v5762_v45, %v4330_v1 }
 0x3f6   : > { %4521 = vst [vmem:[%s8413_s11 + $0xe0] sm:$0xff] %v4489_v4  ;;  %v4458_v35 = vmul.f32 %v4426_v15, %v8650_v31 }
 0x3f8   : > { %v5764_v50 = vpop.eup %5763  ;;  %v4490_v26 = vadd.f32 %v5798_v48, %v4458_v35 }
 0x3f9   : > { %v4427_v22 = vmul.f32 %v5764_v50, %v4331_v58 }
 0x3fa   : > { %v5766_v56 = vpop.eup %5765  ;;  %4522 = vst [vmem:[%s8413_s11 + $0xe8] sm:$0xff] %v4490_v26 }
 0x3fb   : > { %v4459_v7 = vmul.f32 %v4427_v22, %v8668_v5  ;;  %v4428_v60 = vmul.f32 %v5766_v56, %v4332_v54  ;;  %v5800_v5 = vld [vmem:[%s6125_s30 + $0xf8] sm:$0xff] }
 0x3fd   : > { %v4491_v18 = vadd.f32 %v5799_v51, %v4459_v7  ;;  %v4460_v31 = vmul.f32 %v4428_v60, %v8676_v55 }
 0x3ff   : > { %4523 = vst [vmem:[%s8413_s11 + $0xf0] sm:$0xff] %v4491_v18  ;;  %v4492_v14 = vadd.f32 %v5800_v5, %v4460_v31 }
 0x401   : > { %4524 = vst [vmem:[%s8413_s11 + $0xf8] sm:$0xff] %v4492_v14 }
 0x402   : > { %5894 = shalt.err (!%p5891_p9)
}
 0x403   : > { %s5895_s30 = scalar_lea.hbm %s8719_s14, 4096  ;;  %s5899_s11 = scalar_lea.hbm %s8772_s5, 8192 }
 0x404   : > { %p5896_p13 = scmp.ne.s32.totalorder %s8719_s14, %s5895_s30  ;;  %p5900_p4 = scmp.lt.s32.totalorder %s8719_s14, %s8772_s5 }
 0x405   : > { %p5901_p8 = scmp.lt.s32.totalorder %s5899_s11, %s5895_s30 }
 0x406   : > { %p5897_p5 = pnand %p5896_p13, %p9466_p10 }
 0x407   : > { %p5902_p3 = por %p5901_p8, %p5900_p4 }
 0x408   : > { %p5898_p0 = pneg %p5897_p5 }
 0x40a   : > { %p5903_p11 = pnand %p5902_p3, %p5898_p0 }
 0x40c   : > { %5906 = shalt.err (!%p5903_p11)
}
 0x40d   : > { %s5960_s6 = smov 128   ;;  %s5961_s9 = smov 8  }
 0x40e   : > { %5367 = dma.vmem_to_hbm [thread:$0]  (%p9466_p10), %s8721_s7, 4096, %s8719_s14, %s4526_s22, %s5960_s6, %s5960_s6, %s5961_s9  }
 0x40f PF: > { %s4554_s13 = sand.u32 1, %s5937_s18   ;;  %p9467_p1 = scmp.ne.s32.totalorder %s8975_s25, 0 }
 0x410   : > { %p9468_p2 = scmp.ge.s32.totalorder %s5949_s21, 2  ;;  %s4555_s17 = scalar_lea.sflag [#allocation4], %s4554_s13 }
 0x412   : > { %p5381_p6 = pnand %p9468_p2, %p9467_p1 }
 0x414   : > { %p5382_p12 = pneg %p5381_p6 }
 0x416   : > { %5932 = dma.done.wait (%p5382_p12), %s4555_s17, 4096  }
 0x417   : > { %5934 = vsyncadd (%p5382_p12), %s4555_s17, 4294963200  ;;  %p19_p7 = scmp.ge.s32.totalorder %s6064_s15, 4   ;;  %s9469_s18 = smov %s5941_s19 }
 0x418   : > { %s9470_s19 = smov %s5945_s20  ;;  %s9471_s20 = smov %s6080_s27 }
 0x419   : > { %s9472_s21 = smov %s6064_s15  ;;  %21 = sbr.rel (!%p19_p7) target bundleno = 6 (0x6), region = 95 }
 0x41e   :  { %4560 = vsyncpa [#allocation3], 1 }
 0x41f   :  { %4562 = vsyncpa [#allocation3 + $0x1], 1 }
 0x420   :  { %4563 = vsyncpa [#allocation6], 1 }
 0x421   :  { %4564 = vsyncpa [#allocation4], 1 }
 0x422   :  { %4566 = vsyncpa [#allocation4 + $0x1], 1 }

</bundles_post_ra>
